<compile_context>
chip_gen: v7x
topology: tpu7x:2x2x1
jax: 0.10.0
libtpu: 0.0.40
codegen_flags: <defaults>
</compile_context>

<pallas_src>
import functools
import math

import numpy as np
import jax
import jax.numpy as jnp
from jax.experimental import pallas as pl
from jax.experimental.pallas import tpu as pltpu


def _round_up(a: int, b: int) -> int:
    return (a + b - 1) // b * b


def _resin_layer_kernel(
    lo_ref,                                  # scalar prefetch: per-tile node-window starts (SMEM)
    dst_ref, xsrc_ref, ea_ref, x_ref,
    wr1d_ref, wr1s_ref, wr1e_ref, br1_ref, wr2_ref, br2_ref, wr3_ref, br3_ref,
    wo1x_ref, wo1a_ref, bo1_ref, wo2_ref, bo2_ref, wo3_ref, bo3_ref,
    x_out_ref, e_out_ref,
    aggr_ref,
    *, alpha, window, n_chunk,
):
    f32 = jnp.float32
    bf16 = jnp.bfloat16
    relu = lambda t: jnp.maximum(t, 0.0)
    j = pl.program_id(0)

    @pl.when(j == 0)
    def _init():
        aggr_ref[...] = jnp.zeros_like(aggr_ref)

    te = dst_ref.shape[1]
    lo = pl.multiple_of(lo_ref[j], 128)          # window start for this edge tile

    # ---- windowed one-hot over this tile's node range: onehot[w, e] = (dst[e]-lo == w) ----
    # dst is lane-major (1, TE); iota runs over the window on sublanes -> sublane broadcast only.
    local = dst_ref[...] - lo                                          # [1, TE] int32
    w_iota = jax.lax.broadcasted_iota(jnp.int32, (window, te), 0)      # [W, TE]
    onehot = (local == w_iota).astype(bf16)                            # [W, TE]; exact 0/1

    # ---- in-kernel gather of x at target nodes (x_i) from the resident x^T window ----
    xw = x_ref[:, pl.ds(lo, window)].astype(bf16)                      # [Dn, W]
    x_dst = jnp.dot(xw, onehot, preferred_element_type=f32)            # [Dn, TE]

    # ---- relational (edge) MLP, feature-major: y^T = W @ x^T, edges on lanes ----
    # First layer split into three K-small dots (x_dst | x_src | edge_attr) -> no sublane concat,
    # and edge_attr is only shipped once (f32) and cast here for the MXU.
    ea = ea_ref[...]                                                   # [De, TE] f32
    h = (jnp.dot(wr1d_ref[...], x_dst.astype(bf16), preferred_element_type=f32)
         + jnp.dot(wr1s_ref[...], xsrc_ref[...], preferred_element_type=f32)
         + jnp.dot(wr1e_ref[...], ea.astype(bf16), preferred_element_type=f32)
         + br1_ref[...])
    h = relu(h).astype(bf16)
    h = jnp.dot(wr2_ref[...], h, preferred_element_type=f32) + br2_ref[...]
    h = relu(h).astype(bf16)
    e_tilde = jnp.dot(wr3_ref[...], h, preferred_element_type=f32) + br3_ref[...]   # [De, TE] f32

    # skip1 residual on edges (f32 elementwise; v5e has no bf16 VPU)
    e_out_ref[...] = alpha * ea + (1.0 - alpha) * relu(e_tilde)

    # ---- windowed scatter-add at target nodes (contract edge axis, rhs "transposed") ----
    # NOTE: e_tilde is bf16-quantized before summation (f32 accumulate); error grows ~degree.
    part = jax.lax.dot_general(
        e_tilde.astype(bf16), onehot,
        dimension_numbers=(((1,), (1,)), ((), ())),
        preferred_element_type=f32)                                    # [De, W]
    aggr_ref[:, pl.ds(lo, window)] += part

    # ---- object (node) MLP + skip1 node residual: epilogue on last edge tile,
    #      chunked over node lanes so intermediates stay register-resident ----
    @pl.when(j == pl.num_programs(0) - 1)
    def _finalize():
        n_chunks = x_ref.shape[1] // n_chunk

        def chunk(c, carry):
            off = pl.multiple_of(c * n_chunk, 128)
            xc = x_ref[:, pl.ds(off, n_chunk)]                         # [Dn, NC] f32
            ac = aggr_ref[:, pl.ds(off, n_chunk)]                      # [De, NC] f32
            g = (jnp.dot(wo1x_ref[...], xc.astype(bf16), preferred_element_type=f32)
                 + jnp.dot(wo1a_ref[...], ac.astype(bf16), preferred_element_type=f32)
                 + bo1_ref[...])
            g = relu(g).astype(bf16)
            g = jnp.dot(wo2_ref[...], g, preferred_element_type=f32) + bo2_ref[...]
            g = relu(g).astype(bf16)
            dx = jnp.dot(wo3_ref[...], g, preferred_element_type=f32) + bo3_ref[...]  # [Dn, NC]
            # padded node columns (>= N) carry bias-driven garbage; never read back
            x_out_ref[:, pl.ds(off, n_chunk)] = alpha * xc + (1.0 - alpha) * relu(dx)
            return carry

        jax.lax.fori_loop(0, n_chunks, chunk, 0)


def _interaction_layer(xT, eaT, xsrcT, dst2d, lo_arr, kp, *, alpha, tile_e, window, n_chunk):
    """One InteractionNetwork layer + skip1 residual; feature-major, edges sorted by dst."""
    Dn, Np = xT.shape
    De, Ep = eaT.shape
    n_tiles = Ep // tile_e

    def whole(shape):  # resident whole-array block (constant block index)
        return pl.BlockSpec(shape, lambda j, lo: (0, 0))

    weights = (
        kp["wr1d"], kp["wr1s"], kp["wr1e"], kp["br1"],
        kp["wr2"], kp["br2"], kp["wr3"], kp["br3"],
        kp["wo1x"], kp["wo1a"], kp["bo1"],
        kp["wo2"], kp["bo2"], kp["wo3"], kp["bo3"],
    )

    in_specs = [
        pl.BlockSpec((1, tile_e), lambda j, lo: (0, j)),      # dst indices, lane-major int32
        pl.BlockSpec((Dn, tile_e), lambda j, lo: (0, j)),     # x_src^T tile (bf16)
        pl.BlockSpec((De, tile_e), lambda j, lo: (0, j)),     # edge_attr^T tile (f32, single copy)
        whole((Dn, Np)),                                      # x^T, resident
    ] + [whole(w.shape) for w in weights]

    grid_spec = pltpu.PrefetchScalarGridSpec(
        num_scalar_prefetch=1,                                # lo_arr -> SMEM
        grid=(n_tiles,),
        in_specs=in_specs,
        out_specs=(
            pl.BlockSpec((Dn, Np), lambda j, lo: (0, 0)),     # x_out^T (written in epilogue)
            pl.BlockSpec((De, tile_e), lambda j, lo: (0, j)), # e_out^T per tile
        ),
        scratch_shapes=[pltpu.VMEM((De, Np), jnp.float32)],   # aggregation accumulator
    )

    kernel = functools.partial(_resin_layer_kernel, alpha=float(alpha),
                               window=int(window), n_chunk=int(n_chunk))
    x_outT, e_outT = pl.pallas_call(
        kernel,
        out_shape=(
            jax.ShapeDtypeStruct((Dn, Np), jnp.float32),
            jax.ShapeDtypeStruct((De, Ep), jnp.float32),
        ),
        grid_spec=grid_spec,
        compiler_params=pltpu.CompilerParams(
            dimension_semantics=("arbitrary",),               # accumulation across edge tiles
            vmem_limit_bytes=48 * 1024 * 1024,                # fits v7x's 64 MiB physical VMEM
        ),
    )(lo_arr, dst2d, xsrcT, eaT, xT, *weights)
    return x_outT, e_outT


# ------------------------------ parameters ---------------------------------

def _linear_params(key, fan_in, fan_out):
    """PyTorch nn.Linear default init, torch layout: W [out, in], b [out, 1]."""
    kw, kb = jax.random.split(key)
    bound = 1.0 / math.sqrt(float(fan_in))
    w = jax.random.uniform(kw, (fan_out, fan_in), jnp.float32, -bound, bound)
    b = jax.random.uniform(kb, (fan_out, 1), jnp.float32, -bound, bound)
    return w, b


def init_resin_params(key, *, node_dim, edge_dim, object_hidden_dim=40,
                      relational_hidden_dim=40, n_layers=1):
    params = []
    for _ in range(n_layers):
        key, k1, k2, k3, k4, k5, k6 = jax.random.split(key, 7)
        # relational model: MLP(2*node_dim + edge_dim -> H -> H -> edge_dim)
        wr1, br1 = _linear_params(k1, 2 * node_dim + edge_dim, relational_hidden_dim)
        wr2, br2 = _linear_params(k2, relational_hidden_dim, relational_hidden_dim)
        wr3, br3 = _linear_params(k3, relational_hidden_dim, edge_dim)
        # object model: MLP(node_dim + edge_dim -> H -> H -> node_dim)
        wo1, bo1 = _linear_params(k4, node_dim + edge_dim, object_hidden_dim)
        wo2, bo2 = _linear_params(k5, object_hidden_dim, object_hidden_dim)
        wo3, bo3 = _linear_params(k6, object_hidden_dim, node_dim)
        params.append(dict(wr1=wr1, br1=br1, wr2=wr2, br2=br2, wr3=wr3, br3=br3,
                           wo1=wo1, bo1=bo1, wo2=wo2, bo2=bo2, wo3=wo3, bo3=bo3))
    return params


def _precast_params(params, *, node_dim, edge_dim):
    """One-time split + bf16 cast of all weights (hoisted out of the layer loop)."""
    bf16 = jnp.bfloat16
    out = []
    for p in params:
        wr1, wo1 = p["wr1"], p["wo1"]
        out.append(dict(
            wr1d=wr1[:, :node_dim].astype(bf16),                    # acts on x_i = x[dst]
            wr1s=wr1[:, node_dim:2 * node_dim].astype(bf16),        # acts on x_j = x[src]
            wr1e=wr1[:, 2 * node_dim:].astype(bf16),                # acts on edge_attr
            br1=p["br1"],
            wr2=p["wr2"].astype(bf16), br2=p["br2"],
            wr3=p["wr3"].astype(bf16), br3=p["br3"],
            wo1x=wo1[:, :node_dim].astype(bf16),
            wo1a=wo1[:, node_dim:].astype(bf16),
            bo1=p["bo1"],
            wo2=p["wo2"].astype(bf16), bo2=p["bo2"],
            wo3=p["wo3"].astype(bf16), bo3=p["bo3"],
        ))
    return out


# ------------------------------ forward -------------------------------------

@functools.partial(jax.jit,
                   static_argnames=("alpha", "tile_e", "window", "n_chunk", "n_pad"))
def _resin_forward_impl(kparams, x, edge_attr, perm, inv_perm, src_g, dst2d, lo_arr,
                        *, alpha, tile_e, window, n_chunk, n_pad):
    N, Dn = x.shape
    E, De = edge_attr.shape
    Ep = dst2d.shape[1]
    Np = n_pad

    xT = jnp.zeros((Dn, Np), jnp.float32).at[:, :N].set(x.T)
    ea_sorted = jnp.take(edge_attr, perm, axis=0)                 # edges in dst-sorted order
    eaT = jnp.zeros((De, Ep), jnp.float32).at[:, :E].set(ea_sorted.T)

    hidden_x = []
    hidden_e = [edge_attr]
    for kp in kparams:
        # glue: x[src] gather (src is unsorted -> stays wrapper-side), bf16 once
        xsrcT = jnp.take(xT, src_g, axis=1).astype(jnp.bfloat16)  # [Dn, Ep]
        xT, eaT = _interaction_layer(xT, eaT, xsrcT, dst2d, lo_arr, kp,
                                     alpha=alpha, tile_e=tile_e,
                                     window=window, n_chunk=n_chunk)
        hidden_x.append(xT[:, :N].T)
        hidden_e.append(jnp.take(eaT[:, :E].T, inv_perm, axis=0)) # back to original edge order

    return xT[:, :N].T, hidden_e[-1], hidden_x, hidden_e


def resin_forward(params, x, edge_index, edge_attr, *, alpha=0.5, tile_e=1024):
    """ResIN (residual_type='skip1') forward.

    Returns (x, edge_attr, hidden node embeddings, hidden edge embeddings);
    hidden edge embeddings has n_layers + 1 entries of width edge_dim,
    matching ResIN.concat_edge_embeddings_length for 'skip1'.
    """
    assert tile_e % 128 == 0
    N, Dn = x.shape
    E, De = edge_attr.shape
    assert E > 0

    # ---- host-side preprocessing: sort edges by dst, derive per-tile node windows ----
    ei = np.asarray(jax.device_get(edge_index)).astype(np.int32)
    src_np, dst_np = ei[0], ei[1]
    perm_np = np.argsort(dst_np, kind="stable").astype(np.int32)
    inv_np = np.empty_like(perm_np)
    inv_np[perm_np] = np.arange(E, dtype=np.int32)
    dst_s = dst_np[perm_np]
    src_s = src_np[perm_np]

    Np0 = _round_up(N, 128)
    n_chunk = min(512, Np0)                      # epilogue node-chunk width (lanes)
    Np = _round_up(Np0, n_chunk)
    Ep = _round_up(E, tile_e)
    n_tiles = Ep // tile_e

    lo_np = np.zeros((n_tiles,), np.int32)
    span = 128
    for t in range(n_tiles):
        s, e = t * tile_e, min((t + 1) * tile_e, E)
        if s >= e:
            continue                              # fully padded tile
        l = (int(dst_s[s]) // 128) * 128
        span = max(span, int(dst_s[e - 1]) - l + 1)
        lo_np[t] = l
    window = min(Np, _round_up(span, 128))        # static window width covering every tile
    lo_np = np.minimum(lo_np, Np - window).astype(np.int32)

    src_g_np = np.zeros((Ep,), np.int32)
    src_g_np[:E] = src_s
    dst2d_np = np.full((1, Ep), Np, np.int32)     # sentinel -> outside any window -> zero one-hot
    dst2d_np[0, :E] = dst_s

    kparams = _precast_params(params, node_dim=Dn, edge_dim=De)

    return _resin_forward_impl(
        kparams, x, edge_attr,
        jnp.asarray(perm_np), jnp.asarray(inv_np),
        jnp.asarray(src_g_np), jnp.asarray(dst2d_np), jnp.asarray(lo_np),
        alpha=float(alpha), tile_e=int(tile_e), window=int(window),
        n_chunk=int(n_chunk), n_pad=int(Np),
    )


# ------------------------------ reference -----------------------------------

def _resin_reference(params, x, edge_index, edge_attr, *, alpha=0.5):
    """Pure-JAX f32 reference for numerical checking."""
    relu = lambda t: jnp.maximum(t, 0.0)
    N = x.shape[0]
    src, dst = edge_index[0], edge_index[1]
    for p in params:
        m = jnp.concatenate([x[dst], x[src], edge_attr], axis=1)
        h = relu(m @ p["wr1"].T + p["br1"].T)
        h = relu(h @ p["wr2"].T + p["br2"].T)
        e_tilde = h @ p["wr3"].T + p["br3"].T
        aggr = jax.ops.segment_sum(e_tilde, dst, num_segments=N)
        c = jnp.concatenate([x, aggr], axis=1)
        g = relu(c @ p["wo1"].T + p["bo1"].T)
        g = relu(g @ p["wo2"].T + p["bo2"].T)
        dx = g @ p["wo3"].T + p["bo3"].T
        x = alpha * x + (1.0 - alpha) * relu(dx)
        edge_attr = alpha * edge_attr + (1.0 - alpha) * relu(e_tilde)
    return x, edge_attr


if __name__ == "__main__":
    key = jax.random.PRNGKey(0)
    node_dim, edge_dim = 6, 4
    n_layers = 2
    N, E = 200, 600          # exercises node (->256) and edge (->1024) padding

    k_x, k_e, k_idx, k_p = jax.random.split(key, 4)
    x = jax.random.normal(k_x, (N, node_dim), jnp.float32)
    edge_attr = jax.random.normal(k_e, (E, edge_dim), jnp.float32)
    edge_index = jax.random.randint(k_idx, (2, E), 0, N, dtype=jnp.int32)

    params = init_resin_params(
        k_p, node_dim=node_dim, edge_dim=edge_dim,
        object_hidden_dim=40, relational_hidden_dim=40, n_layers=n_layers,
    )

    x_out, e_out, hidden_x, hidden_e = resin_forward(
        params, x, edge_index, edge_attr, alpha=0.5, tile_e=1024
    )
    jax.block_until_ready((x_out, e_out))

    assert x_out.shape == (N, node_dim)
    assert e_out.shape == (E, edge_dim)
    assert len(hidden_x) == n_layers
    assert len(hidden_e) == n_layers + 1          # concat_edge_embeddings_length / edge_dim
    assert all(h.shape == (E, edge_dim) for h in hidden_e)

    # numerical check against a pure-JAX f32 reference (kernel matmuls are bf16)
    x_ref, e_ref = _resin_reference(params, x, edge_index, edge_attr, alpha=0.5)
    err_x = float(jnp.max(jnp.abs(x_out - x_ref)))
    err_e = float(jnp.max(jnp.abs(e_out - e_ref)))
    assert err_x < 0.2 and err_e < 0.2, (err_x, err_e)

    print("KERNEL_OK")
</pallas_src>

<mosaic_0001>
module attributes {stable_mosaic.version = 11 : i64} {
  func.func @_resin_layer_kernel(%arg0: i32, %arg1: memref<1xi32, #tpu.memory_space<smem>>, %arg2: memref<1x1024xi32, #tpu.memory_space<vmem>>, %arg3: memref<6x1024xbf16, #tpu.memory_space<vmem>>, %arg4: memref<4x1024xf32, #tpu.memory_space<vmem>>, %arg5: memref<6x256xf32, #tpu.memory_space<vmem>>, %arg6: memref<40x6xbf16, #tpu.memory_space<vmem>>, %arg7: memref<40x6xbf16, #tpu.memory_space<vmem>>, %arg8: memref<40x4xbf16, #tpu.memory_space<vmem>>, %arg9: memref<40x1xf32, #tpu.memory_space<vmem>>, %arg10: memref<40x40xbf16, #tpu.memory_space<vmem>>, %arg11: memref<40x1xf32, #tpu.memory_space<vmem>>, %arg12: memref<4x40xbf16, #tpu.memory_space<vmem>>, %arg13: memref<4x1xf32, #tpu.memory_space<vmem>>, %arg14: memref<40x6xbf16, #tpu.memory_space<vmem>>, %arg15: memref<40x4xbf16, #tpu.memory_space<vmem>>, %arg16: memref<40x1xf32, #tpu.memory_space<vmem>>, %arg17: memref<40x40xbf16, #tpu.memory_space<vmem>>, %arg18: memref<40x1xf32, #tpu.memory_space<vmem>>, %arg19: memref<6x40xbf16, #tpu.memory_space<vmem>>, %arg20: memref<6x1xf32, #tpu.memory_space<vmem>>, %arg21: memref<6x256xf32, #tpu.memory_space<vmem>>, %arg22: memref<4x1024xf32, #tpu.memory_space<vmem>>, %arg23: memref<4x256xf32, #tpu.memory_space<vmem>>) attributes {dimension_semantics = [#tpu.dimension_semantics<arbitrary>], iteration_bounds = array<i64: 1>, scalar_prefetch = 1 : i64, scratch_operands = 1 : i64, tpu.core_type = #tpu.core_type<tc>, window_params = [{transform_indices = @transform_0, window_bounds = array<i64: 1, 1024>}, {transform_indices = @transform_1, window_bounds = array<i64: 6, 1024>}, {transform_indices = @transform_2, window_bounds = array<i64: 4, 1024>}, {pipeline_mode = #tpu.pipeline_mode<synchronous>, transform_indices = @transform_3, window_bounds = array<i64: 6, 256>}, {pipeline_mode = #tpu.pipeline_mode<synchronous>, transform_indices = @transform_4, window_bounds = array<i64: 40, 6>}, {pipeline_mode = #tpu.pipeline_mode<synchronous>, transform_indices = @transform_5, window_bounds = array<i64: 40, 6>}, {pipeline_mode = #tpu.pipeline_mode<synchronous>, transform_indices = @transform_6, window_bounds = array<i64: 40, 4>}, {pipeline_mode = #tpu.pipeline_mode<synchronous>, transform_indices = @transform_7, window_bounds = array<i64: 40, 1>}, {pipeline_mode = #tpu.pipeline_mode<synchronous>, transform_indices = @transform_8, window_bounds = array<i64: 40, 40>}, {pipeline_mode = #tpu.pipeline_mode<synchronous>, transform_indices = @transform_9, window_bounds = array<i64: 40, 1>}, {pipeline_mode = #tpu.pipeline_mode<synchronous>, transform_indices = @transform_10, window_bounds = array<i64: 4, 40>}, {pipeline_mode = #tpu.pipeline_mode<synchronous>, transform_indices = @transform_11, window_bounds = array<i64: 4, 1>}, {pipeline_mode = #tpu.pipeline_mode<synchronous>, transform_indices = @transform_12, window_bounds = array<i64: 40, 6>}, {pipeline_mode = #tpu.pipeline_mode<synchronous>, transform_indices = @transform_13, window_bounds = array<i64: 40, 4>}, {pipeline_mode = #tpu.pipeline_mode<synchronous>, transform_indices = @transform_14, window_bounds = array<i64: 40, 1>}, {pipeline_mode = #tpu.pipeline_mode<synchronous>, transform_indices = @transform_15, window_bounds = array<i64: 40, 40>}, {pipeline_mode = #tpu.pipeline_mode<synchronous>, transform_indices = @transform_16, window_bounds = array<i64: 40, 1>}, {pipeline_mode = #tpu.pipeline_mode<synchronous>, transform_indices = @transform_17, window_bounds = array<i64: 6, 40>}, {pipeline_mode = #tpu.pipeline_mode<synchronous>, transform_indices = @transform_18, window_bounds = array<i64: 6, 1>}, {pipeline_mode = #tpu.pipeline_mode<synchronous>, transform_indices = @transform_19, window_bounds = array<i64: 6, 256>}, {transform_indices = @transform_20, window_bounds = array<i64: 4, 1024>}]} {
    %c0_i32 = arith.constant 0 : i32
    %0 = arith.cmpi eq, %arg0, %c0_i32 : i32
    %1 = arith.extui %0 : i1 to i32
    %c0_i32_0 = arith.constant 0 : i32
    %2 = arith.cmpi ne, %1, %c0_i32_0 : i32
    scf.if %2 {
      %cst_40 = arith.constant 0.000000e+00 : f32
      %68 = vector.broadcast %cst_40 : f32 to vector<4x256xf32>
      %c0_41 = arith.constant 0 : index
      %c0_42 = arith.constant 0 : index
      %69 = vector.load %arg23[%c0_41, %c0_42] : memref<4x256xf32, #tpu.memory_space<vmem>>, vector<4x256xf32>
      tpu.vector_store %arg23[%c0_41, %c0_42], %68 {strides = array<i32>} : memref<4x256xf32, #tpu.memory_space<vmem>>, vector<4x256xf32>,
    } else {
    }
    %3 = arith.index_cast %arg0 : i32 to index
    %4 = memref.load %arg1[%3] : memref<1xi32, #tpu.memory_space<smem>>
    %5 = tpu.assume_multiple %4, 128 : i32
    %c0 = arith.constant 0 : index
    %c0_1 = arith.constant 0 : index
    %6 = vector.load %arg2[%c0, %c0_1] : memref<1x1024xi32, #tpu.memory_space<vmem>>, vector<1x1024xi32>
    %7 = vector.broadcast %5 : i32 to vector<1x1024xi32>
    %8 = arith.subi %6, %7 : vector<1x1024xi32>
    %9 = tpu.iota {dimensions = array<i32: 0>} : vector<256x1024xi32>
    %10 = vector.broadcast %8 : vector<1x1024xi32> to vector<256x1024xi32>
    %11 = arith.cmpi eq, %10, %9 : vector<256x1024xi32>
    %12 = arith.extui %11 : vector<256x1024xi1> to vector<256x1024xi32>
    %13 = arith.sitofp %12 : vector<256x1024xi32> to vector<256x1024xf32>
    %14 = arith.truncf %13 : vector<256x1024xf32> to vector<256x1024xbf16>
    %c0_2 = arith.constant 0 : index
    %15 = arith.index_cast %5 : i32 to index
    %16 = vector.load %arg5[%c0_2, %15] : memref<6x256xf32, #tpu.memory_space<vmem>>, vector<6x256xf32>
    %17 = arith.truncf %16 : vector<6x256xf32> to vector<6x256xbf16>
    %cst = arith.constant dense<0.000000e+00> : vector<6x1024xf32>
    %18 = tpu.matmul %17, %14, %cst {dimension_numbers = #tpu.dot_dimension_numbers<[1], [0], [0], [1], [0, 0, 1, 1], [], []>} : vector<6x256xbf16>, vector<256x1024xbf16>, vector<6x1024xf32> -> vector<6x1024xf32>
    %c0_3 = arith.constant 0 : index
    %c0_4 = arith.constant 0 : index
    %19 = vector.load %arg4[%c0_3, %c0_4] : memref<4x1024xf32, #tpu.memory_space<vmem>>, vector<4x1024xf32>
    %c0_5 = arith.constant 0 : index
    %c0_6 = arith.constant 0 : index
    %20 = vector.load %arg6[%c0_5, %c0_6] : memref<40x6xbf16, #tpu.memory_space<vmem>>, vector<40x6xbf16>
    %21 = arith.truncf %18 : vector<6x1024xf32> to vector<6x1024xbf16>
    %cst_7 = arith.constant dense<0.000000e+00> : vector<40x1024xf32>
    %22 = tpu.matmul %20, %21, %cst_7 {dimension_numbers = #tpu.dot_dimension_numbers<[1], [0], [0], [1], [0, 0, 1, 1], [], []>} : vector<40x6xbf16>, vector<6x1024xbf16>, vector<40x1024xf32> -> vector<40x1024xf32>
    %c0_8 = arith.constant 0 : index
    %c0_9 = arith.constant 0 : index
    %23 = vector.load %arg7[%c0_8, %c0_9] : memref<40x6xbf16, #tpu.memory_space<vmem>>, vector<40x6xbf16>
    %c0_10 = arith.constant 0 : index
    %c0_11 = arith.constant 0 : index
    %24 = vector.load %arg3[%c0_10, %c0_11] : memref<6x1024xbf16, #tpu.memory_space<vmem>>, vector<6x1024xbf16>
    %cst_12 = arith.constant dense<0.000000e+00> : vector<40x1024xf32>
    %25 = tpu.matmul %23, %24, %cst_12 {dimension_numbers = #tpu.dot_dimension_numbers<[1], [0], [0], [1], [0, 0, 1, 1], [], []>} : vector<40x6xbf16>, vector<6x1024xbf16>, vector<40x1024xf32> -> vector<40x1024xf32>
    %26 = arith.addf %22, %25 : vector<40x1024xf32>
    %c0_13 = arith.constant 0 : index
    %c0_14 = arith.constant 0 : index
    %27 = vector.load %arg8[%c0_13, %c0_14] : memref<40x4xbf16, #tpu.memory_space<vmem>>, vector<40x4xbf16>
    %28 = arith.truncf %19 : vector<4x1024xf32> to vector<4x1024xbf16>
    %cst_15 = arith.constant dense<0.000000e+00> : vector<40x1024xf32>
    %29 = tpu.matmul %27, %28, %cst_15 {dimension_numbers = #tpu.dot_dimension_numbers<[1], [0], [0], [1], [0, 0, 1, 1], [], []>} : vector<40x4xbf16>, vector<4x1024xbf16>, vector<40x1024xf32> -> vector<40x1024xf32>
    %30 = arith.addf %26, %29 : vector<40x1024xf32>
    %c0_16 = arith.constant 0 : index
    %c0_17 = arith.constant 0 : index
    %31 = vector.load %arg9[%c0_16, %c0_17] : memref<40x1xf32, #tpu.memory_space<vmem>>, vector<40x1xf32>
    %32 = vector.broadcast %31 : vector<40x1xf32> to vector<40x1024xf32>
    %33 = arith.addf %30, %32 : vector<40x1024xf32>
    %cst_18 = arith.constant 0.000000e+00 : f32
    %34 = vector.broadcast %cst_18 : f32 to vector<40x1024xf32>
    %35 = arith.maximumf %33, %34 : vector<40x1024xf32>
    %36 = arith.truncf %35 : vector<40x1024xf32> to vector<40x1024xbf16>
    %c0_19 = arith.constant 0 : index
    %c0_20 = arith.constant 0 : index
    %37 = vector.load %arg10[%c0_19, %c0_20] : memref<40x40xbf16, #tpu.memory_space<vmem>>, vector<40x40xbf16>
    %cst_21 = arith.constant dense<0.000000e+00> : vector<40x1024xf32>
    %38 = tpu.matmul %37, %36, %cst_21 {dimension_numbers = #tpu.dot_dimension_numbers<[1], [0], [0], [1], [0, 0, 1, 1], [], []>} : vector<40x40xbf16>, vector<40x1024xbf16>, vector<40x1024xf32> -> vector<40x1024xf32>
    %c0_22 = arith.constant 0 : index
    %c0_23 = arith.constant 0 : index
    %39 = vector.load %arg11[%c0_22, %c0_23] : memref<40x1xf32, #tpu.memory_space<vmem>>, vector<40x1xf32>
    %40 = vector.broadcast %39 : vector<40x1xf32> to vector<40x1024xf32>
    %41 = arith.addf %38, %40 : vector<40x1024xf32>
    %cst_24 = arith.constant 0.000000e+00 : f32
    %42 = vector.broadcast %cst_24 : f32 to vector<40x1024xf32>
    %43 = arith.maximumf %41, %42 : vector<40x1024xf32>
    %44 = arith.truncf %43 : vector<40x1024xf32> to vector<40x1024xbf16>
    %c0_25 = arith.constant 0 : index
    %c0_26 = arith.constant 0 : index
    %45 = vector.load %arg12[%c0_25, %c0_26] : memref<4x40xbf16, #tpu.memory_space<vmem>>, vector<4x40xbf16>
    %cst_27 = arith.constant dense<0.000000e+00> : vector<4x1024xf32>
    %46 = tpu.matmul %45, %44, %cst_27 {dimension_numbers = #tpu.dot_dimension_numbers<[1], [0], [0], [1], [0, 0, 1, 1], [], []>} : vector<4x40xbf16>, vector<40x1024xbf16>, vector<4x1024xf32> -> vector<4x1024xf32>
    %c0_28 = arith.constant 0 : index
    %c0_29 = arith.constant 0 : index
    %47 = vector.load %arg13[%c0_28, %c0_29] : memref<4x1xf32, #tpu.memory_space<vmem>>, vector<4x1xf32>
    %48 = vector.broadcast %47 : vector<4x1xf32> to vector<4x1024xf32>
    %49 = arith.addf %46, %48 : vector<4x1024xf32>
    %cst_30 = arith.constant 5.000000e-01 : f32
    %50 = vector.broadcast %cst_30 : f32 to vector<4x1024xf32>
    %51 = arith.mulf %50, %19 : vector<4x1024xf32>
    %cst_31 = arith.constant 0.000000e+00 : f32
    %52 = vector.broadcast %cst_31 : f32 to vector<4x1024xf32>
    %53 = arith.maximumf %49, %52 : vector<4x1024xf32>
    %cst_32 = arith.constant 5.000000e-01 : f32
    %54 = vector.broadcast %cst_32 : f32 to vector<4x1024xf32>
    %55 = arith.mulf %54, %53 : vector<4x1024xf32>
    %56 = arith.addf %51, %55 : vector<4x1024xf32>
    %c0_33 = arith.constant 0 : index
    %c0_34 = arith.constant 0 : index
    %57 = vector.load %arg22[%c0_33, %c0_34] : memref<4x1024xf32, #tpu.memory_space<vmem>>, vector<4x1024xf32>
    tpu.vector_store %arg22[%c0_33, %c0_34], %56 {strides = array<i32>} : memref<4x1024xf32, #tpu.memory_space<vmem>>, vector<4x1024xf32>,
    %58 = arith.truncf %49 : vector<4x1024xf32> to vector<4x1024xbf16>
    %cst_35 = arith.constant dense<0.000000e+00> : vector<4x256xf32>
    %59 = tpu.matmul %58, %14, %cst_35 {dimension_numbers = #tpu.dot_dimension_numbers<[1], [1], [0], [0], [0, 0, 1, 0], [], []>} : vector<4x1024xbf16>, vector<256x1024xbf16>, vector<4x256xf32> -> vector<4x256xf32>
    %c0_36 = arith.constant 0 : index
    %60 = arith.index_cast %5 : i32 to index
    %61 = vector.load %arg23[%c0_36, %60] : memref<4x256xf32, #tpu.memory_space<vmem>>, vector<4x256xf32>
    %62 = arith.addf %61, %59 : vector<4x256xf32>
    %c0_37 = arith.constant 0 : index
    %63 = arith.index_cast %5 : i32 to index
    %64 = vector.load %arg23[%c0_37, %63] : memref<4x256xf32, #tpu.memory_space<vmem>>, vector<4x256xf32>
    tpu.vector_store %arg23[%c0_37, %63], %62 {strides = array<i32>} : memref<4x256xf32, #tpu.memory_space<vmem>>, vector<4x256xf32>,
    %c0_i32_38 = arith.constant 0 : i32
    %65 = arith.cmpi eq, %arg0, %c0_i32_38 : i32
    %66 = arith.extui %65 : i1 to i32
    %c0_i32_39 = arith.constant 0 : i32
    %67 = arith.cmpi ne, %66, %c0_i32_39 : i32
    scf.if %67 {
      %c0_i32_40 = arith.constant 0 : i32
      %c256_i32 = arith.constant 256 : i32
      %68 = arith.muli %c0_i32_40, %c256_i32 : i32
      %69 = tpu.assume_multiple %68, 128 : i32
      %c0_41 = arith.constant 0 : index
      %70 = arith.index_cast %69 : i32 to index
      %71 = vector.load %arg5[%c0_41, %70] : memref<6x256xf32, #tpu.memory_space<vmem>>, vector<6x256xf32>
      %c0_42 = arith.constant 0 : index
      %72 = arith.index_cast %69 : i32 to index
      %73 = vector.load %arg23[%c0_42, %72] : memref<4x256xf32, #tpu.memory_space<vmem>>, vector<4x256xf32>
      %c0_43 = arith.constant 0 : index
      %c0_44 = arith.constant 0 : index
      %74 = vector.load %arg14[%c0_43, %c0_44] : memref<40x6xbf16, #tpu.memory_space<vmem>>, vector<40x6xbf16>
      %75 = arith.truncf %71 : vector<6x256xf32> to vector<6x256xbf16>
      %cst_45 = arith.constant dense<0.000000e+00> : vector<40x256xf32>
      %76 = tpu.matmul %74, %75, %cst_45 {dimension_numbers = #tpu.dot_dimension_numbers<[1], [0], [0], [1], [0, 0, 1, 1], [], []>} : vector<40x6xbf16>, vector<6x256xbf16>, vector<40x256xf32> -> vector<40x256xf32>
      %c0_46 = arith.constant 0 : index
      %c0_47 = arith.constant 0 : index
      %77 = vector.load %arg15[%c0_46, %c0_47] : memref<40x4xbf16, #tpu.memory_space<vmem>>, vector<40x4xbf16>
      %78 = arith.truncf %73 : vector<4x256xf32> to vector<4x256xbf16>
      %cst_48 = arith.constant dense<0.000000e+00> : vector<40x256xf32>
      %79 = tpu.matmul %77, %78, %cst_48 {dimension_numbers = #tpu.dot_dimension_numbers<[1], [0], [0], [1], [0, 0, 1, 1], [], []>} : vector<40x4xbf16>, vector<4x256xbf16>, vector<40x256xf32> -> vector<40x256xf32>
      %80 = arith.addf %76, %79 : vector<40x256xf32>
      %c0_49 = arith.constant 0 : index
      %c0_50 = arith.constant 0 : index
      %81 = vector.load %arg16[%c0_49, %c0_50] : memref<40x1xf32, #tpu.memory_space<vmem>>, vector<40x1xf32>
      %82 = vector.broadcast %81 : vector<40x1xf32> to vector<40x256xf32>
      %83 = arith.addf %80, %82 : vector<40x256xf32>
      %cst_51 = arith.constant 0.000000e+00 : f32
      %84 = vector.broadcast %cst_51 : f32 to vector<40x256xf32>
      %85 = arith.maximumf %83, %84 : vector<40x256xf32>
      %86 = arith.truncf %85 : vector<40x256xf32> to vector<40x256xbf16>
      %c0_52 = arith.constant 0 : index
      %c0_53 = arith.constant 0 : index
      %87 = vector.load %arg17[%c0_52, %c0_53] : memref<40x40xbf16, #tpu.memory_space<vmem>>, vector<40x40xbf16>
      %cst_54 = arith.constant dense<0.000000e+00> : vector<40x256xf32>
      %88 = tpu.matmul %87, %86, %cst_54 {dimension_numbers = #tpu.dot_dimension_numbers<[1], [0], [0], [1], [0, 0, 1, 1], [], []>} : vector<40x40xbf16>, vector<40x256xbf16>, vector<40x256xf32> -> vector<40x256xf32>
      %c0_55 = arith.constant 0 : index
      %c0_56 = arith.constant 0 : index
      %89 = vector.load %arg18[%c0_55, %c0_56] : memref<40x1xf32, #tpu.memory_space<vmem>>, vector<40x1xf32>
      %90 = vector.broadcast %89 : vector<40x1xf32> to vector<40x256xf32>
      %91 = arith.addf %88, %90 : vector<40x256xf32>
      %cst_57 = arith.constant 0.000000e+00 : f32
      %92 = vector.broadcast %cst_57 : f32 to vector<40x256xf32>
      %93 = arith.maximumf %91, %92 : vector<40x256xf32>
      %94 = arith.truncf %93 : vector<40x256xf32> to vector<40x256xbf16>
      %c0_58 = arith.constant 0 : index
      %c0_59 = arith.constant 0 : index
      %95 = vector.load %arg19[%c0_58, %c0_59] : memref<6x40xbf16, #tpu.memory_space<vmem>>, vector<6x40xbf16>
      %cst_60 = arith.constant dense<0.000000e+00> : vector<6x256xf32>
      %96 = tpu.matmul %95, %94, %cst_60 {dimension_numbers = #tpu.dot_dimension_numbers<[1], [0], [0], [1], [0, 0, 1, 1], [], []>} : vector<6x40xbf16>, vector<40x256xbf16>, vector<6x256xf32> -> vector<6x256xf32>
      %c0_61 = arith.constant 0 : index
      %c0_62 = arith.constant 0 : index
      %97 = vector.load %arg20[%c0_61, %c0_62] : memref<6x1xf32, #tpu.memory_space<vmem>>, vector<6x1xf32>
      %98 = vector.broadcast %97 : vector<6x1xf32> to vector<6x256xf32>
      %99 = arith.addf %96, %98 : vector<6x256xf32>
      %cst_63 = arith.constant 5.000000e-01 : f32
      %100 = vector.broadcast %cst_63 : f32 to vector<6x256xf32>
      %101 = arith.mulf %100, %71 : vector<6x256xf32>
      %cst_64 = arith.constant 0.000000e+00 : f32
      %102 = vector.broadcast %cst_64 : f32 to vector<6x256xf32>
      %103 = arith.maximumf %99, %102 : vector<6x256xf32>
      %cst_65 = arith.constant 5.000000e-01 : f32
      %104 = vector.broadcast %cst_65 : f32 to vector<6x256xf32>
      %105 = arith.mulf %104, %103 : vector<6x256xf32>
      %106 = arith.addf %101, %105 : vector<6x256xf32>
      %c0_66 = arith.constant 0 : index
      %107 = arith.index_cast %69 : i32 to index
      %108 = vector.load %arg21[%c0_66, %107] : memref<6x256xf32, #tpu.memory_space<vmem>>, vector<6x256xf32>
      tpu.vector_store %arg21[%c0_66, %107], %106 {strides = array<i32>} : memref<6x256xf32, #tpu.memory_space<vmem>>, vector<6x256xf32>,
      %c1_i32 = arith.constant 1 : i32
    } else {
    }
    return
  }
  func.func @transform_0(%arg0: i32, %arg1: memref<1xi32, #tpu.memory_space<smem>>) -> (i32, i32) {
    %c0_i32 = arith.constant 0 : i32
    %c0_i32_0 = arith.constant 0 : i32
    return %c0_i32, %arg0 : i32, i32
  }
  func.func @transform_1(%arg0: i32, %arg1: memref<1xi32, #tpu.memory_space<smem>>) -> (i32, i32) {
    %c0_i32 = arith.constant 0 : i32
    %c0_i32_0 = arith.constant 0 : i32
    return %c0_i32, %arg0 : i32, i32
  }
  func.func @transform_2(%arg0: i32, %arg1: memref<1xi32, #tpu.memory_space<smem>>) -> (i32, i32) {
    %c0_i32 = arith.constant 0 : i32
    %c0_i32_0 = arith.constant 0 : i32
    return %c0_i32, %arg0 : i32, i32
  }
  func.func @transform_3(%arg0: i32, %arg1: memref<1xi32, #tpu.memory_space<smem>>) -> (i32, i32) {
    %c0_i32 = arith.constant 0 : i32
    %c0_i32_0 = arith.constant 0 : i32
    %c0_i32_1 = arith.constant 0 : i32
    return %c0_i32, %c0_i32_0 : i32, i32
  }
  func.func @transform_4(%arg0: i32, %arg1: memref<1xi32, #tpu.memory_space<smem>>) -> (i32, i32) {
    %c0_i32 = arith.constant 0 : i32
    %c0_i32_0 = arith.constant 0 : i32
    %c0_i32_1 = arith.constant 0 : i32
    return %c0_i32, %c0_i32_0 : i32, i32
  }
  func.func @transform_5(%arg0: i32, %arg1: memref<1xi32, #tpu.memory_space<smem>>) -> (i32, i32) {
    %c0_i32 = arith.constant 0 : i32
    %c0_i32_0 = arith.constant 0 : i32
    %c0_i32_1 = arith.constant 0 : i32
    return %c0_i32, %c0_i32_0 : i32, i32
  }
  func.func @transform_6(%arg0: i32, %arg1: memref<1xi32, #tpu.memory_space<smem>>) -> (i32, i32) {
    %c0_i32 = arith.constant 0 : i32
    %c0_i32_0 = arith.constant 0 : i32
    %c0_i32_1 = arith.constant 0 : i32
    return %c0_i32, %c0_i32_0 : i32, i32
  }
  func.func @transform_7(%arg0: i32, %arg1: memref<1xi32, #tpu.memory_space<smem>>) -> (i32, i32) {
    %c0_i32 = arith.constant 0 : i32
    %c0_i32_0 = arith.constant 0 : i32
    %c0_i32_1 = arith.constant 0 : i32
    return %c0_i32, %c0_i32_0 : i32, i32
  }
  func.func @transform_8(%arg0: i32, %arg1: memref<1xi32, #tpu.memory_space<smem>>) -> (i32, i32) {
    %c0_i32 = arith.constant 0 : i32
    %c0_i32_0 = arith.constant 0 : i32
    %c0_i32_1 = arith.constant 0 : i32
    return %c0_i32, %c0_i32_0 : i32, i32
  }
  func.func @transform_9(%arg0: i32, %arg1: memref<1xi32, #tpu.memory_space<smem>>) -> (i32, i32) {
    %c0_i32 = arith.constant 0 : i32
    %c0_i32_0 = arith.constant 0 : i32
    %c0_i32_1 = arith.constant 0 : i32
    return %c0_i32, %c0_i32_0 : i32, i32
  }
  func.func @transform_10(%arg0: i32, %arg1: memref<1xi32, #tpu.memory_space<smem>>) -> (i32, i32) {
    %c0_i32 = arith.constant 0 : i32
    %c0_i32_0 = arith.constant 0 : i32
    %c0_i32_1 = arith.constant 0 : i32
    return %c0_i32, %c0_i32_0 : i32, i32
  }
  func.func @transform_11(%arg0: i32, %arg1: memref<1xi32, #tpu.memory_space<smem>>) -> (i32, i32) {
    %c0_i32 = arith.constant 0 : i32
    %c0_i32_0 = arith.constant 0 : i32
    %c0_i32_1 = arith.constant 0 : i32
    return %c0_i32, %c0_i32_0 : i32, i32
  }
  func.func @transform_12(%arg0: i32, %arg1: memref<1xi32, #tpu.memory_space<smem>>) -> (i32, i32) {
    %c0_i32 = arith.constant 0 : i32
    %c0_i32_0 = arith.constant 0 : i32
    %c0_i32_1 = arith.constant 0 : i32
    return %c0_i32, %c0_i32_0 : i32, i32
  }
  func.func @transform_13(%arg0: i32, %arg1: memref<1xi32, #tpu.memory_space<smem>>) -> (i32, i32) {
    %c0_i32 = arith.constant 0 : i32
    %c0_i32_0 = arith.constant 0 : i32
    %c0_i32_1 = arith.constant 0 : i32
    return %c0_i32, %c0_i32_0 : i32, i32
  }
  func.func @transform_14(%arg0: i32, %arg1: memref<1xi32, #tpu.memory_space<smem>>) -> (i32, i32) {
    %c0_i32 = arith.constant 0 : i32
    %c0_i32_0 = arith.constant 0 : i32
    %c0_i32_1 = arith.constant 0 : i32
    return %c0_i32, %c0_i32_0 : i32, i32
  }
  func.func @transform_15(%arg0: i32, %arg1: memref<1xi32, #tpu.memory_space<smem>>) -> (i32, i32) {
    %c0_i32 = arith.constant 0 : i32
    %c0_i32_0 = arith.constant 0 : i32
    %c0_i32_1 = arith.constant 0 : i32
    return %c0_i32, %c0_i32_0 : i32, i32
  }
  func.func @transform_16(%arg0: i32, %arg1: memref<1xi32, #tpu.memory_space<smem>>) -> (i32, i32) {
    %c0_i32 = arith.constant 0 : i32
    %c0_i32_0 = arith.constant 0 : i32
    %c0_i32_1 = arith.constant 0 : i32
    return %c0_i32, %c0_i32_0 : i32, i32
  }
  func.func @transform_17(%arg0: i32, %arg1: memref<1xi32, #tpu.memory_space<smem>>) -> (i32, i32) {
    %c0_i32 = arith.constant 0 : i32
    %c0_i32_0 = arith.constant 0 : i32
    %c0_i32_1 = arith.constant 0 : i32
    return %c0_i32, %c0_i32_0 : i32, i32
  }
  func.func @transform_18(%arg0: i32, %arg1: memref<1xi32, #tpu.memory_space<smem>>) -> (i32, i32) {
    %c0_i32 = arith.constant 0 : i32
    %c0_i32_0 = arith.constant 0 : i32
    %c0_i32_1 = arith.constant 0 : i32
    return %c0_i32, %c0_i32_0 : i32, i32
  }
  func.func @transform_19(%arg0: i32, %arg1: memref<1xi32, #tpu.memory_space<smem>>) -> (i32, i32) {
    %c0_i32 = arith.constant 0 : i32
    %c0_i32_0 = arith.constant 0 : i32
    %c0_i32_1 = arith.constant 0 : i32
    return %c0_i32, %c0_i32_0 : i32, i32
  }
  func.func @transform_20(%arg0: i32, %arg1: memref<1xi32, #tpu.memory_space<smem>>) -> (i32, i32) {
    %c0_i32 = arith.constant 0 : i32
    %c0_i32_0 = arith.constant 0 : i32
    return %c0_i32, %arg0 : i32, i32
  }
}

</mosaic_0001>

<bundles_post_ra>
// kernel: _resin_forward_impl.2
= control target key start
LH: loop header
LB: loop body
LE: loop exit
PB: predicated region body
PF: predicated region fallthrough
CT: control target
= control target key end

     0   :  { %v76_v0 = vlaneseq  ;;  %v8170_v16 = vmov 0  ;;  %v7951_v17 = vmov 1.0|1.0   ;;  %v8173_v18 = vmov 0  ;;  %s7902_s0 = inlined_call_operand.<no memory space> [shape: s32[1], index: 0, kind: input, shape index: {}]   ;;  %s7903_s1 = inlined_call_operand.vmem [shape: s32[1,1024], index: 1, kind: input, shape index: {}]   ;;  %s7904_s4 = inlined_call_operand.vmem [shape: f32[6,256], index: 4, kind: input, shape index: {}]   ;;  %s7905_s6 = inlined_call_operand.vmem [shape: bf16[40,6], index: 6, kind: input, shape index: {}]   ;;  %s7906_s2 = inlined_call_operand.vmem [shape: bf16[6,1024], index: 2, kind: input, shape index: {}]   ;;  %s7907_s5 = inlined_call_operand.vmem [shape: bf16[40,6], index: 5, kind: input, shape index: {}]   ;;  %s7908_s7 = inlined_call_operand.vmem [shape: bf16[40,4], index: 7, kind: input, shape index: {}]   ;;  %s7909_s3 = inlined_call_operand.vmem [shape: f32[4,1024], index: 3, kind: input, shape index: {}]   ;;  %s7910_s8 = inlined_call_operand.vmem [shape: f32[40,1], index: 8, kind: input, shape index: {}]   ;;  %s7911_s10 = inlined_call_operand.vmem [shape: f32[40,1], index: 10, kind: input, shape index: {}]   ;;  %s7912_s12 = inlined_call_operand.vmem [shape: f32[4,1], index: 12, kind: input, shape index: {}]   ;;  %s7913_s15 = inlined_call_operand.vmem [shape: f32[40,1], index: 15, kind: input, shape index: {}]   ;;  %s7914_s17 = inlined_call_operand.vmem [shape: f32[40,1], index: 17, kind: input, shape index: {}]   ;;  %s7915_s19 = inlined_call_operand.vmem [shape: f32[6,1], index: 19, kind: input, shape index: {}]   ;;  %s7916_s9 = inlined_call_operand.vmem [shape: bf16[40,40], index: 9, kind: input, shape index: {}]   ;;  %s7917_s11 = inlined_call_operand.vmem [shape: bf16[4,40], index: 11, kind: input, shape index: {}]   ;;  %s7918_s21 = inlined_call_operand.vmem [shape: f32[4,1024], index: 21, kind: output, shape index: {1}]   ;;  %s7919_s14 = inlined_call_operand.vmem [shape: bf16[40,4], index: 14, kind: input, shape index: {}]   ;;  %s7920_s13 = inlined_call_operand.vmem [shape: bf16[40,6], index: 13, kind: input, shape index: {}]   ;;  %s7921_s16 = inlined_call_operand.vmem [shape: bf16[40,40], index: 16, kind: input, shape index: {}]   ;;  %s7922_s18 = inlined_call_operand.vmem [shape: bf16[6,40], index: 18, kind: input, shape index: {}]   ;;  %s7923_s20 = inlined_call_operand.vmem [shape: f32[6,256], index: 20, kind: output, shape index: {0}]  }
   0x1   :  { %8162 = sst [smem:[#allocation105_spill]] %s7902_s0  ;;  %v8176_v19 = vmov 0  ;;  %v8179_v22 = vmov 0  ;;  %v8182_v23 = vmov 0  ;;  %v8185_v27 = vmov 0 }
   0x2   :  { %8163 = sst [smem:[#allocation106_spill]] %s7903_s1  ;;  %s8169_s28 = sld [smem:[#allocation105_spill]]  ;;  %v4749_v4 = vshrl.u32 %v76_v0, 7  ;;  %v8188_v30 = vmov 0  ;;  %v8191_v33 = vmov 0  ;;  %v8194_v35 = vmov 0 }
   0x3   :  { %8164 = sst [smem:[#allocation107_spill]] %s7904_s4  ;;  %s8168_s26 = sld [smem:[#allocation106_spill]]  ;;  %v8197_v36 = vmov 0  ;;  %v8200_v37 = vmov 0  ;;  %v8203_v40 = vmov 0  ;;  %v8206_v41 = vmov 0 }
   0x4   :  { %8165 = sst [smem:[#allocation108_spill]] %s7905_s6  ;;  %v4752_v5 = vadd.s32 8, %v4749_v4  ;;  %v115_v6 = vsub.s32 1, %v4749_v4  ;;  %v111_v7 = vsub.s32 0, %v4749_v4  ;;  %v4757_v8 = vadd.s32 16, %v4749_v4  ;;  %s8247_s24 = sld [smem:[#allocation107_spill]] }
   0x5   :  { %8166 = sst [smem:[#allocation109_spill]] %s7906_s2  ;;  %v4760_v9 = vadd.s32 24, %v4749_v4  ;;  %v4769_v12 = vadd.s32 32, %v4749_v4  ;;  %v4772_v13 = vadd.s32 40, %v4749_v4  ;;  %v4775_v14 = vadd.s32 48, %v4749_v4  ;;  %s8533_s0 = sld [smem:[#allocation108_spill]] }
   0x6   :  { %8167 = sst [smem:[#allocation110_spill]] %s7907_s5  ;;  %v4778_v15 = vadd.s32 56, %v4749_v4  ;;  %v4819_v20 = vadd.s32 64, %v4749_v4  ;;  %v4822_v21 = vadd.s32 72, %v4749_v4  ;;  %v4844_v24 = vadd.s32 80, %v4749_v4  ;;  %s8478_s27 = sld [smem:[#allocation109_spill]] }
   0x7   :  { %v4847_v25 = vadd.s32 88, %v4749_v4  ;;  %v131_v26 = vsub.s32 5, %v4749_v4  ;;  %v4866_v28 = vadd.s32 96, %v4749_v4  ;;  %v127_v29 = vsub.s32 4, %v4749_v4  ;;  %s8769_s30 = sld [smem:[#allocation110_spill]] }
   0x8   :  { %v74_v2 = vstv %s8169_s28  ;;  %v4881_v31 = vadd.s32 104, %v4749_v4  ;;  %v4931_v38 = vadd.s32 112, %v4749_v4  ;;  %v4934_v39 = vadd.s32 120, %v4749_v4  ;;  %s1037_s2 = sshra.s32 %s8169_s28, 7 }
   0x9   :  { %v73_v1 = vld [vmem:[%s8168_s26] sm:$0xff]  ;;  %v8209_v42 = vmov 0  ;;  %v8212_v43 = vmov 0  ;;  %v4978_v44 = vadd.s32 128, %v4749_v4  ;;  %v4981_v45 = vadd.s32 136, %v4749_v4  ;;  %s3874_s22 = sshll.u32 %s1037_s2, 3 }
   0xa   :  { %v4747_v3 = vsub.s32 %v73_v1, %v74_v2  ;;  %v8215_v46 = vmov 0  ;;  %v8218_v47 = vmov 0  ;;  %v8221_v48 = vmov 0  ;;  %s5136_s4 = scalar_lea.vmem %s8247_s24, %s3874_s22  ;;  %s4479_s25 = sshll.u32 %s1037_s2, 2 }
   0xb   :  { %v8224_v49 = vmov 0  ;;  %v5028_v50 = vadd.s32 144, %v4749_v4  ;;  %v5031_v51 = vadd.s32 152, %v4749_v4  ;;  %v8227_v52 = vmov 0  ;;  %s3134_s26 = scalar_lea.vmem [#allocation2], %s4479_s25 }
   0xc   :  { %v4763_v10 = vrot.slane %v4747_v3, %v115_v6  ;;  %v4766_v11 = vrot.slane %v4747_v3, %v111_v7  ;;  %v4884_v32 = vrot.slane %v4747_v3, %v131_v26  ;;  %v4898_v34 = vrot.slane %v4747_v3, %v127_v29  ;;  %v1042_v6 = vld [vmem:[%s5136_s4 + $0x8] sm:$0x3f] }
   0xd   :  { %v8230_v53 = vmov 0  ;;  %v5056_v54 = vadd.s32 160, %v4749_v4  ;;  %v8233_v55 = vmov 0  ;;  %v8236_v56 = vmov 0 }
   0xe   :  { %vm142_vm0 = vcmp.eq.s32.totalorder %v4763_v10, %v4749_v4  ;;  %vm150_vm1 = vcmp.eq.s32.totalorder %v4763_v10, %v4752_v5  ;;  %vm141_vm2 = vcmp.eq.s32.totalorder %v4766_v11, %v4749_v4  ;;  %vm149_vm3 = vcmp.eq.s32.totalorder %v4766_v11, %v4752_v5 }
   0xf   :  { %vm4788_vm4 = vmpackc.low %vm150_vm1, %vm142_vm0  ;;  %vm158_vm5 = vcmp.eq.s32.totalorder %v4763_v10, %v4757_v8  ;;  %vm166_vm6 = vcmp.eq.s32.totalorder %v4763_v10, %v4760_v9  ;;  %vm157_vm7 = vcmp.eq.s32.totalorder %v4766_v11, %v4757_v8  ;;  %vm165_vm8 = vcmp.eq.s32.totalorder %v4766_v11, %v4760_v9 }
  0x10   :  { %v8171_v16 = vsel %vm4788_vm4, 4294967295, %v8170_v16  ;;  %3876 = vmatprep.subr.msk.bf16.mxu1 %vm4788_vm4, %v7951_v17  ;;  %vm4803_vm9 = vmpackc.low %vm149_vm3, %vm141_vm2  ;;  %vm174_vm10 = vcmp.eq.s32.totalorder %v4763_v10, %v4769_v12  ;;  %vm182_vm11 = vcmp.eq.s32.totalorder %v4763_v10, %v4772_v13  ;;  %vm173_vm14 = vcmp.eq.s32.totalorder %v4766_v11, %v4769_v12 }
  0x11   :  { %8172 = vst [vmem:[#allocation5_spill] sm:$0xff] %v8171_v16  ;;  %v8174_v18 = vsel %vm4803_vm9, 4294967295, %v8173_v18  ;;  %3878 = vmatpush1.bf16.msk.msra.mxu1 %vm4803_vm9, %v7951_v17  ;;  %vm4814_vm12 = vmpackc.low %vm166_vm6, %vm158_vm5  ;;  %vm181_vm15 = vcmp.eq.s32.totalorder %v4766_v11, %v4772_v13  ;;  %vm190_vm1 = vcmp.eq.s32.totalorder %v4763_v10, %v4775_v14  ;;  %vm198_vm2 = vcmp.eq.s32.totalorder %v4763_v10, %v4778_v15 }
  0x12   :  { %8175 = vst [vmem:[#allocation6_spill] sm:$0xff] %v8174_v18  ;;  %v8177_v19 = vsel %vm4814_vm12, 4294967295, %v8176_v19  ;;  %3880 = vmatprep.subr.msk.bf16.mxu1 %vm4814_vm12, %v7951_v17  ;;  %vm4827_vm13 = vmpackc.low %vm165_vm8, %vm157_vm7  ;;  %vm189_vm3 = vcmp.eq.s32.totalorder %v4766_v11, %v4775_v14  ;;  %vm197_vm5 = vcmp.eq.s32.totalorder %v4766_v11, %v4778_v15  ;;  %vm206_vm7 = vcmp.eq.s32.totalorder %v4763_v10, %v4819_v20 }
  0x13   :  { %8178 = vst [vmem:[#allocation7_spill] sm:$0xff] %v8177_v19  ;;  %v8180_v22 = vsel %vm4827_vm13, 4294967295, %v8179_v22  ;;  %vm4835_vm0 = vmpackc.low %vm182_vm11, %vm174_vm10  ;;  %vm214_vm8 = vcmp.eq.s32.totalorder %v4763_v10, %v4822_v21  ;;  %vm205_vm11 = vcmp.eq.s32.totalorder %v4766_v11, %v4819_v20  ;;  %vm237_vm9 = vcmp.eq.s32.totalorder %v4766_v11, %v4866_v28 }
  0x14   :  { %8181 = vst [vmem:[#allocation8_spill] sm:$0xff] %v8180_v22  ;;  %v8183_v23 = vsel %vm4835_vm0, 4294967295, %v8182_v23  ;;  %vm4857_vm6 = vmpackc.low %vm181_vm15, %vm173_vm14  ;;  %vm213_vm14 = vcmp.eq.s32.totalorder %v4766_v11, %v4822_v21  ;;  %vm245_vm4 = vcmp.eq.s32.totalorder %v4766_v11, %v4881_v31  ;;  %v5090_v57 = vadd.s32 168, %v4749_v4  ;;  %v6318_v22 = vld [vmem:[%s8533_s0] sm:$0xff]  }
  0x15   :  { %8184 = vst [vmem:[#allocation9_spill] sm:$0xff] %v8183_v23  ;;  %3882 = vmatpush1.bf16.msk.msra.mxu1 %vm4827_vm13, %v7951_v17  ;;  %v8186_v27 = vsel %vm4857_vm6, 4294967295, %v8185_v27  ;;  %vm4872_vm10 = vmpackc.low %vm198_vm2, %vm190_vm1  ;;  %vm222_vm1 = vcmp.eq.s32.totalorder %v4763_v10, %v4844_v24  ;;  %vm230_vm2 = vcmp.eq.s32.totalorder %v4763_v10, %v4847_v25  ;;  %vm221_vm13 = vcmp.eq.s32.totalorder %v4766_v11, %v4844_v24 }
  0x16   :  { %8187 = vst [vmem:[#allocation10_spill] sm:$0xff] %v8186_v27  ;;  %3884 = vmatprep.subr.msk.bf16.mxu1 %vm4835_vm0, %v7951_v17  ;;  %v8189_v30 = vsel %vm4872_vm10, 4294967295, %v8188_v30  ;;  %vm4889_vm15 = vmpackc.low %vm197_vm5, %vm189_vm3  ;;  %vm229_vm3 = vcmp.eq.s32.totalorder %v4766_v11, %v4847_v25  ;;  %v8239_v58 = vmov 0  ;;  %v5112_v59 = vadd.s32 176, %v4749_v4 }
  0x17   :  { %8190 = vst [vmem:[#allocation11_spill] sm:$0xff] %v8189_v30  ;;  %v8192_v33 = vsel %vm4889_vm15, 4294967295, %v8191_v33  ;;  %vm4900_vm0 = vmpackc.low %vm214_vm8, %vm206_vm7  ;;  %vm146_vm7 = vcmp.eq.s32.totalorder %v4884_v32, %v4749_v4  ;;  %vm154_vm8 = vcmp.eq.s32.totalorder %v4884_v32, %v4752_v5  ;;  %v8244_v60 = vmov 0 }
  0x18   :  { %8193 = vst [vmem:[#allocation12_spill] sm:$0xff] %v8192_v33  ;;  %v8195_v35 = vsel %vm4900_vm0, 4294967295, %v8194_v35  ;;  %vm4911_vm5 = vmpackc.low %vm213_vm14, %vm205_vm11  ;;  %vm238_vm11 = vcmp.eq.s32.totalorder %v4763_v10, %v4866_v28  ;;  %vm246_vm14 = vcmp.eq.s32.totalorder %v4763_v10, %v4881_v31  ;;  %v5131_v61 = vadd.s32 184, %v4749_v4 }
  0x19   :  { %8196 = vst [vmem:[#allocation13_spill] sm:$0xff] %v8195_v35  ;;  %3886 = vmatpush1.bf16.msk.msra.mxu1 %vm4857_vm6, %v7951_v17  ;;  %v8198_v36 = vsel %vm4911_vm5, 4294967295, %v8197_v36  ;;  %vm4922_vm12 = vmpackc.low %vm230_vm2, %vm222_vm1  ;;  %vm145_vm1 = vcmp.eq.s32.totalorder %v4898_v34, %v4749_v4  ;;  %vm153_vm2 = vcmp.eq.s32.totalorder %v4898_v34, %v4752_v5  ;;  %v8250_v62 = vmov 0 }
  0x1a   :  { %8199 = vst [vmem:[#allocation14_spill] sm:$0xff] %v8198_v36  ;;  %3888 = vmatprep.subr.msk.bf16.mxu1 %vm4872_vm10, %v7951_v17  ;;  %v8201_v37 = vsel %vm4922_vm12, 4294967295, %v8200_v37  ;;  %vm4936_vm6 = vmpackc.low %vm229_vm3, %vm221_vm13  ;;  %vm162_vm3 = vcmp.eq.s32.totalorder %v4884_v32, %v4757_v8  ;;  %v8255_v63 = vmov 0  ;;  %v5180_v0 = vadd.s32 192, %v4749_v4 }
  0x1b   :  { %8202 = vst [vmem:[#allocation15_spill] sm:$0xff] %v8201_v37  ;;  %v8204_v40 = vsel %vm4936_vm6, 4294967295, %v8203_v40  ;;  %vm4944_vm10 = vmpackc.low %vm154_vm8, %vm146_vm7  ;;  %vm170_vm7 = vcmp.eq.s32.totalorder %v4884_v32, %v4760_v9  ;;  %v8260_v1 = vmov 0  ;;  %v5202_v2 = vadd.s32 200, %v4749_v4 }
  0x1c   :  { %8205 = vst [vmem:[#allocation16_spill] sm:$0xff] %v8204_v40  ;;  %v8207_v41 = vsel %vm4944_vm10, 4294967295, %v8206_v41  ;;  %vm4955_vm13 = vmpackc.low %vm246_vm14, %vm238_vm11  ;;  %4004 = vmatprep.subr.msk.bf16.mxu0 %vm4944_vm10, %v7951_v17  ;;  %vm254_vm11 = vcmp.eq.s32.totalorder %v4763_v10, %v4931_v38  ;;  %vm262_vm14 = vcmp.eq.s32.totalorder %v4763_v10, %v4934_v39  ;;  %v8265_v7 = vmov 0 }
  0x1d   :  { %8208 = vst [vmem:[#allocation17_spill] sm:$0xff] %v8207_v41  ;;  %3890 = vmatpush1.bf16.msk.msra.mxu1 %vm4889_vm15, %v7951_v17  ;;  %v8210_v42 = vsel %vm4955_vm13, 4294967295, %v8209_v42  ;;  %vm4969_vm8 = vmpackc.low %vm153_vm2, %vm145_vm1  ;;  %vm161_vm1 = vcmp.eq.s32.totalorder %v4898_v34, %v4757_v8  ;;  %vm169_vm2 = vcmp.eq.s32.totalorder %v4898_v34, %v4760_v9  ;;  %v5222_v26 = vadd.s32 208, %v4749_v4 }
  0x1e   :  { %8211 = vst [vmem:[#allocation18_spill] sm:$0xff] %v8210_v42  ;;  %3892 = vmatprep.subr.msk.bf16.mxu1 %vm4900_vm0, %v7951_v17  ;;  %v8213_v43 = vsel %vm4969_vm8, 4294967295, %v8212_v43  ;;  %vm4983_vm15 = vmpackc.low %vm245_vm4, %vm237_vm9  ;;  %4006 = vmatpush1.bf16.msk.msra.mxu0 %vm4969_vm8, %v7951_v17  ;;  %vm253_vm4 = vcmp.eq.s32.totalorder %v4766_v11, %v4931_v38  ;;  %vm261_vm9 = vcmp.eq.s32.totalorder %v4766_v11, %v4934_v39  ;;  %v8270_v29 = vmov 0 }
  0x1f   :  { %8214 = vst [vmem:[#allocation19_spill] sm:$0xff] %v8213_v43  ;;  %v8216_v46 = vsel %vm4983_vm15, 4294967295, %v8215_v46  ;;  %vm4994_vm0 = vmpackc.low %vm170_vm7, %vm162_vm3  ;;  %vm178_vm3 = vcmp.eq.s32.totalorder %v4884_v32, %v4769_v12  ;;  %vm186_vm7 = vcmp.eq.s32.totalorder %v4884_v32, %v4772_v13  ;;  %v8301_v43 = vmov 0 }
  0x20   :  { %8217 = vst [vmem:[#allocation20_spill] sm:$0xff] %v8216_v46  ;;  %v8219_v47 = vsel %vm4994_vm0, 4294967295, %v8218_v47  ;;  %vm5005_vm8 = vmpackc.low %vm262_vm14, %vm254_vm11  ;;  %4008 = vmatprep.subr.msk.bf16.mxu0 %vm4994_vm0, %v7951_v17  ;;  %vm270_vm11 = vcmp.eq.s32.totalorder %v4763_v10, %v4978_v44  ;;  %vm278_vm14 = vcmp.eq.s32.totalorder %v4763_v10, %v4981_v45  ;;  %vm185_vm0 = vcmp.eq.s32.totalorder %v4898_v34, %v4772_v13 }
  0x21   :  { %8220 = vst [vmem:[#allocation21_spill] sm:$0xff] %v8219_v47  ;;  %3894 = vmatpush1.bf16.msk.msra.mxu1 %vm4911_vm5, %v7951_v17  ;;  %v8222_v48 = vsel %vm5005_vm8, 4294967295, %v8221_v48  ;;  %vm5019_vm10 = vmpackc.low %vm169_vm2, %vm161_vm1  ;;  %vm177_vm2 = vcmp.eq.s32.totalorder %v4898_v34, %v4769_v12  ;;  %v5351_v47 = vadd.s32 232, %v4749_v4  ;;  %v8460_v42 = vmov 0 }
  0x22   :  { %8223 = vst [vmem:[#allocation22_spill] sm:$0xff] %v8222_v48  ;;  %3896 = vmatprep.subr.msk.bf16.mxu1 %vm4922_vm12, %v7951_v17  ;;  %v8225_v49 = vsel %vm5019_vm10, 4294967295, %v8224_v49  ;;  %vm5036_vm1 = vmpackc.low %vm261_vm9, %vm253_vm4  ;;  %4010 = vmatpush1.bf16.msk.msra.mxu0 %vm5019_vm10, %v7951_v17  ;;  %vm269_vm4 = vcmp.eq.s32.totalorder %v4766_v11, %v4978_v44  ;;  %vm277_vm9 = vcmp.eq.s32.totalorder %v4766_v11, %v4981_v45  ;;  %v8331_v48 = vmov 0 }
  0x23   :  { %8226 = vst [vmem:[#allocation23_spill] sm:$0xff] %v8225_v49  ;;  %v8228_v52 = vsel %vm5036_vm1, 4294967295, %v8227_v52  ;;  %vm5047_vm12 = vmpackc.low %vm186_vm7, %vm178_vm3  ;;  %vm8278_vm3 = vcmp.eq.s32.totalorder %v4766_v11, %v5056_v54  ;;  %v8041_v40 = vmov 0   ;;  %v8470_v37 = vmov 0 }
  0x24   :  { %8229 = vst [vmem:[#allocation24_spill] sm:$0xff] %v8228_v52  ;;  %v8231_v53 = vsel %vm5047_vm12, 4294967295, %v8230_v53  ;;  %vm5061_vm10 = vmpackc.low %vm278_vm14, %vm270_vm11  ;;  %4012 = vmatprep.subr.msk.bf16.mxu0 %vm5047_vm12, %v7951_v17  ;;  %vm8258_vm12 = vcmp.eq.s32.totalorder %v4766_v11, %v5028_v50  ;;  %v1041_v52 = vld [vmem:[%s5136_s4] sm:$0x3f]  ;;  %4588 = vset.pattern.permute.xlu0 %v8041_v40  ;;  %v8475_v40 = vmov 0  ;;  %v8481_v36 = vmov 0 }
  0x25   :  { %8232 = vst [vmem:[#allocation25_spill] sm:$0xff] %v8231_v53  ;;  %3898 = vmatpush1.bf16.msk.msra.mxu1 %vm4936_vm6, %v7951_v17  ;;  %v8234_v55 = vsel %vm5061_vm10, 4294967295, %v8233_v55  ;;  %vm5079_vm11 = vmpackc.low %vm185_vm0, %vm177_vm2  ;;  %v8291_v53 = vmov 0  ;;  %v8489_v35 = vmov 0   ;;  %v8512_v30 = vmov 0 }
  0x26   :  { %8235 = vst [vmem:[#allocation26_spill] sm:$0xff] %v8234_v55  ;;  %3900 = vmatprep.subr.msk.bf16.mxu1 %vm4955_vm13, %v7951_v17  ;;  %v8237_v56 = vsel %vm5079_vm11, 4294967295, %v8236_v56  ;;  %vm5098_vm0 = vmpackc.low %vm277_vm9, %vm269_vm4  ;;  %4014 = vmatpush1.bf16.msk.msra.mxu0 %vm5079_vm11, %v7951_v17  ;;  %vm8242_vm4 = vcmp.eq.s32.totalorder %v4884_v32, %v4775_v14  ;;  %vm8243_vm9 = vcmp.eq.s32.totalorder %v4884_v32, %v4778_v15  ;;  %v123_v55 = vsub.s32 3, %v4749_v4 }
  0x27   :  { %8238 = vst [vmem:[#allocation27_spill] sm:$0xff] %v8237_v56  ;;  %v8240_v58 = vsel %vm5098_vm0, 4294967295, %v8239_v58  ;;  %vm5120_vm14 = vmpackc.low %vm8243_vm9, %vm8242_vm4  ;;  %vm8248_vm4 = vcmp.eq.s32.totalorder %v4763_v10, %v5028_v50  ;;  %vm8249_vm9 = vcmp.eq.s32.totalorder %v4763_v10, %v5031_v51  ;;  %v8283_v56 = vmov 1.0|1.0   ;;  %4589 = vset.pattern.permute.xlu1 %v8489_v35 }
  0x28   :  { %8241 = vst [vmem:[#allocation28_spill] sm:$0xff] %v8240_v58  ;;  %v8245_v60 = vsel %vm5120_vm14, 4294967295, %v8244_v60  ;;  %vm5147_vm2 = vmpackc.low %vm8249_vm9, %vm8248_vm4  ;;  %4016 = vmatprep.subr.msk.bf16.mxu0 %vm5120_vm14, %v7951_v17  ;;  %vm8253_vm4 = vcmp.eq.s32.totalorder %v4898_v34, %v4775_v14  ;;  %vm8254_vm9 = vcmp.eq.s32.totalorder %v4898_v34, %v4778_v15  ;;  %v8311_v58 = vmov 0 }
  0x29   :  { %8246 = vst [vmem:[#allocation29_spill] sm:$0xff] %v8245_v60  ;;  %3902 = vmatpush1.bf16.msk.msra.mxu1 %vm4983_vm15, %v7951_v17  ;;  %v8251_v62 = vsel %vm5147_vm2, 4294967295, %v8250_v62  ;;  %vm5169_vm14 = vmpackc.low %vm8254_vm9, %vm8253_vm4  ;;  %vm8259_vm4 = vcmp.eq.s32.totalorder %v4766_v11, %v5031_v51  ;;  %v8280_v60 = vmov 0  ;;  %v5536_v46 = vrot.slane %v4747_v3, %v123_v55 }
  0x2a   :  { %8252 = vst [vmem:[#allocation30_spill] sm:$0xff] %v8251_v62  ;;  %3904 = vmatprep.subr.msk.bf16.mxu1 %vm5005_vm8, %v7951_v17  ;;  %v8256_v63 = vsel %vm5169_vm14, 4294967295, %v8255_v63  ;;  %vm5188_vm9 = vmpackc.low %vm8259_vm4, %vm8258_vm12  ;;  %4018 = vmatpush1.bf16.msk.msra.mxu0 %vm5169_vm14, %v7951_v17  ;;  %vm8263_vm12 = vcmp.eq.s32.totalorder %v4884_v32, %v4819_v20  ;;  %vm8264_vm4 = vcmp.eq.s32.totalorder %v4884_v32, %v4822_v21  ;;  %v5387_v62 = vadd.s32 240, %v4749_v4 }
  0x2b   :  { %8257 = vst [vmem:[#allocation31_spill] sm:$0xff] %v8256_v63  ;;  %v8261_v1 = vsel %vm5188_vm9, 4294967295, %v8260_v1  ;;  %vm5211_vm14 = vmpackc.low %vm8264_vm4, %vm8263_vm12  ;;  %vm8268_vm12 = vcmp.eq.s32.totalorder %v4763_v10, %v5056_v54  ;;  %vm8269_vm4 = vcmp.eq.s32.totalorder %v4763_v10, %v5090_v57  ;;  %v5264_v63 = vadd.s32 216, %v4749_v4 }
  0x2c   :  { %8262 = vst [vmem:[#allocation32_spill] sm:$0xff] %v8261_v1  ;;  %v8266_v7 = vsel %vm5211_vm14, 4294967295, %v8265_v7  ;;  %vm5233_vm7 = vmpackc.low %vm8269_vm4, %vm8268_vm12  ;;  %4020 = vmatprep.subr.msk.bf16.mxu0 %vm5211_vm14, %v7951_v17  ;;  %vm8273_vm12 = vcmp.eq.s32.totalorder %v4898_v34, %v4819_v20  ;;  %vm8274_vm4 = vcmp.eq.s32.totalorder %v4898_v34, %v4822_v21  ;;  %v8321_v1 = vmov 0 }
  0x2d   :  { %8267 = vst [vmem:[#allocation33_spill] sm:$0xff] %v8266_v7  ;;  %3906 = vmatpush1.bf16.msk.msra.mxu1 %vm5036_vm1, %v7951_v17  ;;  %v8271_v29 = vsel %vm5233_vm7, 4294967295, %v8270_v29  ;;  %vm5255_vm14 = vmpackc.low %vm8274_vm4, %vm8273_vm12  ;;  %v8275_v7 = vmov 0  ;;  %vm8279_vm12 = vcmp.eq.s32.totalorder %v4766_v11, %v5090_v57  ;;  %v8356_v55 = vmov 0 }
  0x2e   :  { %8272 = vst [vmem:[#allocation34_spill] sm:$0xff] %v8271_v29  ;;  %3908 = vmatprep.subr.msk.bf16.mxu1 %vm5061_vm10, %v7951_v17  ;;  %v8276_v7 = vsel %vm5255_vm14, 4294967295, %v8275_v7  ;;  %v5266_v17 = vpack.c.bf16 %v1042_v6, %v1042_v6  ;;  %vm5274_vm4 = vmpackc.low %vm8279_vm12, %vm8278_vm3  ;;  %4022 = vmatpush1.bf16.msk.msra.mxu0 %vm5255_vm14, %v8283_v56  ;;  %v119_v6 = vsub.s32 2, %v4749_v4  ;;  %vm8284_vm3 = vcmp.eq.s32.totalorder %v4884_v32, %v4844_v24 }
  0x2f   :  { %8277 = vst [vmem:[#allocation35_spill] sm:$0xff] %v8276_v7  ;;  %v8281_v60 = vsel %vm5274_vm4, 4294967295, %v8280_v60  ;;  %vm8285_vm12 = vcmp.eq.s32.totalorder %v4884_v32, %v4847_v25  ;;  %v8286_v7 = vmov 0  ;;  %v5434_v29 = vadd.s32 248, %v4749_v4 }
  0x30   :  { %8282 = vst [vmem:[#allocation36_spill] sm:$0xff] %v8281_v60  ;;  %vm5294_vm8 = vmpackc.low %vm8285_vm12, %vm8284_vm3  ;;  %1077 = vmatprep.mubr.bf16.mxu1 %v5266_v17  ;;  %vm8289_vm3 = vcmp.eq.s32.totalorder %v4763_v10, %v5112_v59  ;;  %vm8290_vm12 = vcmp.eq.s32.totalorder %v4763_v10, %v5131_v61  ;;  %v5328_v49 = vrot.slane %v4747_v3, %v119_v6  ;;  %v5348_v6 = vadd.s32 224, %v4749_v4 }
  0x31   :  { %v8287_v7 = vsel %vm5294_vm8, 4294967295, %v8286_v7  ;;  %3910 = vmatpush1.bf16.msk.msra.mxu1 %vm5098_vm0, %v8283_v56  ;;  %vm5316_vm1 = vmpackc.low %vm8290_vm12, %vm8289_vm3  ;;  %4024 = vmatprep.subr.msk.bf16.mxu0 %vm5294_vm8, %v8283_v56  ;;  %vm8294_vm3 = vcmp.eq.s32.totalorder %v4898_v34, %v4844_v24  ;;  %vm8295_vm12 = vcmp.eq.s32.totalorder %v4898_v34, %v4847_v25  ;;  %vm8299_vm8 = vcmp.eq.s32.totalorder %v4766_v11, %v5112_v59 }
  0x32   :  { %8288 = vst [vmem:[#allocation37_spill] sm:$0xff] %v8287_v7  ;;  %v8292_v53 = vsel %vm5316_vm1, 4294967295, %v8291_v53  ;;  %3912 = vmatprep.subr.msk.bf16.mxu1 %vm5147_vm2, %v8283_v56  ;;  %vm5339_vm10 = vmpackc.low %vm8295_vm12, %vm8294_vm3  ;;  %v8296_v7 = vmov 0  ;;  %vm8300_vm3 = vcmp.eq.s32.totalorder %v4766_v11, %v5131_v61  ;;  %1159 = vmatprep.mubr.bf16.mxu0 %v5266_v17  ;;  %v5533_v60 = vpack.c.bf16 %v1041_v52, %v1041_v52 }
  0x33   :  { %8293 = vst [vmem:[#allocation38_spill] sm:$0xff] %v8292_v53  ;;  %v8297_v7 = vsel %vm5339_vm10, 4294967295, %v8296_v7  ;;  %vm5359_vm12 = vmpackc.low %vm8300_vm3, %vm8299_vm8  ;;  %4026 = vmatpush1.bf16.msk.msra.mxu0 %vm5339_vm10, %v8283_v56  ;;  %vm8304_vm8 = vcmp.eq.s32.totalorder %v4884_v32, %v4866_v28  ;;  %vm8305_vm3 = vcmp.eq.s32.totalorder %v4884_v32, %v4881_v31  ;;  %vm8319_vm10 = vcmp.eq.s32.totalorder %v4766_v11, %v5180_v0 }
  0x34   :  { %8298 = vst [vmem:[#allocation39_spill] sm:$0xff] %v8297_v7  ;;  %v8302_v43 = vsel %vm5359_vm12, 4294967295, %v8301_v43  ;;  %vm5380_vm15 = vmpackc.low %vm8305_vm3, %vm8304_vm8  ;;  %v8306_v7 = vmov 0  ;;  %vm8309_vm8 = vcmp.eq.s32.totalorder %v4763_v10, %v5180_v0  ;;  %vm8310_vm3 = vcmp.eq.s32.totalorder %v4763_v10, %v5202_v2 }
  0x35   :  { %8303 = vst [vmem:[#allocation40_spill] sm:$0xff] %v8302_v43  ;;  %v8307_v7 = vsel %vm5380_vm15, 4294967295, %v8306_v7  ;;  %3914 = vmatpush1.bf16.msk.msra.mxu1 %vm5188_vm9, %v8283_v56  ;;  %vm5403_vm11 = vmpackc.low %vm8310_vm3, %vm8309_vm8  ;;  %4028 = vmatprep.subr.msk.bf16.mxu0 %vm5380_vm15, %v8283_v56  ;;  %vm8314_vm8 = vcmp.eq.s32.totalorder %v4898_v34, %v4866_v28  ;;  %vm8315_vm3 = vcmp.eq.s32.totalorder %v4898_v34, %v4881_v31  ;;  %v8341_v53 = vmov 0 }
  0x36   :  { %8308 = vst [vmem:[#allocation41_spill] sm:$0xff] %v8307_v7  ;;  %v8312_v58 = vsel %vm5403_vm11, 4294967295, %v8311_v58  ;;  %3916 = vmatprep.subr.msk.bf16.mxu1 %vm5233_vm7, %v8283_v56  ;;  %vm5425_vm15 = vmpackc.low %vm8315_vm3, %vm8314_vm8  ;;  %v8316_v7 = vmov 0  ;;  %vm8320_vm8 = vcmp.eq.s32.totalorder %v4766_v11, %v5202_v2  ;;  %v8351_v52 = vmov 0 }
  0x37   :  { %8313 = vst [vmem:[#allocation42_spill] sm:$0xff] %v8312_v58  ;;  %v8317_v7 = vsel %vm5425_vm15, 4294967295, %v8316_v7  ;;  %vm5444_vm3 = vmpackc.low %vm8320_vm8, %vm8319_vm10  ;;  %4030 = vmatpush1.bf16.msk.msra.mxu0 %vm5425_vm15, %v8283_v56  ;;  %vm8324_vm10 = vcmp.eq.s32.totalorder %v4884_v32, %v4931_v38  ;;  %vm8325_vm8 = vcmp.eq.s32.totalorder %v4884_v32, %v4934_v39  ;;  %vm8365_vm2 = vcmp.eq.s32.totalorder %v4884_v32, %v5031_v51 }
  0x38   :  { %8318 = vst [vmem:[#allocation43_spill] sm:$0xff] %v8317_v7  ;;  %v8322_v1 = vsel %vm5444_vm3, 4294967295, %v8321_v1  ;;  %vm5464_vm7 = vmpackc.low %vm8325_vm8, %vm8324_vm10  ;;  %v8326_v7 = vmov 0  ;;  %vm8329_vm10 = vcmp.eq.s32.totalorder %v4763_v10, %v5222_v26  ;;  %vm8330_vm8 = vcmp.eq.s32.totalorder %v4763_v10, %v5264_v63 }
  0x39   :  { %8323 = vst [vmem:[#allocation44_spill] sm:$0xff] %v8322_v1  ;;  %v8327_v7 = vsel %vm5464_vm7, 4294967295, %v8326_v7  ;;  %3918 = vmatpush1.bf16.msk.msra.mxu1 %vm5274_vm4, %v8283_v56  ;;  %vm5486_vm14 = vmpackc.low %vm8330_vm8, %vm8329_vm10  ;;  %4032 = vmatprep.subr.msk.bf16.mxu0 %vm5464_vm7, %v8283_v56  ;;  %vm8334_vm10 = vcmp.eq.s32.totalorder %v4898_v34, %v4931_v38  ;;  %vm8335_vm8 = vcmp.eq.s32.totalorder %v4898_v34, %v4934_v39  ;;  %v8371_v58 = vmov 0 }
  0x3a   :  { %8328 = vst [vmem:[#allocation45_spill] sm:$0xff] %v8327_v7  ;;  %v8332_v48 = vsel %vm5486_vm14, 4294967295, %v8331_v48  ;;  %3920 = vmatprep.subr.msk.bf16.mxu1 %vm5316_vm1, %v8283_v56  ;;  %vm5508_vm7 = vmpackc.low %vm8335_vm8, %vm8334_vm10  ;;  %v8336_v7 = vmov 0  ;;  %vm8339_vm4 = vcmp.eq.s32.totalorder %v4766_v11, %v5222_v26  ;;  %vm8340_vm10 = vcmp.eq.s32.totalorder %v4766_v11, %v5264_v63 }
  0x3b   :  { %8333 = vst [vmem:[#allocation46_spill] sm:$0xff] %v8332_v48  ;;  %v8337_v7 = vsel %vm5508_vm7, 4294967295, %v8336_v7  ;;  %vm5526_vm8 = vmpackc.low %vm8340_vm10, %vm8339_vm4  ;;  %4034 = vmatpush1.bf16.msk.msra.mxu0 %vm5508_vm7, %v8283_v56  ;;  %vm8344_vm4 = vcmp.eq.s32.totalorder %v4884_v32, %v4978_v44  ;;  %vm8345_vm10 = vcmp.eq.s32.totalorder %v4884_v32, %v4981_v45  ;;  %v139_v1 = vsub.s32 7, %v4749_v4 }
  0x3c   :  { %8338 = vst [vmem:[#allocation47_spill] sm:$0xff] %v8337_v7  ;;  %v8342_v53 = vsel %vm5526_vm8, 4294967295, %v8341_v53  ;;  %vm5548_vm15 = vmpackc.low %vm8345_vm10, %vm8344_vm4  ;;  %v8346_v7 = vmov 0  ;;  %vm8349_vm4 = vcmp.eq.s32.totalorder %v4763_v10, %v5348_v6  ;;  %vm8350_vm10 = vcmp.eq.s32.totalorder %v4763_v10, %v5351_v47 }
  0x3d   :  { %8343 = vst [vmem:[#allocation48_spill] sm:$0xff] %v8342_v53  ;;  %v8347_v7 = vsel %vm5548_vm15, 4294967295, %v8346_v7  ;;  %3922 = vmatpush1.bf16.msk.msra.mxu1 %vm5359_vm12, %v8283_v56  ;;  %vm5569_vm0 = vmpackc.low %vm8350_vm10, %vm8349_vm4  ;;  %4036 = vmatprep.subr.msk.bf16.mxu0 %vm5548_vm15, %v8283_v56  ;;  %vm8354_vm4 = vcmp.eq.s32.totalorder %v4898_v34, %v4978_v44  ;;  %vm8355_vm10 = vcmp.eq.s32.totalorder %v4898_v34, %v4981_v45  ;;  %v8390_v48 = vmov 0 }
  0x3e   :  { %8348 = vst [vmem:[#allocation49_spill] sm:$0xff] %v8347_v7  ;;  %v8352_v52 = vsel %vm5569_vm0, 4294967295, %v8351_v52  ;;  %3924 = vmatprep.subr.msk.bf16.mxu1 %vm5403_vm11, %v8283_v56  ;;  %vm5591_vm15 = vmpackc.low %vm8355_vm10, %vm8354_vm4  ;;  %vm8359_vm12 = vcmp.eq.s32.totalorder %v4766_v11, %v5348_v6  ;;  %vm8360_vm4 = vcmp.eq.s32.totalorder %v4766_v11, %v5351_v47  ;;  %v8361_v7 = vmov 0 }
  0x3f   :  { %8353 = vst [vmem:[#allocation50_spill] sm:$0xff] %v8352_v52  ;;  %v8357_v55 = vsel %vm5591_vm15, 4294967295, %v8356_v55  ;;  %vm5609_vm10 = vmpackc.low %vm8360_vm4, %vm8359_vm12  ;;  %4038 = vmatpush1.bf16.msk.msra.mxu0 %vm5591_vm15, %v8283_v56  ;;  %vm8364_vm15 = vcmp.eq.s32.totalorder %v4884_v32, %v5028_v50  ;;  %vm8379_vm12 = vcmp.eq.s32.totalorder %v4898_v34, %v5028_v50  ;;  %vm8380_vm1 = vcmp.eq.s32.totalorder %v4898_v34, %v5031_v51 }
  0x40   :  { %8358 = vst [vmem:[#allocation51_spill] sm:$0xff] %v8357_v55  ;;  %v8362_v7 = vsel %vm5609_vm10, 4294967295, %v8361_v7  ;;  %vm5634_vm9 = vmpackc.low %vm8365_vm2, %vm8364_vm15  ;;  %v8366_v55 = vmov 0  ;;  %vm8369_vm15 = vcmp.eq.s32.totalorder %v4763_v10, %v5387_v62  ;;  %vm8370_vm2 = vcmp.eq.s32.totalorder %v4763_v10, %v5434_v29 }
  0x41   :  { %8363 = vst [vmem:[#allocation52_spill] sm:$0xff] %v8362_v7  ;;  %v8367_v55 = vsel %vm5634_vm9, 4294967295, %v8366_v55  ;;  %3926 = vmatpush1.bf16.msk.msra.mxu1 %vm5444_vm3, %v8283_v56  ;;  %vm5655_vm7 = vmpackc.low %vm8370_vm2, %vm8369_vm15  ;;  %4040 = vmatprep.subr.msk.bf16.mxu0 %vm5634_vm9, %v8283_v56  ;;  %vm8374_vm15 = vcmp.eq.s32.totalorder %v4766_v11, %v5387_v62  ;;  %vm8375_vm2 = vcmp.eq.s32.totalorder %v4766_v11, %v5434_v29  ;;  %v8376_v10 = vmov 0 }
  0x42   :  { %8368 = vst [vmem:[#allocation53_spill] sm:$0xff] %v8367_v55  ;;  %v8372_v58 = vsel %vm5655_vm7, 4294967295, %v8371_v58  ;;  %3928 = vmatprep.subr.msk.bf16.mxu1 %vm5486_vm14, %v8283_v56  ;;  %vm5678_vm11 = vmpackc.low %vm8375_vm2, %vm8374_vm15  ;;  %v8381_v55 = vmov 0  ;;  %v8386_v11 = vmov 0  ;;  %v8395_v43 = vmov 0 }
  0x43   :  { %8373 = vst [vmem:[#allocation54_spill] sm:$0xff] %v8372_v58  ;;  %v8377_v10 = vsel %vm5678_vm11, 4294967295, %v8376_v10  ;;  %vm5688_vm4 = vmpackc.low %vm8380_vm1, %vm8379_vm12  ;;  %vm8384_vm1 = vcmp.eq.s32.totalorder %v5536_v46, %v4749_v4  ;;  %vm8385_vm12 = vcmp.eq.s32.totalorder %v5536_v46, %v4752_v5  ;;  %v5780_v52 = vrot.slane %v4747_v3, %v139_v1 }
  0x44   :  { %8378 = vst [vmem:[#allocation55_spill] sm:$0xff] %v8377_v10  ;;  %v8382_v55 = vsel %vm5688_vm4, 4294967295, %v8381_v55  ;;  %4042 = vmatpush1.bf16.msk.msra.mxu0 %vm5688_vm4, %v8283_v56  ;;  %vm5709_vm9 = vmpackc.low %vm8385_vm12, %vm8384_vm1  ;;  %vm8388_vm4 = vcmp.eq.s32.totalorder %v4884_v32, %v5056_v54  ;;  %vm8389_vm1 = vcmp.eq.s32.totalorder %v4884_v32, %v5090_v57  ;;  %v8404_v53 = vmov 0 }
  0x45   :  { %8383 = vst [vmem:[#allocation56_spill] sm:$0xff] %v8382_v55  ;;  %v8387_v11 = vsel %vm5709_vm9, 4294967295, %v8386_v11  ;;  %v135_v55 = vsub.s32 6, %v4749_v4  ;;  %vm5726_vm12 = vmpackc.low %vm8389_vm1, %vm8388_vm4  ;;  %3930 = vmatpush1.bf16.msk.msra.mxu1 %vm5526_vm8, %v8283_v56  ;;  %vm8393_vm4 = vcmp.eq.s32.totalorder %v5328_v49, %v4749_v4  ;;  %vm8394_vm1 = vcmp.eq.s32.totalorder %v5328_v49, %v4752_v5 }
  0x46   :  { %v8391_v48 = vsel %vm5726_vm12, 4294967295, %v8390_v48  ;;  %4044 = vmatprep.subr.msk.bf16.mxu0 %vm5726_vm12, %v8283_v56  ;;  %vm5750_vm2 = vmpackc.low %vm8394_vm1, %vm8393_vm4  ;;  %3932 = vmatprep.subr.msk.bf16.mxu1 %vm5569_vm0, %v8283_v56  ;;  %vm8397_vm12 = vcmp.eq.s32.totalorder %v4898_v34, %v5056_v54  ;;  %vm8398_vm4 = vcmp.eq.s32.totalorder %v4898_v34, %v5090_v57  ;;  %vm8412_vm8 = vcmp.eq.s32.totalorder %v5328_v49, %v4760_v9 }
  0x47   :  { %8392 = vst [vmem:[#allocation57_spill] sm:$0xff] %v8391_v48  ;;  %v8396_v43 = vsel %vm5750_vm2, 4294967295, %v8395_v43  ;;  %vm5769_vm1 = vmpackc.low %vm8398_vm4, %vm8397_vm12  ;;  %v8399_v48 = vmov 0  ;;  %vm8402_vm12 = vcmp.eq.s32.totalorder %v5536_v46, %v4757_v8  ;;  %vm8403_vm4 = vcmp.eq.s32.totalorder %v5536_v46, %v4760_v9 }
  0x48   :  { %v8400_v48 = vsel %vm5769_vm1, 4294967295, %v8399_v48  ;;  %4046 = vmatpush1.bf16.msk.msra.mxu0 %vm5769_vm1, %v8283_v56  ;;  %vm5791_vm14 = vmpackc.low %vm8403_vm4, %vm8402_vm12  ;;  %v5802_v1 = vrot.slane %v4747_v3, %v135_v55  ;;  %vm8406_vm1 = vcmp.eq.s32.totalorder %v4884_v32, %v5112_v59  ;;  %vm8407_vm12 = vcmp.eq.s32.totalorder %v4884_v32, %v5131_v61 }
  0x49   :  { %8401 = vst [vmem:[#allocation58_spill] sm:$0xff] %v8400_v48  ;;  %v8405_v53 = vsel %vm5791_vm14, 4294967295, %v8404_v53  ;;  %vm5810_vm4 = vmpackc.low %vm8407_vm12, %vm8406_vm1  ;;  %v8408_v48 = vmov 0  ;;  %3934 = vmatpush1.bf16.msk.msra.mxu1 %vm5609_vm10, %v8283_v56  ;;  %vm8411_vm12 = vcmp.eq.s32.totalorder %v5328_v49, %v4757_v8  ;;  %v8413_v3 = vmov 0 }
  0x4a   :  { %v8409_v48 = vsel %vm5810_vm4, 4294967295, %v8408_v48  ;;  %4048 = vmatprep.subr.msk.bf16.mxu0 %vm5810_vm4, %v8283_v56  ;;  %vm5838_vm0 = vmpackc.low %vm8412_vm8, %vm8411_vm12  ;;  %3936 = vmatprep.subr.msk.bf16.mxu1 %vm5655_vm7, %v8283_v56  ;;  %vm8415_vm8 = vcmp.eq.s32.totalorder %v4898_v34, %v5112_v59  ;;  %vm8416_vm12 = vcmp.eq.s32.totalorder %v4898_v34, %v5131_v61  ;;  %v8417_v55 = vmov 0 }
  0x4b   :  { %8410 = vst [vmem:[#allocation59_spill] sm:$0xff] %v8409_v48  ;;  %v8414_v3 = vsel %vm5838_vm0, 4294967295, %v8413_v3  ;;  %vm5861_vm13 = vmpackc.low %vm8416_vm12, %vm8415_vm8  ;;  %vm8420_vm8 = vcmp.eq.s32.totalorder %v5536_v46, %v4769_v12  ;;  %vm8421_vm12 = vcmp.eq.s32.totalorder %v5536_v46, %v4772_v13  ;;  %v8422_v48 = vmov 0 }
  0x4c   :  { %v8418_v55 = vsel %vm5861_vm13, 4294967295, %v8417_v55  ;;  %4050 = vmatpush1.bf16.msk.msra.mxu0 %vm5861_vm13, %v8283_v56  ;;  %vm5882_vm3 = vmpackc.low %vm8421_vm12, %vm8420_vm8  ;;  %vm8424_vm12 = vcmp.eq.s32.totalorder %v4884_v32, %v5180_v0  ;;  %vm8425_vm15 = vcmp.eq.s32.totalorder %v4884_v32, %v5202_v2  ;;  %vm8430_vm8 = vcmp.eq.s32.totalorder %v5328_v49, %v4772_v13 }
  0x4d   :  { %8419 = vst [vmem:[#allocation60_spill] sm:$0xff] %v8418_v55  ;;  %v8423_v48 = vsel %vm5882_vm3, 4294967295, %v8422_v48  ;;  %vm5904_vm10 = vmpackc.low %vm8425_vm15, %vm8424_vm12  ;;  %v8426_v55 = vmov 0  ;;  %3938 = vmatpush1.bf16.msk.msra.mxu1 %vm5678_vm11, %v8283_v56  ;;  %vm8429_vm12 = vcmp.eq.s32.totalorder %v5328_v49, %v4769_v12  ;;  %v8431_v58 = vmov 0 }
  0x4e   :  { %v8427_v55 = vsel %vm5904_vm10, 4294967295, %v8426_v55  ;;  %4052 = vmatprep.subr.msk.bf16.mxu0 %vm5904_vm10, %v8283_v56  ;;  %vm5932_vm7 = vmpackc.low %vm8430_vm8, %vm8429_vm12  ;;  %3940 = vmatprep.subr.msk.bf16.mxu1 %vm5709_vm9, %v8283_v56  ;;  %vm8433_vm8 = vcmp.eq.s32.totalorder %v4898_v34, %v5180_v0  ;;  %vm8434_vm12 = vcmp.eq.s32.totalorder %v4898_v34, %v5202_v2  ;;  %v8440_v10 = vmov 0 }
  0x4f   :  { %8428 = vst [vmem:[#allocation61_spill] sm:$0xff] %v8427_v55  ;;  %v8432_v58 = vsel %vm5932_vm7, 4294967295, %v8431_v58  ;;  %vm5955_vm1 = vmpackc.low %vm8434_vm12, %vm8433_vm8  ;;  %v8435_v55 = vmov 0  ;;  %vm8438_vm8 = vcmp.eq.s32.totalorder %v5536_v46, %v4775_v14  ;;  %vm8439_vm12 = vcmp.eq.s32.totalorder %v5536_v46, %v4778_v15 }
  0x50   :  { %v8436_v55 = vsel %vm5955_vm1, 4294967295, %v8435_v55  ;;  %4054 = vmatpush1.bf16.msk.msra.mxu0 %vm5955_vm1, %v8283_v56  ;;  %vm5976_vm4 = vmpackc.low %vm8439_vm12, %vm8438_vm8  ;;  %1078 = vmatmul.mubr.bf16.vlgmr.msra.gmra.mrb[0].mxu1 %v5533_v60  ;;  %vm8443_vm12 = vcmp.eq.s32.totalorder %v4884_v32, %v5222_v26  ;;  %vm8444_vm15 = vcmp.eq.s32.totalorder %v4884_v32, %v5264_v63  ;;  %vm8449_vm10 = vcmp.eq.s32.totalorder %v5328_v49, %v4778_v15 }
  0x51   :  { %8437 = vst [vmem:[#allocation62_spill] sm:$0xff] %v8436_v55  ;;  %v8441_v10 = vsel %vm5976_vm4, 4294967295, %v8440_v10  ;;  %vm5999_vm13 = vmpackc.low %vm8444_vm15, %vm8443_vm12  ;;  %v8445_v55 = vmov 0  ;;  %3942 = vmatpush1.bf16.msk.msra.mxu1 %vm5750_vm2, %v8283_v56  ;;  %vm8448_vm12 = vcmp.eq.s32.totalorder %v5328_v49, %v4775_v14  ;;  %v8450_v7 = vmov 0  ;;  %1118 = vmatprep.mubr.bf16.mxu1 %v5266_v17 }
  0x52   :  { %8442 = vst [vmem:[#allocation63_spill] sm:$0xff] %v8441_v10  ;;  %v8446_v55 = vsel %vm5999_vm13, 4294967295, %v8445_v55  ;;  %4056 = vmatprep.subr.msk.bf16.mxu0 %vm5999_vm13, %v8283_v56  ;;  %vm6027_vm8 = vmpackc.low %vm8449_vm10, %vm8448_vm12  ;;  %3944 = vmatprep.subr.msk.bf16.mxu1 %vm5791_vm14, %v8283_v56  ;;  %vm8453_vm1 = vcmp.eq.s32.totalorder %v4898_v34, %v5222_v26  ;;  %vm8454_vm10 = vcmp.eq.s32.totalorder %v4898_v34, %v5264_v63  ;;  %v8525_v27 = vmov 0 }
  0x53   :  { %8447 = vst [vmem:[#allocation64_spill] sm:$0xff] %v8446_v55  ;;  %v8451_v7 = vsel %vm6027_vm8, 4294967295, %v8450_v7  ;;  %vm6046_vm12 = vmpackc.low %vm8454_vm10, %vm8453_vm1  ;;  %v8455_v55 = vmov 0  ;;  %vm8458_vm1 = vcmp.eq.s32.totalorder %v5536_v46, %v4819_v20  ;;  %vm8459_vm10 = vcmp.eq.s32.totalorder %v5536_v46, %v4822_v21 }
  0x54   :  { %8452 = vst [vmem:[#allocation65_spill] sm:$0xff] %v8451_v7  ;;  %v8456_v55 = vsel %vm6046_vm12, 4294967295, %v8455_v55  ;;  %4058 = vmatpush1.bf16.msk.msra.mxu0 %vm6046_vm12, %v8283_v56  ;;  %vm6066_vm13 = vmpackc.low %vm8459_vm10, %vm8458_vm1  ;;  %vm8463_vm5 = vcmp.eq.s32.totalorder %v4884_v32, %v5348_v6  ;;  %vm8464_vm1 = vcmp.eq.s32.totalorder %v4884_v32, %v5351_v47  ;;  %vm8500_vm12 = vcmp.eq.s32.totalorder %v5536_v46, %v4866_v28 }
  0x55   :  { %8457 = vst [vmem:[#allocation66_spill] sm:$0xff] %v8456_v55  ;;  %v8461_v42 = vsel %vm6066_vm13, 4294967295, %v8460_v42  ;;  %vm6084_vm10 = vmpackc.low %vm8464_vm1, %vm8463_vm5  ;;  %v8465_v55 = vmov 0  ;;  %3946 = vmatpush1.bf16.msk.msra.mxu1 %vm5838_vm0, %v8283_v56  ;;  %vm8468_vm5 = vcmp.eq.s32.totalorder %v5328_v49, %v4819_v20  ;;  %vm8469_vm1 = vcmp.eq.s32.totalorder %v5328_v49, %v4822_v21 }
  0x56   :  { %8462 = vst [vmem:[#allocation67_spill] sm:$0xff] %v8461_v42  ;;  %v8466_v55 = vsel %vm6084_vm10, 4294967295, %v8465_v55  ;;  %4060 = vmatprep.subr.msk.bf16.mxu0 %vm6084_vm10, %v8283_v56  ;;  %vm6109_vm6 = vmpackc.low %vm8469_vm1, %vm8468_vm5  ;;  %3948 = vmatprep.subr.msk.bf16.mxu1 %vm5882_vm3, %v8283_v56  ;;  %vm8473_vm10 = vcmp.eq.s32.totalorder %v4898_v34, %v5348_v6  ;;  %vm8474_vm5 = vcmp.eq.s32.totalorder %v4898_v34, %v5351_v47  ;;  %v8531_v23 = vmov 0 }
  0x57   :  { %8467 = vst [vmem:[#allocation68_spill] sm:$0xff] %v8466_v55  ;;  %v8471_v37 = vsel %vm6109_vm6, 4294967295, %v8470_v37  ;;  %vm6128_vm1 = vmpackc.low %vm8474_vm5, %vm8473_vm10  ;;  %v1233_v55 = vld [vmem:[%s8478_s27 + $0x10] sm:$0x77]  ;;  %vm8479_vm10 = vcmp.eq.s32.totalorder %v5536_v46, %v4844_v24  ;;  %vm8480_vm5 = vcmp.eq.s32.totalorder %v5536_v46, %v4847_v25  ;;  %vm8484_vm0 = vcmp.eq.s32.totalorder %v4884_v32, %v5387_v62 }
  0x58   :  { %8472 = vst [vmem:[#allocation69_spill] sm:$0xff] %v8471_v37  ;;  %v8476_v40 = vsel %vm6128_vm1, 4294967295, %v8475_v40  ;;  %4062 = vmatpush1.bf16.msk.msra.mxu0 %vm6128_vm1, %v8283_v56  ;;  %vm6152_vm11 = vmpackc.low %vm8480_vm5, %vm8479_vm10  ;;  %vm8485_vm10 = vcmp.eq.s32.totalorder %v4884_v32, %v5434_v29  ;;  %v8492_v32 = vmov 0  ;;  %v4139_v33 = vcombine.high %v1233_v55, %v1233_v55 }
  0x59   :  { %8477 = vst [vmem:[#allocation70_spill] sm:$0xff] %v8476_v40  ;;  %v8482_v36 = vsel %vm6152_vm11, 4294967295, %v8481_v36  ;;  %vm6170_vm5 = vmpackc.low %vm8485_vm10, %vm8484_vm0  ;;  %v8486_v40 = vmov 0  ;;  %3950 = vmatpush1.bf16.msk.msra.mxu1 %vm5932_vm7, %v8283_v56  ;;  %vm8490_vm0 = vcmp.eq.s32.totalorder %v5328_v49, %v4844_v24  ;;  %vm8491_vm10 = vcmp.eq.s32.totalorder %v5328_v49, %v4847_v25 }
  0x5a   :  { %8483 = vst [vmem:[#allocation71_spill] sm:$0xff] %v8482_v36  ;;  %v8487_v40 = vsel %vm6170_vm5, 4294967295, %v8486_v40  ;;  %4064 = vmatprep.subr.msk.bf16.mxu0 %vm6170_vm5, %v8283_v56  ;;  %vm6195_vm15 = vmpackc.low %vm8491_vm10, %vm8490_vm0  ;;  %v4138_v41 = vcombine.low %v1233_v55, %v1233_v55  ;;  %3952 = vmatprep.subr.msk.bf16.mxu1 %vm5976_vm4, %v8283_v56  ;;  %vm8495_vm3 = vcmp.eq.s32.totalorder %v4898_v34, %v5387_v62  ;;  %v8507_v55 = vmov 0 }
  0x5b   :  { %8488 = vst [vmem:[#allocation72_spill] sm:$0xff] %v8487_v40  ;;  %v8493_v32 = vsel %vm6195_vm15, 4294967295, %v8492_v32  ;;  %vm8496_vm5 = vcmp.eq.s32.totalorder %v4898_v34, %v5434_v29  ;;  %v8497_v40 = vmov 0  ;;  %vm256_vm10 = vcmp.eq.s32.totalorder %v5536_v46, %v4931_v38 }
  0x5c   :  { %8494 = vst [vmem:[#allocation73_spill] sm:$0xff] %v8493_v32  ;;  %vm6210_vm0 = vmpackc.low %vm8496_vm5, %vm8495_vm3  ;;  %vm264_vm1 = vcmp.eq.s32.totalorder %v5536_v46, %v4934_v39  ;;  %vm8501_vm4 = vcmp.eq.s32.totalorder %v5536_v46, %v4881_v31  ;;  %v8502_v34 = vmov 0  ;;  %vm8505_vm5 = vcmp.eq.s32.totalorder %v5328_v49, %v4866_v28 }
  0x5d   :  { %v8498_v40 = vsel %vm6210_vm0, 4294967295, %v8497_v40  ;;  %4066 = vmatpush1.bf16.msk.msra.mxu0 %vm6210_vm0, %v8283_v56  ;;  %vm6227_vm3 = vmpackc.low %vm8501_vm4, %vm8500_vm12  ;;  %vm8506_vm7 = vcmp.eq.s32.totalorder %v5328_v49, %v4881_v31  ;;  %vm272_vm0 = vcmp.eq.s32.totalorder %v5536_v46, %v4978_v44  ;;  %vm280_vm2 = vcmp.eq.s32.totalorder %v5536_v46, %v4981_v45  ;;  %3954 = vmatpush1.bf16.msk.msra.mxu1 %vm6027_vm8, %v8283_v56 }
  0x5e   :  { %8499 = vst [vmem:[#allocation74_spill] sm:$0xff] %v8498_v40  ;;  %v8503_v34 = vsel %vm6227_vm3, 4294967295, %v8502_v34  ;;  %vm6237_vm14 = vmpackc.low %vm8506_vm7, %vm8505_vm5  ;;  %vm8510_vm4 = vcmask 1042432   ;;  %3956 = vmatprep.subr.msk.bf16.mxu1 %vm6066_vm13, %v8283_v56  ;;  %vm8515_vm7 = vcmp.eq.s32.totalorder %v5328_v49, %v4931_v38  ;;  %vm8516_vm5 = vcmp.eq.s32.totalorder %v5328_v49, %v4934_v39 }
  0x5f   :  { %8504 = vst [vmem:[#allocation75_spill] sm:$0xff] %v8503_v34  ;;  %v8508_v55 = vsel %vm6237_vm14, 4294967295, %v8507_v55  ;;  %4150 = vmatprep.subr.msk.bf16.mxu0 %vm8510_vm4, %v4139_v33  ;;  %vm8511_vm12 = vmmov %vm8510_vm4  ;;  %v8517_v33 = vmov 0  ;;  %vm8523_vm13 = vcmp.eq.s32.totalorder %v5328_v49, %v4978_v44  ;;  %vm304_vm8 = vcmp.eq.s32.totalorder %v5536_v46, %v5056_v54 }
  0x60   :  { %8509 = vst [vmem:[#allocation76_spill] sm:$0xff] %v8508_v55  ;;  %v1292_v40 = vsel %vm8511_vm12, %v4138_v41, 0  ;;  %vm6250_vm9 = vmpackc.low %vm264_vm1, %vm256_vm10  ;;  %1160 = vmatmul.mubr.bf16.vlgmr.msra.gmra.mrb[0].mxu0 %v5533_v60  ;;  %vm288_vm1 = vcmp.eq.s32.totalorder %v5536_v46, %v5028_v50  ;;  %vm296_vm10 = vcmp.eq.s32.totalorder %v5536_v46, %v5031_v51  ;;  %v8520_v41 = vmov 0 }
  0x61   :  { %v8513_v30 = vsel %vm6250_vm9, 4294967295, %v8512_v30  ;;  %vm6264_vm4 = vmpackc.low %vm8516_vm5, %vm8515_vm7  ;;  %1426 = vmatpush1.bf16.msra.mxu0 %v1292_v40  ;;  %1457 = vmatprep.mubr.bf16.mxu0 %v8489_v35  ;;  %vm8524_vm7 = vcmp.eq.s32.totalorder %v5328_v49, %v4981_v45  ;;  %v8527_v40 = vmov 0  ;;  %v8534_v19 = vmov 0 }
  0x62   :  { %8514 = vst [vmem:[#allocation77_spill] sm:$0xff] %v8513_v30  ;;  %v8518_v33 = vsel %vm6264_vm4, 4294967295, %v8517_v33  ;;  %vm6272_vm12 = vmpackc.low %vm280_vm2, %vm272_vm0  ;;  %vm312_vm2 = vcmp.eq.s32.totalorder %v5536_v46, %v5090_v57  ;;  %3958 = vmatpush1.bf16.msk.msra.mxu1 %vm6109_vm6, %v8283_v56  ;;  %v8538_v18 = vmov 0  ;;  %v8540_v16 = vmov 0  ;;  %v6410_v30 = vld [vmem:[%s8533_s0 + $0x8] sm:$0xff]  }
  0x63   :  { %8519 = vst [vmem:[#allocation78_spill] sm:$0xff] %v8518_v33  ;;  %v8521_v41 = vsel %vm6272_vm12, 4294967295, %v8520_v41  ;;  %vm6283_vm5 = vmpackc.low %vm8524_vm7, %vm8523_vm13  ;;  %3960 = vmatprep.subr.msk.bf16.mxu1 %vm6152_vm11, %v8283_v56  ;;  %vm8529_vm13 = vcmp.eq.s32.totalorder %v5328_v49, %v5028_v50  ;;  %vm8530_vm7 = vcmp.eq.s32.totalorder %v5328_v49, %v5031_v51  ;;  %v8544_v36 = vmov 0 }
  0x64   :  { %8522 = vst [vmem:[#allocation79_spill] sm:$0xff] %v8521_v41  ;;  %v8526_v27 = vsel %vm6283_vm5, 4294967295, %v8525_v27  ;;  %vm6294_vm0 = vmpackc.low %vm296_vm10, %vm288_vm1  ;;  %vm320_vm1 = vcmp.eq.s32.totalorder %v5536_v46, %v5112_v59  ;;  %vm328_vm10 = vcmp.eq.s32.totalorder %v5536_v46, %v5131_v61  ;;  %v8547_v34 = vmov 0 }
  0x65   :  { %v8528_v40 = vsel %vm6294_vm0, 4294967295, %v8527_v40  ;;  %vm6307_vm5 = vmpackc.low %vm8530_vm7, %vm8529_vm13  ;;  %vm8536_vm13 = vcmp.eq.s32.totalorder %v5328_v49, %v5056_v54  ;;  %vm8537_vm7 = vcmp.eq.s32.totalorder %v5328_v49, %v5090_v57  ;;  %vm336_vm0 = vcmp.eq.s32.totalorder %v5536_v46, %v5180_v0 }
  0x66   :  { %v8532_v23 = vsel %vm6307_vm5, 4294967295, %v8531_v23  ;;  %vm6320_vm11 = vmpackc.low %vm312_vm2, %vm304_vm8  ;;  %vm344_vm8 = vcmp.eq.s32.totalorder %v5536_v46, %v5202_v2  ;;  %3962 = vmatpush1.bf16.msk.msra.mxu1 %vm6195_vm15, %v8283_v56  ;;  %vm8546_vm15 = vcmask 48128   ;;  %v8551_v32 = vmov 0 }
  0x67   :  { %v8535_v19 = vsel %vm6320_vm11, 4294967295, %v8534_v19  ;;  %vm6330_vm5 = vmpackc.low %vm8537_vm7, %vm8536_vm13  ;;  %3964 = vmatprep.subr.msk.bf16.mxu1 %vm6227_vm3, %v8283_v56  ;;  %vm8542_vm13 = vcmp.eq.s32.totalorder %v5328_v49, %v5112_v59  ;;  %vm8543_vm7 = vcmp.eq.s32.totalorder %v5328_v49, %v5131_v61  ;;  %v8553_v37 = vmov 0 }
  0x68   :  { %v8539_v18 = vsel %vm6330_vm5, 4294967295, %v8538_v18  ;;  %vm6341_vm2 = vmpackc.low %vm328_vm10, %vm320_vm1  ;;  %vm352_vm1 = vcmp.eq.s32.totalorder %v5536_v46, %v5222_v26  ;;  %vm360_vm10 = vcmp.eq.s32.totalorder %v5536_v46, %v5264_v63  ;;  %4151 = vmatmul.mubr.msk.bf16.vlgmr.msra.gmra.mrb[4].mxu0 %vm8546_vm15, %v6318_v22  ;;  %vm376_vm15 = vcmp.eq.s32.totalorder %v5536_v46, %v5351_v47 }
  0x69   :  { %v8541_v16 = vsel %vm6341_vm2, 4294967295, %v8540_v16  ;;  %vm6354_vm6 = vmpackc.low %vm8543_vm7, %vm8542_vm13  ;;  %1467 = vmatprep.mubr.bf16.mxu0 %v8489_v35  ;;  %vm8549_vm13 = vcmp.eq.s32.totalorder %v5328_v49, %v5180_v0  ;;  %vm8550_vm7 = vcmp.eq.s32.totalorder %v5328_v49, %v5202_v2  ;;  %vm368_vm2 = vcmp.eq.s32.totalorder %v5536_v46, %v5348_v6 }
  0x6a   :  { %v8545_v36 = vsel %vm6354_vm6, 4294967295, %v8544_v36  ;;  %vm6364_vm3 = vmpackc.low %vm344_vm8, %vm336_vm0  ;;  %3966 = vmatpush1.bf16.msk.msra.mxu1 %vm6237_vm14, %v8283_v56  ;;  %vm8555_vm8 = vcmp.eq.s32.totalorder %v5328_v49, %v5222_v26  ;;  %v8557_v42 = vmov 0  ;;  %v8559_v55 = vmov 0 }
  0x6b   :  { %v8548_v34 = vsel %vm6364_vm3, 4294967295, %v8547_v34  ;;  %vm6375_vm6 = vmpackc.low %vm8550_vm7, %vm8549_vm13  ;;  %3968 = vmatprep.subr.msk.bf16.mxu1 %vm6250_vm9, %v8283_v56  ;;  %vm8556_vm13 = vcmp.eq.s32.totalorder %v5328_v49, %v5264_v63  ;;  %v8563_v7 = vmov 0  ;;  %v8569_v10 = vmov 0 }
  0x6c   :  { %v8552_v32 = vsel %vm6375_vm6, 4294967295, %v8551_v32  ;;  %vm6386_vm0 = vmpackc.low %vm360_vm10, %vm352_vm1  ;;  %vm384_vm1 = vcmp.eq.s32.totalorder %v5536_v46, %v5387_v62  ;;  %vm392_vm10 = vcmp.eq.s32.totalorder %v5536_v46, %v5434_v29  ;;  %v8565_v46 = vmov 0 }
  0x6d   :  { %v8554_v37 = vsel %vm6386_vm0, 4294967295, %v8553_v37  ;;  %vm6399_vm7 = vmpackc.low %vm8556_vm13, %vm8555_vm8  ;;  %vm8561_vm8 = vcmp.eq.s32.totalorder %v5328_v49, %v5348_v6  ;;  %vm8562_vm13 = vcmp.eq.s32.totalorder %v5328_v49, %v5351_v47  ;;  %v8574_v41 = vmov 0 }
  0x6e   :  { %v8558_v42 = vsel %vm6399_vm7, 4294967295, %v8557_v42  ;;  %vm6412_vm9 = vmpackc.low %vm376_vm15, %vm368_vm2  ;;  %3970 = vmatpush1.bf16.msk.msra.mxu1 %vm6264_vm4, %v8283_v56  ;;  %vm8567_vm2 = vcmp.eq.s32.totalorder %v5328_v49, %v5387_v62  ;;  %vm8568_vm15 = vcmp.eq.s32.totalorder %v5328_v49, %v5434_v29  ;;  %v8578_v49 = vmov 0 }
  0x6f   :  { %v8560_v55 = vsel %vm6412_vm9, 4294967295, %v8559_v55  ;;  %vm6422_vm14 = vmpackc.low %vm8562_vm13, %vm8561_vm8  ;;  %3972 = vmatprep.subr.msk.bf16.mxu1 %vm6272_vm12, %v8283_v56  ;;  %vm8571_vm13 = vcmask 48128   ;;  %v8583_v33 = vmov 0 }
  0x70   :  { %v8564_v7 = vsel %vm6422_vm14, 4294967295, %v8563_v7  ;;  %vm6429_vm7 = vmpackc.low %vm392_vm10, %vm384_vm1  ;;  %4152 = vmatmul.mubr.msk.bf16.gmra.mrb[8].mxu0 %vm8571_vm13, %v6410_v30  ;;  %vm8572_vm1 = vcmp.eq.s32.totalorder %v5780_v52, %v4749_v4  ;;  %vm8573_vm10 = vcmp.eq.s32.totalorder %v5780_v52, %v4752_v5  ;;  %vm8580_vm13 = vnez %v8526_v27 }
  0x71   :  { %v8566_v46 = vsel %vm6429_vm7, 4294967295, %v8565_v46  ;;  %vm6442_vm8 = vmpackc.low %vm8568_vm15, %vm8567_vm2  ;;  %1477 = vmatprep.mubr.bf16.mxu0 %v8489_v35  ;;  %vm8576_vm2 = vcmp.eq.s32.totalorder %v5802_v1, %v4749_v4  ;;  %vm8577_vm15 = vcmp.eq.s32.totalorder %v5802_v1, %v4752_v5  ;;  %v8588_v4 = vmov 0 }
  0x72   :  { %v8570_v10 = vsel %vm6442_vm8, 4294967295, %v8569_v10  ;;  %vm6454_vm12 = vmpackc.low %vm8573_vm10, %vm8572_vm1  ;;  %3974 = vmatpush1.bf16.msk.msra.mxu1 %vm8580_vm13, %v8283_v56  ;;  %vm8581_vm1 = vcmp.eq.s32.totalorder %v5780_v52, %v4757_v8  ;;  %vm8582_vm10 = vcmp.eq.s32.totalorder %v5780_v52, %v4760_v9  ;;  %vm8587_vm13 = vcmp.eq.s32.totalorder %v5802_v1, %v4760_v9 }
  0x73   :  { %v8575_v41 = vsel %vm6454_vm12, 4294967295, %v8574_v41  ;;  %vm6465_vm4 = vmpackc.low %vm8577_vm15, %vm8576_vm2  ;;  %vm8585_vm2 = vnez %v8528_v40  ;;  %vm8586_vm15 = vcmp.eq.s32.totalorder %v5802_v1, %v4757_v8  ;;  %v8592_v5 = vmov 0 }
  0x74   :  { %v8579_v49 = vsel %vm6465_vm4, 4294967295, %v8578_v49  ;;  %vm6478_vm12 = vmpackc.low %vm8582_vm10, %vm8581_vm1  ;;  %3976 = vmatprep.subr.msk.bf16.mxu1 %vm8585_vm2, %v8283_v56  ;;  %vm8590_vm1 = vcmp.eq.s32.totalorder %v5780_v52, %v4769_v12  ;;  %vm8591_vm10 = vcmp.eq.s32.totalorder %v5780_v52, %v4772_v13  ;;  %vm8594_vm2 = vcmp.eq.s32.totalorder %v5802_v1, %v4769_v12 }
  0x75   :  { %v8584_v33 = vsel %vm6478_vm12, 4294967295, %v8583_v33  ;;  %vm6491_vm4 = vmpackc.low %vm8587_vm13, %vm8586_vm15  ;;  %vm8595_vm8 = vcmp.eq.s32.totalorder %v5802_v1, %v4772_v13  ;;  %v8596_v8 = vmov 0  ;;  %vm8598_vm15 = vnez %v8532_v23 }
  0x76   :  { %v8589_v4 = vsel %vm6491_vm4, 4294967295, %v8588_v4  ;;  %vm6501_vm12 = vmpackc.low %vm8591_vm10, %vm8590_vm1  ;;  %3978 = vmatpush1.bf16.msk.msra.mxu1 %vm8598_vm15, %v8283_v56  ;;  %vm8599_vm1 = vcmp.eq.s32.totalorder %v5780_v52, %v4775_v14  ;;  %vm8600_vm10 = vcmp.eq.s32.totalorder %v5780_v52, %v4778_v15  ;;  %v8601_v9 = vmov 0 }
  0x77   :  { %v8593_v5 = vsel %vm6501_vm12, 4294967295, %v8592_v5  ;;  %vm6511_vm13 = vmpackc.low %vm8595_vm8, %vm8594_vm2  ;;  %3980 = vmatprep.subr.msk.bf16.mxu1 %vm6320_vm11, %v8283_v56  ;;  %vm8603_vm8 = vcmp.eq.s32.totalorder %v5802_v1, %v4775_v14  ;;  %vm8604_vm2 = vcmp.eq.s32.totalorder %v5802_v1, %v4778_v15  ;;  %v8605_v12 = vmov 0 }
  0x78   :  { %v8597_v8 = vsel %vm6511_vm13, 4294967295, %v8596_v8  ;;  %vm6524_vm12 = vmpackc.low %vm8600_vm10, %vm8599_vm1  ;;  %vm8608_vm1 = vcmp.eq.s32.totalorder %v5780_v52, %v4819_v20  ;;  %vm8609_vm10 = vcmp.eq.s32.totalorder %v5780_v52, %v4822_v21  ;;  %v8610_v13 = vmov 0 }
  0x79   :  { %v8602_v9 = vsel %vm6524_vm12, 4294967295, %v8601_v9  ;;  %vm6537_vm15 = vmpackc.low %vm8604_vm2, %vm8603_vm8  ;;  %vm8613_vm11 = vcmp.eq.s32.totalorder %v5802_v1, %v4819_v20  ;;  %vm8614_vm13 = vcmp.eq.s32.totalorder %v5802_v1, %v4822_v21  ;;  %v8615_v14 = vmov 0 }
  0x7a   :  { %v8606_v12 = vsel %vm6537_vm15, 4294967295, %v8605_v12  ;;  %vm6547_vm12 = vmpackc.low %vm8609_vm10, %vm8608_vm1  ;;  %3982 = vmatpush1.bf16.msk.msra.mxu1 %vm6330_vm5, %v8283_v56  ;;  %vm8618_vm2 = vcmp.eq.s32.totalorder %v5780_v52, %v4844_v24  ;;  %vm8619_vm1 = vcmp.eq.s32.totalorder %v5780_v52, %v4847_v25  ;;  %v8620_v15 = vmov 0 }
  0x7b   :  { %8607 = vst [vmem:[#allocation80_spill] sm:$0xff] %v8606_v12  ;;  %v8611_v13 = vsel %vm6547_vm12, 4294967295, %v8610_v13  ;;  %vm6557_vm8 = vmpackc.low %vm8614_vm13, %vm8613_vm11  ;;  %vm8623_vm11 = vnez %v8541_v16  ;;  %vm8624_vm13 = vcmp.eq.s32.totalorder %v5802_v1, %v4844_v24  ;;  %vm8625_vm5 = vcmp.eq.s32.totalorder %v5802_v1, %v4847_v25 }
  0x7c   :  { %8612 = vst [vmem:[#allocation81_spill] sm:$0xff] %v8611_v13  ;;  %v8616_v14 = vsel %vm6557_vm8, 4294967295, %v8615_v14  ;;  %vm6570_vm10 = vmpackc.low %vm8619_vm1, %vm8618_vm2  ;;  %3984 = vmatprep.subr.msk.bf16.mxu1 %vm8623_vm11, %v8283_v56  ;;  %v8626_v20 = vmov 0  ;;  %vm8629_vm2 = vcmp.eq.s32.totalorder %v5780_v52, %v4866_v28  ;;  %vm8630_vm1 = vcmp.eq.s32.totalorder %v5780_v52, %v4881_v31 }
  0x7d   :  { %8617 = vst [vmem:[#allocation82_spill] sm:$0xff] %v8616_v14  ;;  %v8621_v15 = vsel %vm6570_vm10, 4294967295, %v8620_v15  ;;  %vm6583_vm8 = vmpackc.low %vm8625_vm5, %vm8624_vm13  ;;  %v8631_v21 = vmov 0  ;;  %vm8634_vm11 = vcmp.eq.s32.totalorder %v5802_v1, %v4866_v28  ;;  %vm8635_vm12 = vcmp.eq.s32.totalorder %v5802_v1, %v4881_v31 }
  0x7e   :  { %8622 = vst [vmem:[#allocation83_spill] sm:$0xff] %v8621_v15  ;;  %v8627_v20 = vsel %vm6583_vm8, 4294967295, %v8626_v20  ;;  %vm6593_vm10 = vmpackc.low %vm8630_vm1, %vm8629_vm2  ;;  %v8636_v24 = vmov 0  ;;  %vm8639_vm13 = vnez %v8545_v36  ;;  %vm8640_vm2 = vcmp.eq.s32.totalorder %v5780_v52, %v4931_v38 }
  0x7f   :  { %8628 = vst [vmem:[#allocation84_spill] sm:$0xff] %v8627_v20  ;;  %v8632_v21 = vsel %vm6593_vm10, 4294967295, %v8631_v21  ;;  %vm6603_vm5 = vmpackc.low %vm8635_vm12, %vm8634_vm11  ;;  %3986 = vmatpush1.bf16.msk.msra.mxu1 %vm8639_vm13, %v8283_v56  ;;  %vm8641_vm1 = vcmp.eq.s32.totalorder %v5780_v52, %v4934_v39  ;;  %v8642_v25 = vmov 0  ;;  %vm8645_vm12 = vcmp.eq.s32.totalorder %v5802_v1, %v4931_v38 }
  0x80   :  { %8633 = vst [vmem:[#allocation85_spill] sm:$0xff] %v8632_v21  ;;  %v8637_v24 = vsel %vm6603_vm5, 4294967295, %v8636_v24  ;;  %vm6616_vm10 = vmpackc.low %vm8641_vm1, %vm8640_vm2  ;;  %3988 = vmatprep.subr.msk.bf16.mxu1 %vm6364_vm3, %v8283_v56  ;;  %vm8646_vm11 = vcmp.eq.s32.totalorder %v5802_v1, %v4934_v39  ;;  %v8647_v28 = vmov 0  ;;  %vm8650_vm2 = vcmp.eq.s32.totalorder %v5780_v52, %v4978_v44 }
  0x81   :  { %8638 = vst [vmem:[#allocation86_spill] sm:$0xff] %v8637_v24  ;;  %v8643_v25 = vsel %vm6616_vm10, 4294967295, %v8642_v25  ;;  %vm6629_vm13 = vmpackc.low %vm8646_vm11, %vm8645_vm12  ;;  %vm8651_vm1 = vcmp.eq.s32.totalorder %v5780_v52, %v4981_v45  ;;  %v8652_v31 = vmov 0  ;;  %vm8655_vm3 = vcmp.eq.s32.totalorder %v5802_v1, %v4978_v44 }
  0x82   :  { %8644 = vst [vmem:[#allocation87_spill] sm:$0xff] %v8643_v25  ;;  %v8648_v28 = vsel %vm6629_vm13, 4294967295, %v8647_v28  ;;  %vm6639_vm10 = vmpackc.low %vm8651_vm1, %vm8650_vm2  ;;  %vm8656_vm5 = vcmp.eq.s32.totalorder %v5802_v1, %v4981_v45  ;;  %v8657_v38 = vmov 0  ;;  %vm8660_vm11 = vcmp.eq.s32.totalorder %v5780_v52, %v5028_v50 }
  0x83   :  { %8649 = vst [vmem:[#allocation88_spill] sm:$0xff] %v8648_v28  ;;  %v8653_v31 = vsel %vm6639_vm10, 4294967295, %v8652_v31  ;;  %vm6649_vm12 = vmpackc.low %vm8656_vm5, %vm8655_vm3  ;;  %3990 = vmatpush1.bf16.msk.msra.mxu1 %vm6375_vm6, %v8283_v56  ;;  %vm8661_vm2 = vcmp.eq.s32.totalorder %v5780_v52, %v5031_v51  ;;  %v8662_v39 = vmov 0  ;;  %vm8665_vm3 = vcmp.eq.s32.totalorder %v5802_v1, %v5028_v50 }
  0x84   :  { %8654 = vst [vmem:[#allocation89_spill] sm:$0xff] %v8653_v31  ;;  %v8658_v38 = vsel %vm6649_vm12, 4294967295, %v8657_v38  ;;  %vm6662_vm1 = vmpackc.low %vm8661_vm2, %vm8660_vm11  ;;  %3992 = vmatprep.subr.msk.bf16.mxu1 %vm6386_vm0, %v8283_v56  ;;  %vm8666_vm5 = vcmp.eq.s32.totalorder %v5802_v1, %v5031_v51  ;;  %v8667_v44 = vmov 0  ;;  %vm8670_vm11 = vcmp.eq.s32.totalorder %v5780_v52, %v5056_v54 }
  0x85   :  { %8659 = vst [vmem:[#allocation90_spill] sm:$0xff] %v8658_v38  ;;  %v8663_v39 = vsel %vm6662_vm1, 4294967295, %v8662_v39  ;;  %vm6675_vm6 = vmpackc.low %vm8666_vm5, %vm8665_vm3  ;;  %vm8671_vm2 = vcmp.eq.s32.totalorder %v5780_v52, %v5090_v57  ;;  %v8672_v45 = vmov 0  ;;  %vm8675_vm0 = vcmp.eq.s32.totalorder %v5802_v1, %v5056_v54 }
  0x86   :  { %8664 = vst [vmem:[#allocation91_spill] sm:$0xff] %v8663_v39  ;;  %v8668_v44 = vsel %vm6675_vm6, 4294967295, %v8667_v44  ;;  %vm6685_vm1 = vmpackc.low %vm8671_vm2, %vm8670_vm11  ;;  %vm8676_vm12 = vcmp.eq.s32.totalorder %v5802_v1, %v5090_v57  ;;  %v8677_v50 = vmov 0  ;;  %vm8680_vm5 = vnez %v8558_v42 }
  0x87   :  { %8669 = vst [vmem:[#allocation92_spill] sm:$0xff] %v8668_v44  ;;  %v8673_v45 = vsel %vm6685_vm1, 4294967295, %v8672_v45  ;;  %vm6695_vm3 = vmpackc.low %vm8676_vm12, %vm8675_vm0  ;;  %3994 = vmatpush1.bf16.msk.msra.mxu1 %vm8680_vm5, %v8283_v56  ;;  %vm8681_vm11 = vcmp.eq.s32.totalorder %v5780_v52, %v5112_v59  ;;  %vm8682_vm2 = vcmp.eq.s32.totalorder %v5780_v52, %v5131_v61  ;;  %v8683_v51 = vmov 0 }
  0x88   :  { %8674 = vst [vmem:[#allocation93_spill] sm:$0xff] %v8673_v45  ;;  %v8678_v50 = vsel %vm6695_vm3, 4294967295, %v8677_v50  ;;  %vm6708_vm1 = vmpackc.low %vm8682_vm2, %vm8681_vm11  ;;  %3996 = vmatprep.subr.msk.bf16.mxu1 %vm6412_vm9, %v8283_v56  ;;  %vm8686_vm0 = vcmp.eq.s32.totalorder %v5802_v1, %v5112_v59  ;;  %vm8687_vm12 = vcmp.eq.s32.totalorder %v5802_v1, %v5131_v61  ;;  %v8688_v54 = vmov 0 }
  0x89   :  { %8679 = vst [vmem:[#allocation94_spill] sm:$0xff] %v8678_v50  ;;  %v8684_v51 = vsel %vm6708_vm1, 4294967295, %v8683_v51  ;;  %vm6721_vm5 = vmpackc.low %vm8687_vm12, %vm8686_vm0  ;;  %vm8691_vm11 = vcmp.eq.s32.totalorder %v5780_v52, %v5180_v0  ;;  %vm8692_vm2 = vcmp.eq.s32.totalorder %v5780_v52, %v5202_v2  ;;  %v8693_v57 = vmov 0 }
  0x8a   :  { %8685 = vst [vmem:[#allocation95_spill] sm:$0xff] %v8684_v51  ;;  %v8689_v54 = vsel %vm6721_vm5, 4294967295, %v8688_v54  ;;  %vm6731_vm1 = vmpackc.low %vm8692_vm2, %vm8691_vm11  ;;  %vm8696_vm9 = vcmp.eq.s32.totalorder %v5802_v1, %v5180_v0  ;;  %vm8697_vm3 = vcmp.eq.s32.totalorder %v5802_v1, %v5202_v2  ;;  %v8698_v59 = vmov 0 }
  0x8b   :  { %8690 = vst [vmem:[#allocation96_spill] sm:$0xff] %v8689_v54  ;;  %v8694_v57 = vsel %vm6731_vm1, 4294967295, %v8693_v57  ;;  %vm6741_vm0 = vmpackc.low %vm8697_vm3, %vm8696_vm9  ;;  %3998 = vmatpush1.bf16.msk.msra.mxu1 %vm6422_vm14, %v8283_v56  ;;  %vm8701_vm12 = vcmp.eq.s32.totalorder %v5780_v52, %v5222_v26  ;;  %vm8702_vm11 = vcmp.eq.s32.totalorder %v5780_v52, %v5264_v63  ;;  %v8703_v61 = vmov 0 }
  0x8c   :  { %8695 = vst [vmem:[#allocation97_spill] sm:$0xff] %v8694_v57  ;;  %v8699_v59 = vsel %vm6741_vm0, 4294967295, %v8698_v59  ;;  %vm6754_vm2 = vmpackc.low %vm8702_vm11, %vm8701_vm12  ;;  %4000 = vmatprep.subr.msk.bf16.mxu1 %vm6429_vm7, %v8283_v56  ;;  %vm8706_vm9 = vcmp.eq.s32.totalorder %v5802_v1, %v5222_v26  ;;  %vm8707_vm3 = vcmp.eq.s32.totalorder %v5802_v1, %v5264_v63  ;;  %v8708_v0 = vmov 0 }
  0x8d   :  { %8700 = vst [vmem:[#allocation98_spill] sm:$0xff] %v8699_v59  ;;  %v8704_v61 = vsel %vm6754_vm2, 4294967295, %v8703_v61  ;;  %vm6767_vm14 = vmpackc.low %vm8707_vm3, %vm8706_vm9  ;;  %vm8711_vm12 = vcmp.eq.s32.totalorder %v5780_v52, %v5348_v6  ;;  %vm8712_vm11 = vcmp.eq.s32.totalorder %v5780_v52, %v5351_v47  ;;  %v8713_v2 = vmov 0 }
  0x8e   :  { %8705 = vst [vmem:[#allocation99_spill] sm:$0xff] %v8704_v61  ;;  %v8709_v0 = vsel %vm6767_vm14, 4294967295, %v8708_v0  ;;  %vm6777_vm2 = vmpackc.low %vm8712_vm11, %vm8711_vm12  ;;  %vm8716_vm7 = vcmp.eq.s32.totalorder %v5802_v1, %v5348_v6  ;;  %vm8717_vm0 = vcmp.eq.s32.totalorder %v5802_v1, %v5351_v47  ;;  %v8718_v63 = vmov 0 }
  0x8f   :  { %8710 = vst [vmem:[#allocation100_spill] sm:$0xff] %v8709_v0  ;;  %v8714_v2 = vsel %vm6777_vm2, 4294967295, %v8713_v2  ;;  %vm6787_vm9 = vmpackc.low %vm8717_vm0, %vm8716_vm7  ;;  %vm8721_vm3 = vnez %v8570_v10  ;;  %vm8722_vm12 = vcmp.eq.s32.totalorder %v5780_v52, %v5387_v62  ;;  %vm8723_vm11 = vcmp.eq.s32.totalorder %v5780_v52, %v5434_v29  ;;  %v1232_v52 = vld [vmem:[%s8478_s27 + $0x8] sm:$0x77] }
  0x90   :  { %8715 = vst [vmem:[#allocation101_spill] sm:$0xff] %v8714_v2  ;;  %v8719_v63 = vsel %vm6787_vm9, 4294967295, %v8718_v63  ;;  %4002 = vmatpush1.bf16.msk.msra.mxu1 %vm8721_vm3, %v8283_v56  ;;  %vm6800_vm2 = vmpackc.low %vm8723_vm11, %vm8722_vm12  ;;  %v8724_v26 = vmov 0  ;;  %vm8727_vm7 = vnez %v8575_v41  ;;  %vm8728_vm0 = vcmp.eq.s32.totalorder %v5802_v1, %v5387_v62  ;;  %v1231_v62 = vld [vmem:[%s8478_s27] sm:$0x77] }
  0x91   :  { %8720 = vst [vmem:[#allocation102_spill] sm:$0xff] %v8719_v63  ;;  %v8725_v26 = vsel %vm6800_vm2, 4294967295, %v8724_v26  ;;  %4068 = vmatprep.subr.msk.bf16.mxu1 %vm8727_vm7, %v8283_v56  ;;  %vm8729_vm3 = vcmp.eq.s32.totalorder %v5802_v1, %v5434_v29  ;;  %v8730_v47 = vmov 0  ;;  %vm8733_vm12 = vnez %v8579_v49 }
  0x92   :  { %8726 = vst [vmem:[#allocation103_spill] sm:$0xff] %v8725_v26  ;;  %vm6813_vm9 = vmpackc.low %vm8729_vm3, %vm8728_vm0  ;;  %vm8734_vm11 = vnez %v8584_v33  ;;  %vm8735_vm3 = vnez %v8593_v5  ;;  %vm8736_vm0 = vnez %v8597_v8  ;;  %v4135_v29 = vcombine.high %v1231_v62, %v1231_v62  ;;  %v8968_v5 = vld [vmem:[#allocation82_spill] sm:$0xff] }
  0x93   :  { %v8731_v47 = vsel %vm6813_vm9, 4294967295, %v8730_v47  ;;  %1119 = vmatmul.mubr.bf16.vlgmr.msra.gmra.mrb[4].mxu1 %v5533_v60  ;;  %v4134_v6 = vcombine.low %v1231_v62, %v1231_v62  ;;  %v4136_v26 = vcombine.low %v1232_v52, %v1232_v52  ;;  %v1234_v62 = vld [vmem:[%s8478_s27 + $0x18] sm:$0x77] }
  0x94   :  { %8732 = vst [vmem:[#allocation104_spill] sm:$0xff] %v8731_v47  ;;  %4070 = vmatpush1.bf16.msk.msra.mxu1 %vm8733_vm12, %v8283_v56  ;;  %1200 = vmatprep.mubr.bf16.mxu1 %v5266_v17  ;;  %vm8737_vm12 = vnez %v8602_v9  ;;  %v6849_v17 = vld [vmem:[%s8533_s0 + $0x10] ss:$0 sps:$4 sm:$0xff]  }
  0x95   :  { %4072 = vmatprep.subr.msk.bf16.mxu1 %vm8734_vm11, %v8283_v56  ;;  %vm8738_vm11 = vnez %v8611_v13 }
  0x98   :  { %4074 = vmatpush1.bf16.msk.msra.mxu1 %vm6491_vm4, %v8283_v56  ;;  %vm8739_vm4 = vnez %v8616_v14 }
  0x99   :  { %4076 = vmatprep.subr.msk.bf16.mxu1 %vm8735_vm3, %v8283_v56 }
  0x9c   :  { %4078 = vmatpush1.bf16.msk.msra.mxu1 %vm8736_vm0, %v8283_v56  ;;  %vm8741_vm0 = vcmask 48128  }
  0x9d   :  { %4080 = vmatprep.subr.msk.bf16.mxu1 %vm8737_vm12, %v8283_v56  ;;  %vm8740_vm12 = vnez %v8621_v15  ;;  %4153 = vmatmul.mubr.msk.bf16.gmra.mrb[12].mxu0 %vm8741_vm0, %v6849_v17  ;;  %vm8745_vm0 = vnez %v8658_v38 }
  0x9e   :  { %1625 = vmatprep.mubr.bf16.mxu0 %v8489_v35 }
  0xa0   :  { %4082 = vmatpush1.bf16.msk.msra.mxu1 %vm6537_vm15, %v8283_v56 }
  0xa1   :  { %4084 = vmatprep.subr.msk.bf16.mxu1 %vm8738_vm11, %v8283_v56  ;;  %vm8743_vm11 = vnez %v8637_v24 }
  0xa4   :  { %4086 = vmatpush1.bf16.msk.msra.mxu1 %vm8739_vm4, %v8283_v56  ;;  %vm8742_vm4 = vnez %v8632_v21 }
  0xa5   :  { %4088 = vmatprep.subr.msk.bf16.mxu1 %vm8740_vm12, %v8283_v56  ;;  %vm8744_vm12 = vnez %v8643_v25 }
  0xa8   :  { %4090 = vmatpush1.bf16.msk.msra.mxu1 %vm6583_vm8, %v8283_v56 }
  0xa9   :  { %4092 = vmatprep.subr.msk.bf16.mxu1 %vm8742_vm4, %v8283_v56  ;;  %vm8746_vm4 = vnez %v8663_v39 }
  0xac   :  { %4094 = vmatpush1.bf16.msk.msra.mxu1 %vm8743_vm11, %v8283_v56 }
  0xad   :  { %4096 = vmatprep.subr.msk.bf16.mxu1 %vm8744_vm12, %v8283_v56  ;;  %vm8747_vm12 = vnez %v8673_v45 }
  0xb0   :  { %4098 = vmatpush1.bf16.msk.msra.mxu1 %vm6629_vm13, %v8283_v56  ;;  %vm8748_vm13 = vnez %v8678_v50 }
  0xb1   :  { %4100 = vmatprep.subr.msk.bf16.mxu1 %vm6639_vm10, %v8283_v56  ;;  %vm8749_vm10 = vnez %v8684_v51 }
  0xb4   :  { %4102 = vmatpush1.bf16.msk.msra.mxu1 %vm8745_vm0, %v8283_v56 }
  0xb5   :  { %4104 = vmatprep.subr.msk.bf16.mxu1 %vm8746_vm4, %v8283_v56 }
  0xb8   :  { %4106 = vmatpush1.bf16.msk.msra.mxu1 %vm6675_vm6, %v8283_v56  ;;  %vm8750_vm6 = vnez %v8699_v59 }
  0xb9   :  { %4108 = vmatprep.subr.msk.bf16.mxu1 %vm8747_vm12, %v8283_v56  ;;  %vm8751_vm12 = vnez %v8704_v61 }
  0xbc   :  { %4110 = vmatpush1.bf16.msk.msra.mxu1 %vm8748_vm13, %v8283_v56 }
  0xbd   :  { %4112 = vmatprep.subr.msk.bf16.mxu1 %vm8749_vm10, %v8283_v56  ;;  %vm8752_vm10 = vnez %v8714_v2  ;;  %v4141_v2 = vcombine.high %v1234_v62, %v1234_v62 }
  0xc0   :  { %4114 = vmatpush1.bf16.msk.msra.mxu1 %vm6721_vm5, %v8283_v56 }
  0xc1   :  { %4116 = vmatprep.subr.msk.bf16.mxu1 %vm6731_vm1, %v8283_v56  ;;  %vm8753_vm1 = vnez %v8719_v63  ;;  %v4137_v63 = vcombine.high %v1232_v52, %v1232_v52 }
  0xc4   :  { %4118 = vmatpush1.bf16.msk.msra.mxu1 %vm8750_vm6, %v8283_v56 }
  0xc5   :  { %4120 = vmatprep.subr.msk.bf16.mxu1 %vm8751_vm12, %v8283_v56  ;;  %vm8786_vm12 = vnez %v8414_v3  ;;  %v8795_v3 = vld [vmem:[#allocation69_spill] sm:$0xff] }
  0xc8   :  { %4122 = vmatpush1.bf16.msk.msra.mxu1 %vm6767_vm14, %v8283_v56 }
  0xc9   :  { %4124 = vmatprep.subr.msk.bf16.mxu1 %vm8752_vm10, %v8283_v56  ;;  %vm8754_vm10 = vcmask 1042432  }
  0xca   :  { %vm8755_vm14 = vmmov %vm8754_vm10 }
  0xcb   :  { %v1280_v1 = vsel %vm8755_vm14, %v4134_v6, 0 }
  0xcc   :  { %4126 = vmatpush1.bf16.msk.msra.mxu1 %vm8753_vm1, %v8283_v56 }
  0xcd   :  { %4128 = vmatprep.subr.msk.bf16.mxu1 %vm6800_vm2, %v8283_v56  ;;  %vm8756_vm2 = vmmov %vm8754_vm10 }
  0xce   :  { %vm8757_vm1 = vmmov %vm8756_vm2 }
  0xcf   :  { %v1286_v47 = vsel %vm8757_vm1, %v4136_v26, 0  ;;  %vm8759_vm14 = vmmov %vm8757_vm1 }
  0xd0   :  { %4130 = vmatpush1.bf16.msk.msra.mxu1 %vm6813_vm9, %v8283_v56 }
  0xd1   :  { %4142 = vmatprep.subr.msk.bf16.mxu1 %vm8754_vm10, %v4135_v29  ;;  %vm8758_vm10 = vcmask 48128  }
  0xd2   :  { %vm8760_vm9 = vmmov %vm8758_vm10 }
  0xd3   :  { %1201 = vmatmul.mubr.bf16.vlgmr.msra.gmra.mrb[8].mxu1 %v5533_v60  ;;  %v4140_v60 = vcombine.low %v1234_v62, %v1234_v62  ;;  %v2195_v62 = vld [vmem:[%s7910_s8 + $0x8] sm:$0xff] }
  0xd4   :  { %1304 = vmatpush1.bf16.msra.mxu1 %v1280_v1  ;;  %1335 = vmatprep.mubr.bf16.mxu1 %v8489_v35  ;;  %v2194_v1 = vld [vmem:[%s7910_s8] sm:$0xff] }
  0xd5   :  { %4146 = vmatprep.subr.msk.bf16.mxu1 %vm8756_vm2, %v4137_v63  ;;  %vm8761_vm2 = vmmov %vm8760_vm9  ;;  %v1298_v63 = vsel %vm8757_vm1, %v4140_v60, 0  ;;  %2201 = vperm.xlu0 %4588, %v2194_v1   ;;  %v6986_v60 = vld [vmem:[%s8769_s30 + $0x8] sm:$0xff]  }
  0xd6   :  { %vm8765_vm1 = vmmov %vm8761_vm2 }
  0xd9   :  { %2206 = vperm.xlu0 %4588, %v2195_v62   ;;  %v2197_v62 = vld [vmem:[%s7910_s8 + $0x18] sm:$0xff] }
  0xdb   :  { %4143 = vmatmul.mubr.msk.bf16.vlgmr.msra.gmra.mrb[12].mxu1 %vm8758_vm10, %v6318_v22  ;;  %vm8762_vm10 = vmmov %vm8761_vm2 }
  0xdc   :  { %1345 = vmatprep.mubr.bf16.mxu1 %v8489_v35  ;;  %1365 = vmatpush1.bf16.msra.mxu1 %v1286_v47 }
  0xdd   :  { %4154 = vmatprep.subr.msk.bf16.mxu1 %vm8759_vm14, %v4141_v2  ;;  %vm8763_vm14 = vmmov %vm8761_vm2 }
  0xe3   :  { %4144 = vmatmul.mubr.msk.bf16.gmra.mrb[16].mxu1 %vm8760_vm9, %v6410_v30  ;;  %vm8764_vm9 = vmmov %vm8761_vm2 }
  0xe4   :  { %1355 = vmatprep.mubr.bf16.mxu1 %v8489_v35 }
  0xeb   :  { %4145 = vmatmul.mubr.msk.bf16.gmra.mrb[20].mxu1 %vm8761_vm2, %v6849_v17 }
  0xec   :  { %1396 = vmatprep.mubr.bf16.mxu1 %v8489_v35 }
  0xf3   :  { %4147 = vmatmul.mubr.msk.bf16.vlgmr.msra.gmra.mrb[24].mxu1 %vm8762_vm10, %v6318_v22  ;;  %vm8766_vm10 = vmmov %vm8765_vm1 }
  0xf4   :  { %1406 = vmatprep.mubr.bf16.mxu1 %v8489_v35  ;;  %1487 = vmatpush1.bf16.msra.mxu1 %v1298_v63 }
  0xfb   :  { %4148 = vmatmul.mubr.msk.bf16.gmra.mrb[28].mxu1 %vm8763_vm14, %v6410_v30  ;;  %vm8767_vm14 = vcmask 1042432  }
  0xfc   :  { %1416 = vmatprep.mubr.bf16.mxu1 %v8489_v35 }
 0x103   :  { %4149 = vmatmul.mubr.msk.bf16.gmra.mrb[32].mxu1 %vm8764_vm9, %v6849_v17  ;;  %vm8768_vm9 = vmmov %vm8767_vm14 }
 0x104   :  { %1518 = vmatprep.mubr.bf16.mxu1 %v8489_v35 }
 0x10b   :  { %4155 = vmatmul.mubr.msk.bf16.vlgmr.msra.gmra.mrb[36].mxu1 %vm8761_vm2, %v6318_v22  ;;  %vm8770_vm2 = vmmov %vm8765_vm1 }
 0x10c   :  { %1528 = vmatprep.mubr.bf16.mxu1 %v8489_v35 }
 0x113   :  { %4156 = vmatmul.mubr.msk.bf16.gmra.mrb[40].mxu1 %vm8765_vm1, %v6410_v30  ;;  %v6969_v30 = vld [vmem:[%s8769_s30] sm:$0xff]  }
 0x114   :  { %1538 = vmatprep.mubr.bf16.mxu1 %v8489_v35 }
 0x11b   :  { %4157 = vmatmul.mubr.msk.bf16.gmra.mrb[44].mxu1 %vm8766_vm10, %v6849_v17  ;;  %v1209_v17 = vld [vmem:[%s7909_s3] sm:$0xff]  ;;  %vm8771_vm10 = vmmov %vm8768_vm9 }
 0x11c   :  { %1686 = vmatprep.mubr.bf16.mxu1 %v8489_v35  ;;  %v1846_v63 = vcombine.high %v1209_v17, %v1209_v17 }
 0x123   :  { %v1079_v2 = vpop.f32.mrb[0].mxu1 }
 0x124   :  { %v1218_v26 = vpack.c.bf16 %v1079_v2, %v1079_v2  ;;  %v1081_v47 = vpop.f32.mrb[1].mxu1 }
 0x125   :  { %v1219_v29 = vpack.c.bf16 %v1081_v47, %v1081_v47  ;;  %v1083_v6 = vpop.f32.mrb[2].mxu1 }
 0x126   :  { %v1570_v52 = vsel %vm8767_vm14, %v1218_v26, 0  ;;  %v1084_v22 = vpop.f32.mrb[3].mxu1  ;;  %v1855_v6 = vpack.c.bf16 %v1846_v63, %v1846_v63  ;;  %vm8159_vm14 = vcmask 1041408   ;;  %v7002_v63 = vld [vmem:[%s8769_s30 + $0x10] ss:$0 sps:$4 sm:$0xff]  }
 0x127   :  { %4161 = vmatprep.subr.msk.bf16.mxu0 %vm8768_vm9, %v1219_v29 }
 0x128   :  { %1594 = vmatpush1.bf16.msra.mxu0 %v1570_v52  ;;  %v2196_v52 = vld [vmem:[%s7910_s8 + $0x10] sm:$0xff] }
 0x129   :  { %2211 = vperm.xlu1 %4589, %v2196_v52   ;;  %v7028_v52 = vld [vmem:[%s7908_s7] sm:$0xff]  }
 0x12b   :  { %4162 = vmatmul.mubr.msk.bf16.vlgmr.msra.gmra.mrb[16].mxu0 %vm8770_vm2, %v6969_v30  ;;  %vm8772_vm2 = vmmov %vm8765_vm1 }
 0x12c   :  { %1635 = vmatprep.mubr.bf16.mxu0 %v8489_v35 }
 0x12d   :  { %2216 = vperm.xlu1 %4589, %v2197_v62  }
 0x133   :  { %v1161_v2 = vpop.f32.mrb[0].mxu0  ;;  %4163 = vmatmul.mubr.msk.bf16.gmra.mrb[20].mxu0 %vm8765_vm1, %v6986_v60 }
 0x134   :  { %v1222_v26 = vpack.c.bf16 %v1161_v2, %v1161_v2  ;;  %v1163_v47 = vpop.f32.mrb[1].mxu0  ;;  %1645 = vmatprep.mubr.bf16.mxu0 %v8489_v35  ;;  %v1211_v2 = vld [vmem:[%s7909_s3 + $0x10] sm:$0xff] }
 0x135   :  { %v1223_v29 = vpack.c.bf16 %v1163_v47, %v1163_v47  ;;  %v1165_v22 = vpop.f32.mrb[2].mxu0  ;;  %v1848_v47 = vcombine.high %v1211_v2, %v1211_v2 }
 0x136   :  { %v1582_v1 = vsel %vm8771_vm10, %v1222_v26, 0  ;;  %v1166_v0 = vpop.f32.mrb[3].mxu0  ;;  %v1854_v26 = vpack.c.bf16 %v1209_v17, %v1209_v17  ;;  %vm8773_vm10 = vmmov %vm8765_vm1  ;;  %v1858_v17 = vpack.c.bf16 %v1211_v2, %v1211_v2 }
 0x137   :  { %4169 = vmatprep.subr.msk.bf16.mxu0 %vm8768_vm9, %v1223_v29  ;;  %v2198_v0 = vld [vmem:[%s7910_s8 + $0x20] sm:$0xff]  ;;  %vm8774_vm9 = vmmov %vm8765_vm1 }
 0x138   :  { %1716 = vmatpush1.bf16.msra.mxu0 %v1582_v1  ;;  %2221 = vperm.xlu0 %4588, %v2198_v0   ;;  %v1887_v29 = vsel %vm8159_vm14, %v1854_v26, 0  ;;  %v1899_v22 = vsel %vm8159_vm14, %v1858_v17, 0  ;;  %v7037_v1 = vld [vmem:[%s7908_s7 + $0x8] sm:$0xff]   ;;  %v7047_v17 = vld [vmem:[%s7908_s7 + $0x10] ss:$0 sps:$4 sm:$0xff]  }
 0x139   :  { %4180 = vmatprep.subr.msk.bf16.mxu0 %vm8159_vm14, %v1855_v6  ;;  %v1859_v6 = vpack.c.bf16 %v1848_v47, %v1848_v47 }
 0x13b   :  { %4164 = vmatmul.mubr.msk.bf16.gmra.mrb[24].mxu0 %vm8772_vm2, %v7002_v63  ;;  %vm8158_vm2 = vcmask 31744  }
 0x13c   :  { %1747 = vmatprep.mubr.bf16.mxu0 %v8489_v35 }
 0x143   :  { %4170 = vmatmul.mubr.msk.bf16.vlgmr.msra.gmra.mrb[4].mxu0 %vm8765_vm1, %v6969_v30  ;;  %vm8775_vm1 = vcmask 1042432  }
 0x144   :  { %1757 = vmatprep.mubr.bf16.mxu0 %v8489_v35  ;;  %1911 = vmatpush1.bf16.msra.mxu0 %v1887_v29 }
 0x145   :  { %4188 = vmatprep.subr.msk.bf16.mxu0 %vm8159_vm14, %v1859_v6 }
 0x14b   :  { %4171 = vmatmul.mubr.msk.bf16.gmra.mrb[8].mxu0 %vm8773_vm10, %v6986_v60  ;;  %vm8776_vm10 = vmmov %vm8775_vm1 }
 0x14c   :  { %1767 = vmatprep.mubr.bf16.mxu0 %v8489_v35 }
 0x153   :  { %4172 = vmatmul.mubr.msk.bf16.gmra.mrb[28].mxu0 %vm8774_vm9, %v7002_v63 }
 0x154   :  { %1942 = vmatprep.mubr.bf16.mxu0 %v8489_v35  ;;  %v7186_v15 = vpop.permute.xlu0 %2201 }
 0x15b   :  { %4181 = vmatmul.mubr.msk.bf16.vlgmr.msra.gmra.mrb[16].mxu0 %vm8158_vm2, %v7028_v52 }
 0x15c   :  { %1952 = vmatprep.mubr.bf16.mxu0 %v8489_v35  ;;  %2033 = vmatpush1.bf16.msra.mxu0 %v1899_v22  ;;  %v2334_v22 = vld [vmem:[%s7911_s10 + $0x8] sm:$0xff] }
 0x15d   :  { %2345 = vperm.xlu0 %4588, %v2334_v22  }
 0x163   :  { %4182 = vmatmul.mubr.msk.bf16.gmra.mrb[20].mxu0 %vm8158_vm2, %v7037_v1 }
 0x164   :  { %1962 = vmatprep.mubr.bf16.mxu0 %v8489_v35 }
 0x166   :  { %v1120_v62 = vpop.f32.mrb[4].mxu1 }
 0x167   :  { %v1220_v2 = vpack.c.bf16 %v1120_v62, %v1120_v62  ;;  %v1122_v0 = vpop.f32.mrb[5].mxu1  ;;  %v2333_v62 = vld [vmem:[%s7911_s10] sm:$0xff] }
 0x168   :  { %v1221_v26 = vpack.c.bf16 %v1122_v0, %v1122_v0  ;;  %v1124_v47 = vpop.f32.mrb[6].mxu1  ;;  %2340 = vperm.xlu1 %4589, %v2333_v62   ;;  %v2335_v0 = vld [vmem:[%s7911_s10 + $0x10] sm:$0xff] }
 0x169   :  { %v1576_v29 = vsel %vm8775_vm1, %v1220_v2, 0  ;;  %v1125_v6 = vpop.f32.mrb[7].mxu1  ;;  %v2336_v2 = vld [vmem:[%s7911_s10 + $0x18] sm:$0xff]  ;;  %v2337_v47 = vld [vmem:[%s7911_s10 + $0x20] sm:$0xff]  ;;  %vm8777_vm1 = vmmov %vm8774_vm9 }
 0x16a   :  { %4165 = vmatprep.subr.msk.bf16.mxu1 %vm8776_vm10, %v1221_v26  ;;  %2355 = vperm.xlu0 %4588, %v2336_v2   ;;  %v2720_v26 = vld [vmem:[%s7912_s12] sm:$0xf]  ;;  %vm8778_vm10 = vmmov %vm8777_vm1 }
 0x16b   :  { %1655 = vmatpush1.bf16.msra.mxu1 %v1576_v29  ;;  %4183 = vmatmul.mubr.msk.bf16.gmra.mrb[32].mxu0 %vm8158_vm2, %v7047_v17  ;;  %v3344_v29 = vld [vmem:[%s7913_s15 + $0x8] sm:$0xff]  ;;  %v3343_v6 = vld [vmem:[%s7913_s15] sm:$0xff] }
 0x16c   :  { %2064 = vmatprep.mubr.bf16.mxu0 %v8489_v35  ;;  %2350 = vperm.xlu1 %4589, %v2335_v0  }
 0x16e   :  { %4166 = vmatmul.mubr.msk.bf16.vlgmr.msra.gmra.mrb[24].mxu1 %vm8774_vm9, %v6969_v30  ;;  %2723 = vperm.xlu0 %4588, %v2720_v26   ;;  %v3346_v26 = vld [vmem:[%s7913_s15 + $0x18] sm:$0xff]  ;;  %vm8779_vm9 = vcmask 1042432  }
 0x16f   :  { %1696 = vmatprep.mubr.bf16.mxu1 %v8489_v35 }
 0x170   :  { %2360 = vperm.xlu1 %4589, %v2337_v47   ;;  %v7085_v22 = vpop.f32.mrb[12].mxu0  ;;  %v3345_v47 = vld [vmem:[%s7913_s15 + $0x10] sm:$0xff] }
 0x171   :  { %v7087_v62 = vpop.f32.mrb[13].mxu0 }
 0x172   :  { %v1483_v2 = vpop.f32.mrb[14].mxu0  ;;  %3355 = vperm.xlu0 %4588, %v3344_v29   ;;  %v3404_v29 = vld [vmem:[%s7914_s17] sm:$0xff] }
 0x173   :  { %4189 = vmatmul.mubr.msk.bf16.vlgmr.msra.gmra.mrb[4].mxu0 %vm8158_vm2, %v7028_v52  ;;  %v1484_v0 = vpop.f32.mrb[15].mxu0  ;;  %v3406_v2 = vld [vmem:[%s7914_s17 + $0x10] sm:$0xff] }
 0x174   :  { %2074 = vmatprep.mubr.bf16.mxu0 %v8489_v35  ;;  %3350 = vperm.xlu1 %4589, %v3343_v6   ;;  %v3347_v6 = vld [vmem:[%s7913_s15 + $0x20] sm:$0xff]  ;;  %v3405_v0 = vld [vmem:[%s7914_s17 + $0x8] sm:$0xff] }
 0x176   :  { %4167 = vmatmul.mubr.msk.bf16.gmra.mrb[28].mxu1 %vm8777_vm1, %v6986_v60  ;;  %3365 = vperm.xlu0 %4588, %v3346_v26   ;;  %v3408_v26 = vld [vmem:[%s7914_s17 + $0x20] sm:$0xff]  ;;  %vm8780_vm1 = vmmov %vm8779_vm9 }
 0x177   :  { %1706 = vmatprep.mubr.bf16.mxu1 %v8489_v35 }
 0x178   :  { %3360 = vperm.xlu1 %4589, %v3345_v47   ;;  %v3407_v47 = vld [vmem:[%s7914_s17 + $0x18] sm:$0xff] }
 0x17a   :  { %3411 = vperm.xlu0 %4588, %v3404_v29   ;;  %v1210_v29 = vld [vmem:[%s7909_s3 + $0x8] sm:$0xff] }
 0x17b   :  { %4190 = vmatmul.mubr.msk.bf16.gmra.mrb[8].mxu0 %vm8158_vm2, %v7037_v1  ;;  %v1856_v51 = vpack.c.bf16 %v1210_v29, %v1210_v29 }
 0x17c   :  { %2084 = vmatprep.mubr.bf16.mxu0 %v8489_v35  ;;  %3370 = vperm.xlu1 %4589, %v3347_v6   ;;  %v1847_v6 = vcombine.high %v1210_v29, %v1210_v29 }
 0x17d   :  { %v1893_v39 = vsel %vm8159_vm14, %v1856_v51, 0 }
 0x17e   :  { %4168 = vmatmul.mubr.msk.bf16.gmra.mrb[48].mxu1 %vm8778_vm10, %v7002_v63  ;;  %3421 = vperm.xlu0 %4588, %v3406_v2   ;;  %v3540_v2 = vld [vmem:[%s7915_s19] sm:$0x3f] }
 0x17f   :  { %1808 = vmatprep.mubr.bf16.mxu1 %v8489_v35 }
 0x180   :  { %3416 = vperm.xlu1 %4589, %v3405_v0   ;;  %v1212_v0 = vld [vmem:[%s7909_s3 + $0x18] sm:$0xff] }
 0x181   :  { %v1849_v50 = vcombine.high %v1212_v0, %v1212_v0 }
 0x182   :  { %3431 = vperm.xlu0 %4588, %v3408_v26  }
 0x183   :  { %4191 = vmatmul.mubr.msk.bf16.gmra.mrb[36].mxu0 %vm8158_vm2, %v7047_v17  ;;  %v1861_v38 = vpack.c.bf16 %v1849_v50, %v1849_v50 }
 0x184   :  { %2443 = vmatprep.mubr.bf16.mxu0 %v8489_v35  ;;  %3426 = vperm.xlu1 %4589, %v3407_v47   ;;  %v1857_v47 = vpack.c.bf16 %v1847_v6, %v1847_v6 }
 0x188   :  { %3543 = vperm.xlu1 %4589, %v3540_v2  }
 0x1a6   :  { %v1202_v26 = vpop.f32.mrb[8].mxu1 }
 0x1a7   :  { %v1224_v61 = vpack.c.bf16 %v1202_v26, %v1202_v26  ;;  %v1204_v59 = vpop.f32.mrb[9].mxu1 }
 0x1a8   :  { %v1225_v57 = vpack.c.bf16 %v1204_v59, %v1204_v59  ;;  %v1206_v54 = vpop.f32.mrb[10].mxu1 }
 0x1a9   :  { %v1588_v45 = vsel %vm8779_vm9, %v1224_v61, 0  ;;  %v1207_v44 = vpop.f32.mrb[11].mxu1  ;;  %vm8781_vm9 = vmmov %vm8778_vm10  ;;  %v1860_v61 = vpack.c.bf16 %v1212_v0, %v1212_v0 }
 0x1aa   :  { %4173 = vmatprep.subr.msk.bf16.mxu1 %vm8780_vm1, %v1225_v57  ;;  %vm8782_vm1 = vmmov %vm8781_vm9 }
 0x1ab   :  { %1777 = vmatpush1.bf16.msra.mxu1 %v1588_v45  ;;  %v1905_v29 = vsel %vm8159_vm14, %v1860_v61, 0 }
 0x1ac   :  { %4184 = vmatprep.subr.msk.bf16.mxu1 %vm8159_vm14, %v1857_v47 }
 0x1ae   :  { %4174 = vmatmul.mubr.msk.bf16.vlgmr.msra.gmra.mrb[36].mxu1 %vm8778_vm10, %v6969_v30  ;;  %v1337_v2 = vpop.f32.mrb[12].mxu1  ;;  %vm8160_vm10 = vcmask 1043456  }
 0x1af   :  { %1818 = vmatprep.mubr.bf16.mxu1 %v8489_v35  ;;  %1972 = vmatpush1.bf16.msra.mxu1 %v1893_v39  ;;  %v1339_v54 = vpop.f32.mrb[13].mxu1 }
 0x1b0   :  { %4192 = vmatprep.subr.msk.bf16.mxu1 %vm8159_vm14, %v1861_v38  ;;  %v1341_v59 = vpop.f32.mrb[14].mxu1  ;;  %vm8785_vm14 = vnez %v8405_v53  ;;  %v8793_v53 = vld [vmem:[#allocation67_spill] sm:$0xff] }
 0x1b1   :  { %v1343_v44 = vpop.f32.mrb[15].mxu1 }
 0x1b6   :  { %4175 = vmatmul.mubr.msk.bf16.gmra.mrb[40].mxu1 %vm8781_vm9, %v6986_v60  ;;  %v7141_v45 = vpop.f32.mrb[16].mxu1  ;;  %vm8161_vm9 = vcmask 326656  }
 0x1b7   :  { %1828 = vmatprep.mubr.bf16.mxu1 %v8489_v35  ;;  %v7144_v50 = vpop.f32.mrb[17].mxu1 }
 0x1b8   :  { %v7146_v51 = vpop.f32.mrb[18].mxu1 }
 0x1b9   :  { %v7148_v57 = vpop.f32.mrb[19].mxu1 }
 0x1be   :  { %4176 = vmatmul.mubr.msk.bf16.gmra.mrb[52].mxu1 %vm8782_vm1, %v7002_v63  ;;  %v1357_v39 = vpop.f32.mrb[20].mxu1  ;;  %vm8783_vm1 = vnez %v8387_v11  ;;  %v8789_v11 = vld [vmem:[#allocation63_spill] sm:$0xff] }
 0x1bf   :  { %2003 = vmatprep.mubr.bf16.mxu1 %v8489_v35  ;;  %v1359_v38 = vpop.f32.mrb[21].mxu1 }
 0x1c0   :  { %v1361_v30 = vpop.f32.mrb[22].mxu1 }
 0x1c1   :  { %v1362_v60 = vpop.f32.mrb[23].mxu1 }
 0x1c6   :  { %4185 = vmatmul.mubr.msk.bf16.vlgmr.msra.gmra.mrb[24].mxu1 %vm8158_vm2, %v7028_v52 }
 0x1c7   :  { %2013 = vmatprep.mubr.bf16.mxu1 %v8489_v35  ;;  %2094 = vmatpush1.bf16.msra.mxu1 %v1905_v29 }
 0x1ce   :  { %4186 = vmatmul.mubr.msk.bf16.gmra.mrb[28].mxu1 %vm8158_vm2, %v7037_v1 }
 0x1cf   :  { %2023 = vmatprep.mubr.bf16.mxu1 %v8489_v35 }
 0x1d6   :  { %4187 = vmatmul.mubr.msk.bf16.gmra.mrb[56].mxu1 %vm8158_vm2, %v7047_v17  ;;  %v7162_v63 = vpop.f32.mrb[32].mxu1 }
 0x1d7   :  { %2125 = vmatprep.mubr.bf16.mxu1 %v8489_v35  ;;  %v7165_v6 = vpop.f32.mrb[33].mxu1 }
 0x1d8   :  { %v1422_v0 = vpop.f32.mrb[34].mxu1 }
 0x1d9   :  { %v1423_v26 = vpop.f32.mrb[35].mxu1 }
 0x1de   :  { %4193 = vmatmul.mubr.msk.bf16.vlgmr.msra.gmra.mrb[36].mxu1 %vm8158_vm2, %v7028_v52 }
 0x1df   :  { %2135 = vmatprep.mubr.bf16.mxu1 %v8489_v35 }
 0x1e6   :  { %4194 = vmatmul.mubr.msk.bf16.gmra.mrb[40].mxu1 %vm8158_vm2, %v7037_v1 }
 0x1e7   :  { %2145 = vmatprep.mubr.bf16.mxu1 %v8489_v35 }
 0x1ee   :  { %4195 = vmatmul.mubr.msk.bf16.gmra.mrb[60].mxu1 %vm8158_vm2, %v7047_v17  ;;  %v7175_v47 = vpop.f32.mrb[44].mxu1  ;;  %vm8784_vm2 = vnez %v8396_v43  ;;  %v8791_v43 = vld [vmem:[#allocation65_spill] sm:$0xff] }
 0x1ef   :  { %v7177_v61 = vpop.f32.mrb[45].mxu1  ;;  %2504 = vmatprep.mubr.bf16.mxu1 %v8489_v35 }
 0x1f0   :  { %v1544_v30 = vpop.f32.mrb[46].mxu1 }
 0x1f1   :  { %v1545_v60 = vpop.f32.mrb[47].mxu1 }
 0x20e   :  { %v1647_v29 = vpop.f32.mrb[24].mxu0 }
 0x20f   :  { %v1649_v52 = vpop.f32.mrb[25].mxu0  ;;  %v1648_v0 = vadd.f32 %v1647_v29, %v1357_v39  ;;  %v7188_v29 = vpop.permute.xlu0 %2206 }
 0x210   :  { %v1651_v26 = vpop.f32.mrb[26].mxu0  ;;  %v1650_v31 = vadd.f32 %v1649_v52, %v1359_v38 }
 0x211   :  { %v1652_v28 = vpop.f32.mrb[27].mxu0 }
 0x226   :  { %v1769_v1 = vpop.f32.mrb[28].mxu0 }
 0x227   :  { %v7181_v25 = vadd.f32 %v1769_v1, %v7085_v22  ;;  %v1771_v24 = vpop.f32.mrb[29].mxu0 }
 0x228   :  { %v7184_v17 = vadd.f32 %v1771_v24, %v7087_v62  ;;  %v1773_v21 = vpop.f32.mrb[30].mxu0  ;;  %v7192_v24 = vpop.permute.xlu1 %2211 }
 0x229   :  { %v1774_v20 = vpop.f32.mrb[31].mxu0 }
 0x22e   :  { %v1944_v30 = vpop.f32.mrb[16].mxu0 }
 0x22f   :  { %v4503_v60 = vadd.f32 %v1944_v30, %v1337_v2  ;;  %v1946_v14 = vpop.f32.mrb[17].mxu0 }
 0x230   :  { %v4504_v13 = vadd.f32 %v1946_v14, %v1339_v54  ;;  %v1948_v39 = vpop.f32.mrb[18].mxu0 }
 0x231   :  { %v2224_v28 = vadd.f32 %v4503_v60, %v7186_v15  ;;  %v4505_v38 = vadd.f32 %v1948_v39, %v1341_v59  ;;  %v1950_v22 = vpop.f32.mrb[19].mxu0 }
 0x232   :  { %v2225_v52 = vadd.f32 %v4504_v13, %v7186_v15  ;;  %v4506_v26 = vadd.f32 %v1950_v22, %v1343_v44  ;;  %v7198_v13 = vpop.permute.xlu1 %2216 }
 0x233   :  { %v2232_v20 = vadd.f32 %v4505_v38, %v7188_v29  ;;  %v2264_v62 = vmax.f32 %v2224_v28, 0.0 }
 0x234   :  { %v2233_v21 = vadd.f32 %v4506_v26, %v7188_v29  ;;  %v2265_v1 = vmax.f32 %v2225_v52, 0.0 }
 0x235   :  { %v2272_v2 = vmax.f32 %v2232_v20, 0.0 }
 0x236   :  { %v1954_v14 = vpop.f32.mrb[20].mxu0  ;;  %v2273_v54 = vmax.f32 %v2233_v21, 0.0 }
 0x237   :  { %v4507_v30 = vadd.f32 %v1954_v14, %v7141_v45  ;;  %v1956_v12 = vpop.f32.mrb[21].mxu0  ;;  %v2304_v60 = vpack.c.bf16 %v2272_v2, %v2264_v62  ;;  %v7206_v2 = vpop.permute.xlu0 %2221 }
 0x238   :  { %v4508_v59 = vadd.f32 %v1956_v12, %v7144_v50  ;;  %v1958_v39 = vpop.f32.mrb[22].mxu0  ;;  %v2305_v44 = vpack.c.bf16 %v2273_v54, %v2265_v1 }
 0x239   :  { %v2240_v22 = vadd.f32 %v4507_v30, %v7192_v24  ;;  %v4509_v38 = vadd.f32 %v1958_v39, %v7146_v51  ;;  %v1960_v26 = vpop.f32.mrb[23].mxu0 }
 0x23a   :  { %v2241_v28 = vadd.f32 %v4508_v59, %v7192_v24  ;;  %v4510_v52 = vadd.f32 %v1960_v26, %v7148_v57  ;;  %2411 = vmatprep.subr.bf16.mxu0 %v2305_v44 }
 0x23b   :  { %2412 = vmatpush1.bf16.msra.mxu0 %v2304_v60  ;;  %v2248_v45 = vadd.f32 %v4509_v38, %v7198_v13  ;;  %v2280_v12 = vmax.f32 %v2240_v22, 0.0 }
 0x23c   :  { %v2249_v20 = vadd.f32 %v4510_v52, %v7198_v13  ;;  %v2281_v21 = vmax.f32 %v2241_v28, 0.0 }
 0x23d   :  { %v2288_v50 = vmax.f32 %v2248_v45, 0.0 }
 0x23e   :  { %v1964_v62 = vpop.f32.mrb[32].mxu0  ;;  %v2289_v1 = vmax.f32 %v2249_v20, 0.0  ;;  %v7216_v20 = vld [vmem:[%s7916_s9] sm:$0xff]  }
 0x23f   :  { %v2186_v14 = vadd.f32 %v1964_v62, %v1648_v0  ;;  %v1966_v51 = vpop.f32.mrb[33].mxu0  ;;  %v2312_v54 = vpack.c.bf16 %v2288_v50, %v2280_v12 }
 0x240   :  { %v2187_v30 = vadd.f32 %v1966_v51, %v1650_v31  ;;  %v2313_v59 = vpack.c.bf16 %v2289_v1, %v2281_v21  ;;  %v1968_v39 = vpop.f32.mrb[34].mxu0 }
 0x241   :  { %v2256_v57 = vadd.f32 %v7206_v2, %v2186_v14  ;;  %v1969_v60 = vpop.f32.mrb[35].mxu0 }
 0x242   :  { %2413 = vmatprep.subr.bf16.mxu0 %v2313_v59  ;;  %v2257_v44 = vadd.f32 %v7206_v2, %v2187_v30 }
 0x243   :  { %2414 = vmatpush1.bf16.msra.mxu0 %v2312_v54  ;;  %v2296_v22 = vmax.f32 %v2256_v57, 0.0 }
 0x244   :  { %v2297_v38 = vmax.f32 %v2257_v44, 0.0 }
 0x245   :  { %v2320_v26 = vpack.c.bf16 %v2296_v22, %v2296_v22 }
 0x246   :  { %v2321_v28 = vpack.c.bf16 %v2297_v38, %v2297_v38  ;;  %v2066_v52 = vpop.f32.mrb[4].mxu0 }
 0x247   :  { %v2388_v0 = vsel %vm8160_vm10, %v2320_v26, 0  ;;  %v2228_v45 = vadd.f32 %v7186_v15, %v2066_v52  ;;  %v2068_v31 = vpop.f32.mrb[5].mxu0 }
 0x248   :  { %4199 = vmatprep.subr.msk.bf16.mxu0 %vm8160_vm10, %v2321_v28  ;;  %v2229_v12 = vadd.f32 %v7186_v15, %v2068_v31  ;;  %v2070_v50 = vpop.f32.mrb[6].mxu0 }
 0x249   :  { %2416 = vmatpush1.bf16.msra.mxu0 %v2388_v0  ;;  %v2268_v21 = vmax.f32 %v2228_v45, 0.0  ;;  %v2236_v62 = vadd.f32 %v7188_v29, %v2070_v50  ;;  %v2072_v1 = vpop.f32.mrb[7].mxu0  ;;  %v7235_v45 = vld [vmem:[%s7916_s9 + $0x8] sm:$0xff]  }
 0x24a   :  { %v2269_v14 = vmax.f32 %v2229_v12, 0.0  ;;  %v2237_v51 = vadd.f32 %v7188_v29, %v2072_v1 }
 0x24b   :  { %v2276_v54 = vmax.f32 %v2236_v62, 0.0 }
 0x24c   :  { %4200 = vmatmul.mubr.msk.bf16.vlgmr.msra.gmra.mrb[40].mxu0 %vm8161_vm9, %v7216_v20  ;;  %v2277_v30 = vmax.f32 %v2237_v51, 0.0 }
 0x24d   :  { %v2308_v59 = vpack.c.bf16 %v2276_v54, %v2268_v21  ;;  %2453 = vmatprep.mubr.bf16.mxu0 %v8489_v35 }
 0x24e   :  { %v2309_v39 = vpack.c.bf16 %v2277_v30, %v2269_v14  ;;  %v2076_v57 = vpop.f32.mrb[8].mxu0 }
 0x24f   :  { %v2244_v44 = vadd.f32 %v7192_v24, %v2076_v57  ;;  %v2078_v38 = vpop.f32.mrb[9].mxu0 }
 0x250   :  { %v2245_v28 = vadd.f32 %v7192_v24, %v2078_v38  ;;  %v2080_v0 = vpop.f32.mrb[10].mxu0  ;;  %2533 = vmatprep.subr.bf16.mxu0 %v2309_v39 }
 0x251   :  { %v1708_v60 = vpop.f32.mrb[48].mxu1  ;;  %v2284_v12 = vmax.f32 %v2244_v44, 0.0  ;;  %v2252_v50 = vadd.f32 %v7198_v13, %v2080_v0  ;;  %2534 = vmatpush1.bf16.msra.mxu0 %v2308_v59  ;;  %v7247_v59 = vld [vmem:[%s7916_s9 + $0x10] ss:$0 sps:$4 sm:$0xff]  }
 0x252   :  { %v7226_v22 = vadd.f32 %v1708_v60, %v7162_v63  ;;  %v1710_v26 = vpop.f32.mrb[49].mxu1  ;;  %v2082_v63 = vpop.f32.mrb[11].mxu0  ;;  %v2285_v62 = vmax.f32 %v2245_v28, 0.0 }
 0x253   :  { %v7230_v52 = vadd.f32 %v1710_v26, %v7165_v6  ;;  %v1712_v31 = vpop.f32.mrb[50].mxu1  ;;  %v2253_v1 = vadd.f32 %v7198_v13, %v2082_v63  ;;  %v2292_v14 = vmax.f32 %v2252_v50, 0.0 }
 0x254   :  { %v1713_v21 = vpop.f32.mrb[51].mxu1  ;;  %4201 = vmatmul.mubr.msk.bf16.gmra.mrb[44].mxu0 %vm8161_vm9, %v7235_v45 }
 0x255   :  { %v2293_v6 = vmax.f32 %v2253_v1, 0.0  ;;  %v2316_v51 = vpack.c.bf16 %v2292_v14, %v2284_v12  ;;  %2463 = vmatprep.mubr.bf16.mxu0 %v8489_v35 }
 0x256   :  { %v2086_v30 = vpop.f32.mrb[36].mxu0 }
 0x257   :  { %v2317_v54 = vpack.c.bf16 %v2293_v6, %v2285_v62  ;;  %v2190_v39 = vadd.f32 %v2086_v30, %v7181_v25  ;;  %v2088_v57 = vpop.f32.mrb[37].mxu0 }
 0x258   :  { %v2191_v60 = vadd.f32 %v2088_v57, %v7184_v17  ;;  %v2090_v44 = vpop.f32.mrb[38].mxu0 }
 0x259   :  { %2535 = vmatprep.subr.bf16.mxu0 %v2317_v54  ;;  %v2260_v38 = vadd.f32 %v7206_v2, %v2190_v39  ;;  %v2091_v26 = vpop.f32.mrb[39].mxu0 }
 0x25a   :  { %2536 = vmatpush1.bf16.msra.mxu0 %v2316_v51  ;;  %v2261_v28 = vadd.f32 %v7206_v2, %v2191_v60 }
 0x25b   :  { %v2300_v0 = vmax.f32 %v2260_v38, 0.0 }
 0x25c   :  { %v2301_v31 = vmax.f32 %v2261_v28, 0.0  ;;  %4202 = vmatmul.mubr.msk.bf16.gmra.mrb[48].mxu0 %vm8161_vm9, %v7247_v59 }
 0x25d   :  { %v2324_v25 = vpack.c.bf16 %v2300_v0, %v2300_v0  ;;  %2565 = vmatprep.mubr.bf16.mxu0 %v8489_v35 }
 0x25e   :  { %v2325_v17 = vpack.c.bf16 %v2301_v31, %v2301_v31 }
 0x25f   :  { %v2400_v12 = vsel %vm8160_vm10, %v2324_v25, 0 }
 0x260   :  { %4207 = vmatprep.subr.msk.bf16.mxu0 %vm8160_vm10, %v2325_v17 }
 0x261   :  { %2538 = vmatpush1.bf16.msra.mxu0 %v2400_v12 }
 0x264   :  { %4208 = vmatmul.mubr.msk.bf16.vlgmr.msra.gmra.mrb[52].mxu0 %vm8161_vm9, %v7216_v20 }
 0x265   :  { %2575 = vmatprep.mubr.bf16.mxu0 %v8489_v35 }
 0x26c   :  { %4209 = vmatmul.mubr.msk.bf16.gmra.mrb[56].mxu0 %vm8161_vm9, %v7235_v45 }
 0x26d   :  { %2585 = vmatprep.mubr.bf16.mxu0 %v8489_v35 }
 0x274   :  { %4210 = vmatmul.mubr.msk.bf16.gmra.mrb[60].mxu0 %vm8161_vm9, %v7247_v59 }
 0x275   :  { %2785 = vmatprep.mubr.bf16.mxu0 %v8489_v35 }
 0x291   :  { %v1830_v50 = vpop.f32.mrb[52].mxu1 }
 0x292   :  { %v7266_v63 = vadd.f32 %v1830_v50, %v7175_v47  ;;  %v1832_v21 = vpop.f32.mrb[53].mxu1 }
 0x293   :  { %v7269_v62 = vadd.f32 %v1832_v21, %v7177_v61  ;;  %v1834_v1 = vpop.f32.mrb[54].mxu1 }
 0x294   :  { %v1835_v14 = vpop.f32.mrb[55].mxu1 }
 0x299   :  { %v2005_v6 = vpop.f32.mrb[24].mxu1 }
 0x29a   :  { %v2226_v51 = vadd.f32 %v7186_v15, %v2005_v6  ;;  %v2007_v54 = vpop.f32.mrb[25].mxu1 }
 0x29b   :  { %v2227_v30 = vadd.f32 %v7186_v15, %v2007_v54  ;;  %v2009_v39 = vpop.f32.mrb[26].mxu1 }
 0x29c   :  { %v2234_v57 = vadd.f32 %v7188_v29, %v2009_v39  ;;  %v2011_v60 = vpop.f32.mrb[27].mxu1  ;;  %v2266_v47 = vmax.f32 %v2226_v51, 0.0 }
 0x29d   :  { %v2235_v44 = vadd.f32 %v7188_v29, %v2011_v60  ;;  %v2267_v26 = vmax.f32 %v2227_v30, 0.0 }
 0x29e   :  { %v2274_v38 = vmax.f32 %v2234_v57, 0.0 }
 0x29f   :  { %v2275_v28 = vmax.f32 %v2235_v44, 0.0 }
 0x2a0   :  { %v2306_v61 = vpack.c.bf16 %v2274_v38, %v2266_v47 }
 0x2a1   :  { %v2307_v0 = vpack.c.bf16 %v2275_v28, %v2267_v26  ;;  %v2015_v31 = vpop.f32.mrb[28].mxu1 }
 0x2a2   :  { %v2242_v25 = vadd.f32 %v7192_v24, %v2015_v31  ;;  %v2017_v17 = vpop.f32.mrb[29].mxu1 }
 0x2a3   :  { %v2243_v12 = vadd.f32 %v7192_v24, %v2017_v17  ;;  %v2019_v50 = vpop.f32.mrb[30].mxu1  ;;  %2472 = vmatprep.subr.bf16.mxu1 %v2307_v0 }
 0x2a4   :  { %v2250_v21 = vadd.f32 %v7198_v13, %v2019_v50  ;;  %v2021_v1 = vpop.f32.mrb[31].mxu1  ;;  %2473 = vmatpush1.bf16.msra.mxu1 %v2306_v61  ;;  %v2282_v6 = vmax.f32 %v2242_v25, 0.0 }
 0x2a5   :  { %v2251_v14 = vadd.f32 %v7198_v13, %v2021_v1  ;;  %v2283_v54 = vmax.f32 %v2243_v12, 0.0 }
 0x2a6   :  { %v2290_v51 = vmax.f32 %v2250_v21, 0.0 }
 0x2a7   :  { %v2291_v30 = vmax.f32 %v2251_v14, 0.0 }
 0x2a8   :  { %v2314_v39 = vpack.c.bf16 %v2290_v51, %v2282_v6 }
 0x2a9   :  { %v2315_v57 = vpack.c.bf16 %v2291_v30, %v2283_v54  ;;  %v2025_v60 = vpop.f32.mrb[56].mxu1 }
 0x2aa   :  { %v2188_v44 = vadd.f32 %v2025_v60, %v7226_v22  ;;  %v2027_v47 = vpop.f32.mrb[57].mxu1 }
 0x2ab   :  { %v2189_v38 = vadd.f32 %v2027_v47, %v7230_v52  ;;  %2474 = vmatprep.subr.bf16.mxu1 %v2315_v57  ;;  %v2029_v26 = vpop.f32.mrb[58].mxu1 }
 0x2ac   :  { %v2258_v28 = vadd.f32 %v7206_v2, %v2188_v44  ;;  %2475 = vmatpush1.bf16.msra.mxu1 %v2314_v39  ;;  %v2030_v61 = vpop.f32.mrb[59].mxu1 }
 0x2ad   :  { %v2259_v0 = vadd.f32 %v7206_v2, %v2189_v38 }
 0x2ae   :  { %v2298_v31 = vmax.f32 %v2258_v28, 0.0 }
 0x2af   :  { %v2299_v25 = vmax.f32 %v2259_v0, 0.0 }
 0x2b0   :  { %v2322_v17 = vpack.c.bf16 %v2298_v31, %v2298_v31 }
 0x2b1   :  { %v2323_v12 = vpack.c.bf16 %v2299_v25, %v2299_v25  ;;  %v2127_v50 = vpop.f32.mrb[36].mxu1 }
 0x2b2   :  { %v2230_v21 = vadd.f32 %v7186_v15, %v2127_v50  ;;  %v2129_v1 = vpop.f32.mrb[37].mxu1  ;;  %v2394_v22 = vsel %vm8160_vm10, %v2322_v17, 0 }
 0x2b3   :  { %v2231_v52 = vadd.f32 %v7186_v15, %v2129_v1  ;;  %v2131_v14 = vpop.f32.mrb[38].mxu1  ;;  %4203 = vmatprep.subr.msk.bf16.mxu1 %vm8160_vm10, %v2323_v12 }
 0x2b4   :  { %v2238_v6 = vadd.f32 %v7188_v29, %v2131_v14  ;;  %v2133_v51 = vpop.f32.mrb[39].mxu1  ;;  %2477 = vmatpush1.bf16.msra.mxu1 %v2394_v22  ;;  %v2270_v30 = vmax.f32 %v2230_v21, 0.0 }
 0x2b5   :  { %v2239_v54 = vadd.f32 %v7188_v29, %v2133_v51  ;;  %v2271_v57 = vmax.f32 %v2231_v52, 0.0 }
 0x2b6   :  { %v2278_v39 = vmax.f32 %v2238_v6, 0.0 }
 0x2b7   :  { %v2279_v60 = vmax.f32 %v2239_v54, 0.0  ;;  %4204 = vmatmul.mubr.msk.bf16.vlgmr.msra.gmra.mrb[64].mxu1 %vm8161_vm9, %v7216_v20 }
 0x2b8   :  { %v2310_v44 = vpack.c.bf16 %v2278_v39, %v2270_v30  ;;  %2514 = vmatprep.mubr.bf16.mxu1 %v8489_v35 }
 0x2b9   :  { %v2311_v15 = vpack.c.bf16 %v2279_v60, %v2271_v57  ;;  %v2137_v47 = vpop.f32.mrb[40].mxu1 }
 0x2ba   :  { %v2246_v38 = vadd.f32 %v7192_v24, %v2137_v47  ;;  %v2139_v26 = vpop.f32.mrb[41].mxu1  ;;  %v7320_v47 = vpop.permute.xlu0 %2345 }
 0x2bb   :  { %v2247_v28 = vadd.f32 %v7192_v24, %v2139_v26  ;;  %v2141_v61 = vpop.f32.mrb[42].mxu1  ;;  %2594 = vmatprep.subr.bf16.mxu1 %v2311_v15 }
 0x2bc   :  { %v2254_v29 = vadd.f32 %v7198_v13, %v2141_v61  ;;  %v2143_v0 = vpop.f32.mrb[43].mxu1  ;;  %2595 = vmatpush1.bf16.msra.mxu1 %v2310_v44  ;;  %v2286_v25 = vmax.f32 %v2246_v38, 0.0 }
 0x2bd   :  { %v2255_v31 = vadd.f32 %v7198_v13, %v2143_v0  ;;  %v2287_v12 = vmax.f32 %v2247_v28, 0.0 }
 0x2be   :  { %v2294_v17 = vmax.f32 %v2254_v29, 0.0 }
 0x2bf   :  { %v2295_v50 = vmax.f32 %v2255_v31, 0.0  ;;  %4205 = vmatmul.mubr.msk.bf16.gmra.mrb[68].mxu1 %vm8161_vm9, %v7235_v45 }
 0x2c0   :  { %v2318_v21 = vpack.c.bf16 %v2294_v17, %v2286_v25  ;;  %2524 = vmatprep.mubr.bf16.mxu1 %v8489_v35 }
 0x2c1   :  { %v2319_v1 = vpack.c.bf16 %v2295_v50, %v2287_v12  ;;  %v2147_v24 = vpop.f32.mrb[60].mxu1 }
 0x2c2   :  { %v2192_v22 = vadd.f32 %v2147_v24, %v7266_v63  ;;  %v2149_v52 = vpop.f32.mrb[61].mxu1 }
 0x2c3   :  { %v2193_v14 = vadd.f32 %v2149_v52, %v7269_v62  ;;  %2596 = vmatprep.subr.bf16.mxu1 %v2319_v1  ;;  %v2151_v6 = vpop.f32.mrb[62].mxu1  ;;  %v7328_v1 = vpop.permute.xlu0 %2355 }
 0x2c4   :  { %v2262_v13 = vadd.f32 %v7206_v2, %v2192_v22  ;;  %2597 = vmatpush1.bf16.msra.mxu1 %v2318_v21  ;;  %v2152_v51 = vpop.f32.mrb[63].mxu1 }
 0x2c5   :  { %v2263_v54 = vadd.f32 %v7206_v2, %v2193_v14  ;;  %v7317_v2 = vpop.permute.xlu1 %2340 }
 0x2c6   :  { %v2302_v30 = vmax.f32 %v2262_v13, 0.0 }
 0x2c7   :  { %v2303_v39 = vmax.f32 %v2263_v54, 0.0  ;;  %4206 = vmatmul.mubr.msk.bf16.gmra.mrb[72].mxu1 %vm8161_vm9, %v7247_v59 }
 0x2c8   :  { %v2326_v57 = vpack.c.bf16 %v2302_v30, %v2302_v30  ;;  %2626 = vmatprep.mubr.bf16.mxu1 %v8489_v35 }
 0x2c9   :  { %v2327_v63 = vpack.c.bf16 %v2303_v39, %v2303_v39  ;;  %v7325_v25 = vpop.permute.xlu1 %2350 }
 0x2ca   :  { %v2406_v60 = vsel %vm8160_vm10, %v2326_v57, 0 }
 0x2cb   :  { %4211 = vmatprep.subr.msk.bf16.mxu1 %vm8160_vm10, %v2327_v63 }
 0x2cc   :  { %2599 = vmatpush1.bf16.msra.mxu1 %v2406_v60 }
 0x2cd   :  { %v7333_v57 = vpop.permute.xlu1 %2360 }
 0x2cf   :  { %4212 = vmatmul.mubr.msk.bf16.vlgmr.msra.gmra.mrb[76].mxu1 %vm8161_vm9, %v7216_v20 }
 0x2d0   :  { %2636 = vmatprep.mubr.bf16.mxu1 %v8489_v35 }
 0x2d7   :  { %4213 = vmatmul.mubr.msk.bf16.gmra.mrb[80].mxu1 %vm8161_vm9, %v7235_v45 }
 0x2d8   :  { %2646 = vmatprep.mubr.bf16.mxu1 %v8489_v35 }
 0x2df   :  { %4214 = vmatmul.mubr.msk.bf16.gmra.mrb[84].mxu1 %vm8161_vm9, %v7247_v59 }
 0x2e0   :  { %2826 = vmatprep.mubr.bf16.mxu1 %v8489_v35 }
 0x31f   :  { %v2445_v62 = vpop.f32.mrb[40].mxu0 }
 0x320   :  { %v2446_v44 = vadd.f32 %v2445_v62, %v7317_v2  ;;  %v2447_v15 = vpop.f32.mrb[41].mxu0 }
 0x321   :  { %v2448_v20 = vadd.f32 %v2447_v15, %v7317_v2  ;;  %v2449_v38 = vpop.f32.mrb[42].mxu0 }
 0x322   :  { %v2450_v45 = vadd.f32 %v2449_v38, %v7320_v47  ;;  %v2451_v26 = vpop.f32.mrb[43].mxu0  ;;  %v2655_v61 = vmax.f32 %v2446_v44, 0.0 }
 0x323   :  { %v2452_v28 = vadd.f32 %v2451_v26, %v7320_v47  ;;  %v2656_v29 = vmax.f32 %v2448_v20, 0.0 }
 0x324   :  { %v2663_v59 = vmax.f32 %v2450_v45, 0.0 }
 0x325   :  { %v2664_v0 = vmax.f32 %v2452_v28, 0.0 }
 0x326   :  { %v2695_v31 = vpack.c.bf16 %v2663_v59, %v2655_v61 }
 0x327   :  { %v2696_v17 = vpack.c.bf16 %v2664_v0, %v2656_v29  ;;  %v2455_v12 = vpop.f32.mrb[44].mxu0 }
 0x328   :  { %v2456_v50 = vadd.f32 %v2455_v12, %v7325_v25  ;;  %v2457_v21 = vpop.f32.mrb[45].mxu0 }
 0x329   :  { %v2458_v24 = vadd.f32 %v2457_v21, %v7325_v25  ;;  %v2459_v22 = vpop.f32.mrb[46].mxu0  ;;  %2753 = vmatprep.subr.bf16.mxu0 %v2696_v17  ;;  %v7343_v17 = vld [vmem:[%s7917_s11] sm:$0x3] }
 0x32a   :  { %v2460_v52 = vadd.f32 %v2459_v22, %v7328_v1  ;;  %v2461_v14 = vpop.f32.mrb[47].mxu0  ;;  %2754 = vmatpush1.bf16.msra.mxu0 %v2695_v31  ;;  %v2671_v13 = vmax.f32 %v2456_v50, 0.0 }
 0x32b   :  { %v2462_v6 = vadd.f32 %v2461_v14, %v7328_v1  ;;  %v2672_v54 = vmax.f32 %v2458_v24, 0.0 }
 0x32c   :  { %v2679_v51 = vmax.f32 %v2460_v52, 0.0 }
 0x32d   :  { %v2680_v30 = vmax.f32 %v2462_v6, 0.0 }
 0x32e   :  { %v2703_v39 = vpack.c.bf16 %v2679_v51, %v2671_v13 }
 0x32f   :  { %v2704_v63 = vpack.c.bf16 %v2680_v30, %v2672_v54  ;;  %v2465_v60 = vpop.f32.mrb[48].mxu0 }
 0x330   :  { %v2466_v62 = vadd.f32 %v2465_v60, %v7333_v57  ;;  %v2467_v44 = vpop.f32.mrb[49].mxu0 }
 0x331   :  { %v2468_v15 = vadd.f32 %v2467_v44, %v7333_v57  ;;  %2755 = vmatprep.subr.bf16.mxu0 %v2704_v63  ;;  %v2469_v20 = vpop.f32.mrb[50].mxu0 }
 0x332   :  { %v2687_v38 = vmax.f32 %v2466_v62, 0.0  ;;  %2756 = vmatpush1.bf16.msra.mxu0 %v2703_v39  ;;  %v2470_v45 = vpop.f32.mrb[51].mxu0 }
 0x333   :  { %v2688_v26 = vmax.f32 %v2468_v15, 0.0 }
 0x334   :  { %v2711_v28 = vpack.c.bf16 %v2687_v38, %v2687_v38 }
 0x335   :  { %v2712_v61 = vpack.c.bf16 %v2688_v26, %v2688_v26 }
 0x336   :  { %v2730_v59 = vsel %vm8160_vm10, %v2711_v28, 0 }
 0x337   :  { %v2567_v29 = vpop.f32.mrb[52].mxu0  ;;  %4215 = vmatprep.subr.msk.bf16.mxu0 %vm8160_vm10, %v2712_v61 }
 0x338   :  { %v2568_v0 = vadd.f32 %v2567_v29, %v7317_v2  ;;  %v2569_v31 = vpop.f32.mrb[53].mxu0  ;;  %2758 = vmatpush1.bf16.msra.mxu0 %v2730_v59 }
 0x339   :  { %v2570_v12 = vadd.f32 %v2569_v31, %v7317_v2  ;;  %v2571_v50 = vpop.f32.mrb[54].mxu0 }
 0x33a   :  { %v2572_v21 = vadd.f32 %v2571_v50, %v7320_v47  ;;  %v2573_v24 = vpop.f32.mrb[55].mxu0  ;;  %v2659_v52 = vmax.f32 %v2568_v0, 0.0 }
 0x33b   :  { %v2574_v22 = vadd.f32 %v2573_v24, %v7320_v47  ;;  %4216 = vmatmul.mubr.msk.bf16.vlgmr.msra.gmra.mrb[64].mxu0 %vm8161_vm9, %v7343_v17  ;;  %v2660_v6 = vmax.f32 %v2570_v12, 0.0 }
 0x33c   :  { %v2667_v14 = vmax.f32 %v2572_v21, 0.0  ;;  %2867 = vmatprep.mubr.bf16.mxu0 %v8489_v35 }
 0x33d   :  { %v2668_v13 = vmax.f32 %v2574_v22, 0.0 }
 0x33e   :  { %v2699_v51 = vpack.c.bf16 %v2667_v14, %v2659_v52 }
 0x33f   :  { %v2700_v54 = vpack.c.bf16 %v2668_v13, %v2660_v6  ;;  %v2577_v30 = vpop.f32.mrb[56].mxu0  ;;  %v8801_v13 = vld [vmem:[#allocation75_spill] sm:$0xff] }
 0x340   :  { %v2578_v39 = vadd.f32 %v2577_v30, %v7325_v25  ;;  %v2579_v63 = vpop.f32.mrb[57].mxu0 }
 0x341   :  { %v2580_v60 = vadd.f32 %v2579_v63, %v7325_v25  ;;  %v2581_v62 = vpop.f32.mrb[58].mxu0  ;;  %2835 = vmatprep.subr.bf16.mxu0 %v2700_v54 }
 0x342   :  { %v2582_v44 = vadd.f32 %v2581_v62, %v7328_v1  ;;  %v2583_v15 = vpop.f32.mrb[59].mxu0  ;;  %2836 = vmatpush1.bf16.msra.mxu0 %v2699_v51  ;;  %v2675_v38 = vmax.f32 %v2578_v39, 0.0 }
 0x343   :  { %v2584_v20 = vadd.f32 %v2583_v15, %v7328_v1  ;;  %v2676_v26 = vmax.f32 %v2580_v60, 0.0  ;;  %v8803_v60 = vld [vmem:[#allocation76_spill] sm:$0xff]  ;;  %v8805_v15 = vld [vmem:[#allocation77_spill] sm:$0xff] }
 0x344   :  { %v2683_v45 = vmax.f32 %v2582_v44, 0.0 }
 0x345   :  { %v2684_v28 = vmax.f32 %v2584_v20, 0.0 }
 0x346   :  { %v2707_v61 = vpack.c.bf16 %v2683_v45, %v2675_v38 }
 0x347   :  { %v2708_v59 = vpack.c.bf16 %v2684_v28, %v2676_v26  ;;  %v2587_v29 = vpop.f32.mrb[60].mxu0 }
 0x348   :  { %v2588_v0 = vadd.f32 %v2587_v29, %v7333_v57  ;;  %v2589_v31 = vpop.f32.mrb[61].mxu0 }
 0x349   :  { %v2590_v12 = vadd.f32 %v2589_v31, %v7333_v57  ;;  %2837 = vmatprep.subr.bf16.mxu0 %v2708_v59  ;;  %v2591_v50 = vpop.f32.mrb[62].mxu0 }
 0x34a   :  { %v2691_v21 = vmax.f32 %v2588_v0, 0.0  ;;  %2838 = vmatpush1.bf16.msra.mxu0 %v2707_v61  ;;  %v2592_v24 = vpop.f32.mrb[63].mxu0 }
 0x34b   :  { %v2692_v22 = vmax.f32 %v2590_v12, 0.0 }
 0x34c   :  { %v2715_v52 = vpack.c.bf16 %v2691_v21, %v2691_v21  ;;  %v8807_v21 = vld [vmem:[#allocation78_spill] sm:$0xff] }
 0x34d   :  { %v2716_v14 = vpack.c.bf16 %v2692_v22, %v2692_v22 }
 0x34e   :  { %v2742_v6 = vsel %vm8160_vm10, %v2715_v52, 0  ;;  %v8809_v52 = vld [vmem:[#allocation79_spill] sm:$0xff] }
 0x34f   :  { %4219 = vmatprep.subr.msk.bf16.mxu0 %vm8160_vm10, %v2716_v14  ;;  %vm8787_vm10 = vnez %v8423_v48  ;;  %v8797_v48 = vld [vmem:[#allocation71_spill] sm:$0xff] }
 0x350   :  { %2840 = vmatpush1.bf16.msra.mxu0 %v2742_v6 }
 0x351   :  { %4288 = vmatprep.subr.msk.bf16.mxu0 %vm8783_vm1, %v8283_v56  ;;  %vm8788_vm1 = vnez %v8432_v58  ;;  %v8799_v58 = vld [vmem:[#allocation73_spill] sm:$0xff] }
 0x353   :  { %4220 = vmatmul.mubr.msk.bf16.vlgmr.msra.gmra.mrb[68].mxu0 %vm8161_vm9, %v7343_v17  ;;  %vm8790_vm9 = vnez %v8789_v11 }
 0x359   :  { %4290 = vmatpush1.bf16.xpose.msk.msra.mxu0 %vm8784_vm2, %v8283_v56  ;;  %vm8792_vm2 = vnez %v8791_v43 }
 0x35a   :  { %4292 = vmatprep.subr.msk.bf16.mxu0 %vm8785_vm14, %v8283_v56  ;;  %vm8794_vm14 = vnez %v8793_v53 }
 0x361   :  { %4294 = vmatpush1.bf16.xpose.msk.msra.mxu0 %vm8786_vm12, %v8283_v56  ;;  %vm8796_vm12 = vnez %v8795_v3 }
 0x362   :  { %4296 = vmatprep.subr.msk.bf16.mxu0 %vm8787_vm10, %v8283_v56  ;;  %vm8798_vm10 = vnez %v8797_v48 }
 0x369   :  { %4298 = vmatpush1.bf16.xpose.msk.msra.mxu0 %vm8788_vm1, %v8283_v56  ;;  %vm8800_vm1 = vnez %v8799_v58 }
 0x36a   :  { %4300 = vmatprep.subr.msk.bf16.mxu0 %vm8790_vm9, %v8283_v56  ;;  %vm8802_vm9 = vnez %v8801_v13 }
 0x371   :  { %4302 = vmatpush1.bf16.xpose.msk.msra.mxu0 %vm8792_vm2, %v8283_v56  ;;  %vm8804_vm2 = vnez %v8803_v60 }
 0x372   :  { %4304 = vmatprep.subr.msk.bf16.mxu0 %vm8794_vm14, %v8283_v56  ;;  %vm8806_vm14 = vnez %v8805_v15 }
 0x379   :  { %4306 = vmatpush1.bf16.xpose.msk.msra.mxu0 %vm8796_vm12, %v8283_v56  ;;  %vm8808_vm12 = vnez %v8807_v21 }
 0x37a   :  { %4308 = vmatprep.subr.msk.bf16.mxu0 %vm8798_vm10, %v8283_v56  ;;  %vm8810_vm10 = vnez %v8809_v52 }
 0x381   :  { %4310 = vmatpush1.bf16.xpose.msk.msra.mxu0 %vm8800_vm1, %v8283_v56  ;;  %vm8811_vm1 = vnez %v8526_v27 }
 0x382   :  { %4312 = vmatprep.subr.msk.bf16.mxu0 %vm8802_vm9, %v8283_v56  ;;  %vm8812_vm9 = vnez %v8528_v40 }
 0x389   :  { %4314 = vmatpush1.bf16.xpose.msk.msra.mxu0 %vm8804_vm2, %v8283_v56  ;;  %vm8813_vm2 = vcmask 1043456  }
 0x38a   :  { %v2506_v51 = vpop.f32.mrb[64].mxu1  ;;  %4316 = vmatprep.subr.msk.bf16.mxu0 %vm8806_vm14, %v8283_v56  ;;  %vm8814_vm14 = vmmov %vm8813_vm2 }
 0x38b   :  { %v2507_v54 = vadd.f32 %v2506_v51, %v7317_v2  ;;  %v2508_v30 = vpop.f32.mrb[65].mxu1 }
 0x38c   :  { %v2509_v39 = vadd.f32 %v2508_v30, %v7317_v2  ;;  %v2510_v63 = vpop.f32.mrb[66].mxu1 }
 0x38d   :  { %v2511_v62 = vadd.f32 %v2510_v63, %v7320_v47  ;;  %v2512_v44 = vpop.f32.mrb[67].mxu1  ;;  %v2657_v38 = vmax.f32 %v2507_v54, 0.0 }
 0x38e   :  { %v2513_v20 = vadd.f32 %v2512_v44, %v7320_v47  ;;  %v2658_v26 = vmax.f32 %v2509_v39, 0.0 }
 0x38f   :  { %v2665_v45 = vmax.f32 %v2511_v62, 0.0 }
 0x390   :  { %v2666_v28 = vmax.f32 %v2513_v20, 0.0 }
 0x391   :  { %v2697_v61 = vpack.c.bf16 %v2665_v45, %v2657_v38  ;;  %4318 = vmatpush1.bf16.xpose.msk.msra.mxu0 %vm8808_vm12, %v8283_v56  ;;  %vm8815_vm12 = vnez %v8532_v23 }
 0x392   :  { %v2698_v59 = vpack.c.bf16 %v2666_v28, %v2658_v26  ;;  %v2516_v29 = vpop.f32.mrb[68].mxu1  ;;  %4320 = vmatprep.subr.msk.bf16.mxu0 %vm8810_vm10, %v8283_v56  ;;  %vm8816_vm10 = vnez %v8535_v19 }
 0x393   :  { %v2517_v0 = vadd.f32 %v2516_v29, %v7325_v25  ;;  %v2518_v31 = vpop.f32.mrb[69].mxu1 }
 0x394   :  { %v2519_v12 = vadd.f32 %v2518_v31, %v7325_v25  ;;  %v2520_v50 = vpop.f32.mrb[70].mxu1  ;;  %2794 = vmatprep.subr.bf16.mxu1 %v2698_v59 }
 0x395   :  { %v2521_v24 = vadd.f32 %v2520_v50, %v7328_v1  ;;  %v2522_v22 = vpop.f32.mrb[71].mxu1  ;;  %2795 = vmatpush1.bf16.msra.mxu1 %v2697_v61  ;;  %v2673_v6 = vmax.f32 %v2517_v0, 0.0 }
 0x396   :  { %v2523_v14 = vadd.f32 %v2522_v22, %v7328_v1  ;;  %v2674_v43 = vmax.f32 %v2519_v12, 0.0 }
 0x397   :  { %v2681_v11 = vmax.f32 %v2521_v24, 0.0 }
 0x398   :  { %v2682_v53 = vmax.f32 %v2523_v14, 0.0 }
 0x399   :  { %v2705_v3 = vpack.c.bf16 %v2681_v11, %v2673_v6  ;;  %4322 = vmatpush1.bf16.xpose.msk.msra.mxu0 %vm8811_vm1, %v8283_v56  ;;  %vm8817_vm1 = vcmask 326656  }
 0x39a   :  { %v2706_v48 = vpack.c.bf16 %v2682_v53, %v2674_v43  ;;  %v2526_v58 = vpop.f32.mrb[72].mxu1  ;;  %4324 = vmatprep.subr.msk.bf16.mxu0 %vm8812_vm9, %v8283_v56  ;;  %vm8818_vm9 = vnez %v8539_v18 }
 0x39b   :  { %v2527_v13 = vadd.f32 %v2526_v58, %v7333_v57  ;;  %v2528_v51 = vpop.f32.mrb[73].mxu1 }
 0x39c   :  { %v2529_v54 = vadd.f32 %v2528_v51, %v7333_v57  ;;  %2796 = vmatprep.subr.bf16.mxu1 %v2706_v48  ;;  %v2530_v30 = vpop.f32.mrb[74].mxu1 }
 0x39d   :  { %v2689_v39 = vmax.f32 %v2527_v13, 0.0  ;;  %2797 = vmatpush1.bf16.msra.mxu1 %v2705_v3  ;;  %v2531_v63 = vpop.f32.mrb[75].mxu1 }
 0x39e   :  { %v2690_v60 = vmax.f32 %v2529_v54, 0.0  ;;  %v8852_v63 = vld [vmem:[#allocation14_spill] sm:$0xff] }
 0x39f   :  { %v2713_v62 = vpack.c.bf16 %v2689_v39, %v2689_v39 }
 0x3a0   :  { %v2714_v44 = vpack.c.bf16 %v2690_v60, %v2690_v60  ;;  %v8856_v60 = vld [vmem:[#allocation16_spill] sm:$0xff] }
 0x3a1   :  { %v2736_v15 = vsel %vm8813_vm2, %v2713_v62, 0  ;;  %4326 = vmatpush1.bf16.xpose.msk.msra.mxu0 %vm8815_vm12, %v8283_v56  ;;  %vm8819_vm2 = vnez %v8541_v16  ;;  %vm8821_vm12 = vnez %v8548_v34  ;;  %v8832_v34 = vld [vmem:[#allocation7_spill] sm:$0xff]  ;;  %v8858_v62 = vld [vmem:[#allocation18_spill] sm:$0xff] }
 0x3a2   :  { %v2628_v20 = vpop.f32.mrb[76].mxu1  ;;  %4217 = vmatprep.subr.msk.bf16.mxu1 %vm8814_vm14, %v2714_v44  ;;  %4328 = vmatprep.subr.msk.bf16.mxu0 %vm8816_vm10, %v8283_v56  ;;  %vm8820_vm14 = vnez %v8545_v36  ;;  %vm8822_vm10 = vcmask 1043456   ;;  %v8829_v36 = vld [vmem:[#allocation6_spill] sm:$0xff]  ;;  %v8860_v44 = vld [vmem:[#allocation20_spill] sm:$0xff] }
 0x3a3   :  { %v2629_v38 = vadd.f32 %v2628_v20, %v7317_v2  ;;  %v2630_v45 = vpop.f32.mrb[77].mxu1  ;;  %2799 = vmatpush1.bf16.msra.mxu1 %v2736_v15  ;;  %v8862_v15 = vld [vmem:[#allocation22_spill] sm:$0xff]  ;;  %v8864_v20 = vld [vmem:[#allocation24_spill] sm:$0xff] }
 0x3a4   :  { %v2631_v27 = vadd.f32 %v2630_v45, %v7317_v2  ;;  %v2632_v26 = vpop.f32.mrb[78].mxu1  ;;  %v8868_v45 = vld [vmem:[#allocation28_spill] sm:$0xff] }
 0x3a5   :  { %v2633_v40 = vadd.f32 %v2632_v26, %v7320_v47  ;;  %v2634_v28 = vpop.f32.mrb[79].mxu1  ;;  %v2661_v59 = vmax.f32 %v2629_v38, 0.0  ;;  %v8866_v38 = vld [vmem:[#allocation26_spill] sm:$0xff]  ;;  %v8872_v26 = vld [vmem:[#allocation32_spill] sm:$0xff] }
 0x3a6   :  { %v2635_v61 = vadd.f32 %v2634_v28, %v7320_v47  ;;  %4218 = vmatmul.mubr.msk.bf16.vlgmr.msra.gmra.mrb[88].mxu1 %vm8817_vm1, %v7343_v17  ;;  %v2662_v2 = vmax.f32 %v2631_v27, 0.0  ;;  %vm8823_vm1 = vmmov %vm8822_vm10  ;;  %v8870_v27 = vld [vmem:[#allocation30_spill] sm:$0xff]  ;;  %v7552_v28 = vpop.permute.xlu0 %2723 }
 0x3a7   :  { %v2669_v29 = vmax.f32 %v2633_v40, 0.0  ;;  %2908 = vmatprep.mubr.bf16.mxu1 %v8489_v35  ;;  %v8874_v40 = vld [vmem:[#allocation34_spill] sm:$0xff] }
 0x3a8   :  { %v2670_v0 = vmax.f32 %v2635_v61, 0.0 }
 0x3a9   :  { %v2701_v23 = vpack.c.bf16 %v2669_v29, %v2661_v59  ;;  %4330 = vmatpush1.bf16.xpose.msk.msra.mxu0 %vm8818_vm9, %v8283_v56 }
 0x3aa   :  { %v2702_v31 = vpack.c.bf16 %v2670_v0, %v2662_v2  ;;  %v2638_v12 = vpop.f32.mrb[80].mxu1  ;;  %4332 = vmatprep.subr.msk.bf16.mxu0 %vm8819_vm2, %v8283_v56  ;;  %vm8826_vm2 = vnez %v8552_v32  ;;  %v8838_v32 = vld [vmem:[#allocation9_spill] sm:$0xff] }
 0x3ab   :  { %v2639_v50 = vadd.f32 %v2638_v12, %v7325_v25  ;;  %v2640_v21 = vpop.f32.mrb[81].mxu1 }
 0x3ac   :  { %v2641_v19 = vadd.f32 %v2640_v21, %v7325_v25  ;;  %v2642_v24 = vpop.f32.mrb[82].mxu1  ;;  %2876 = vmatprep.subr.bf16.mxu1 %v2702_v31  ;;  %v8876_v31 = vld [vmem:[#allocation36_spill] sm:$0xff] }
 0x3ad   :  { %v2643_v47 = vadd.f32 %v2642_v24, %v7328_v1  ;;  %v2644_v22 = vpop.f32.mrb[83].mxu1  ;;  %2877 = vmatpush1.bf16.msra.mxu1 %v2701_v23  ;;  %v2677_v14 = vmax.f32 %v2639_v50, 0.0 }
 0x3ae   :  { %v2645_v52 = vadd.f32 %v2644_v22, %v7328_v1  ;;  %v2678_v11 = vmax.f32 %v2641_v19, 0.0  ;;  %v8878_v19 = vld [vmem:[#allocation38_spill] sm:$0xff] }
 0x3af   :  { %v2685_v6 = vmax.f32 %v2643_v47, 0.0  ;;  %v4624_v47 = vld [vmem:[%s7909_s3] sm:$0xff] }
 0x3b0   :  { %v2686_v25 = vmax.f32 %v2645_v52, 0.0  ;;  %v2917_v22 = vmul.f32 0.5, %v4624_v47  ;;  %v8908_v47 = vld [vmem:[#allocation29_spill] sm:$0xff] }
 0x3b1   :  { %v2709_v43 = vpack.c.bf16 %v2685_v6, %v2677_v14  ;;  %4334 = vmatpush1.bf16.xpose.msk.msra.mxu0 %vm8820_vm14, %v8283_v56  ;;  %vm8827_vm14 = vnez %v8554_v37  ;;  %v8835_v37 = vld [vmem:[#allocation8_spill] sm:$0xff] }
 0x3b2   :  { %v2710_v53 = vpack.c.bf16 %v2686_v25, %v2678_v11  ;;  %v2648_v3 = vpop.f32.mrb[84].mxu1  ;;  %4336 = vmatprep.subr.msk.bf16.mxu0 %vm8821_vm12, %v8283_v56  ;;  %vm8828_vm12 = vcmask 326656   ;;  %v8880_v11 = vld [vmem:[#allocation40_spill] sm:$0xff]  ;;  %v8882_v25 = vld [vmem:[#allocation42_spill] sm:$0xff] }
 0x3b3   :  { %v2649_v18 = vadd.f32 %v2648_v3, %v7333_v57  ;;  %v2650_v48 = vpop.f32.mrb[85].mxu1 }
 0x3b4   :  { %v2651_v58 = vadd.f32 %v2650_v48, %v7333_v57  ;;  %2878 = vmatprep.subr.bf16.mxu1 %v2710_v53  ;;  %v2652_v16 = vpop.f32.mrb[86].mxu1  ;;  %v8824_v57 = vld [vmem:[#allocation5_spill] sm:$0xff]  ;;  %v8886_v53 = vld [vmem:[#allocation46_spill] sm:$0xff] }
 0x3b5   :  { %v2693_v13 = vmax.f32 %v2649_v18, 0.0  ;;  %2879 = vmatpush1.bf16.msra.mxu1 %v2709_v43  ;;  %v2653_v1 = vpop.f32.mrb[87].mxu1  ;;  %vm8825_vm9 = vnez %v8824_v57  ;;  %v8884_v43 = vld [vmem:[#allocation44_spill] sm:$0xff]  ;;  %v4625_v57 = vld [vmem:[%s7909_s3 + $0x10] sm:$0xff] }
 0x3b6   :  { %v2694_v51 = vmax.f32 %v2651_v58, 0.0  ;;  %v8888_v1 = vld [vmem:[#allocation48_spill] sm:$0xff] }
 0x3b7   :  { %v2717_v54 = vpack.c.bf16 %v2693_v13, %v2693_v13 }
 0x3b8   :  { %v2718_v30 = vpack.c.bf16 %v2694_v51, %v2694_v51 }
 0x3b9   :  { %v2748_v39 = vsel %vm8822_vm10, %v2717_v54, 0  ;;  %4338 = vmatpush1.bf16.xpose.msk.msra.mxu0 %vm8826_vm2, %v8283_v56  ;;  %vm8830_vm10 = vnez %v8829_v36  ;;  %vm8834_vm2 = vnez %v8560_v55  ;;  %v8844_v55 = vld [vmem:[#allocation11_spill] sm:$0xff]  ;;  %v2919_v36 = vmul.f32 0.5, %v4625_v57 }
 0x3ba   :  { %4221 = vmatprep.subr.msk.bf16.mxu1 %vm8823_vm1, %v2718_v30  ;;  %4340 = vmatprep.subr.msk.bf16.mxu0 %vm8827_vm14, %v8283_v56  ;;  %vm8831_vm1 = vnez %v8558_v42  ;;  %vm8836_vm14 = vnez %v8835_v37  ;;  %v8841_v42 = vld [vmem:[#allocation10_spill] sm:$0xff]  ;;  %v8926_v57 = vld [vmem:[#allocation47_spill] sm:$0xff] }
 0x3bb   :  { %2881 = vmatpush1.bf16.msra.mxu1 %v2748_v39  ;;  %v8890_v30 = vld [vmem:[#allocation50_spill] sm:$0xff] }
 0x3bc   :  { %4224 = vmatprep.subr.msk.bf16.mxu1 %vm8825_vm9, %v8283_v56  ;;  %vm8833_vm9 = vnez %v8832_v34 }
 0x3be   :  { %4222 = vmatmul.mubr.msk.bf16.vlgmr.msra.gmra.mrb[92].mxu1 %vm8828_vm12, %v7343_v17  ;;  %vm8837_vm12 = vnez %v8564_v7  ;;  %v8846_v7 = vld [vmem:[#allocation17_spill] sm:$0xff]  ;;  %v8848_v17 = vld [vmem:[#allocation12_spill] sm:$0xff] }
 0x3c1   :  { %4342 = vmatpush1.bf16.xpose.msk.msra.mxu0 %vm8831_vm1, %v8283_v56  ;;  %vm8840_vm1 = vnez %v8566_v46  ;;  %v8850_v46 = vld [vmem:[#allocation13_spill] sm:$0xff] }
 0x3c2   :  { %4344 = vmatprep.subr.msk.bf16.mxu0 %vm8834_vm2, %v8283_v56  ;;  %vm8843_vm2 = vnez %v8570_v10  ;;  %v8854_v10 = vld [vmem:[#allocation15_spill] sm:$0xff] }
 0x3c4   :  { %4226 = vmatpush1.bf16.xpose.msk.msra.mxu1 %vm8830_vm10, %v8283_v56  ;;  %vm8839_vm10 = vnez %v8838_v32 }
 0x3c5   :  { %4228 = vmatprep.subr.msk.bf16.mxu1 %vm8833_vm9, %v8283_v56  ;;  %vm8842_vm9 = vnez %v8841_v42  ;;  %v8892_v42 = vld [vmem:[#allocation52_spill] sm:$0xff] }
 0x3c9   :  { %4346 = vmatpush1.bf16.xpose.msk.msra.mxu0 %vm8837_vm12, %v8283_v56  ;;  %vm8847_vm12 = vnez %v8846_v7  ;;  %v8896_v7 = vld [vmem:[#allocation55_spill] sm:$0xff] }
 0x3ca   :  { %4348 = vmatprep.subr.msk.bf16.mxu0 %vm8840_vm1, %v8283_v56  ;;  %vm8851_vm1 = vnez %v8850_v46 }
 0x3cc   :  { %4230 = vmatpush1.bf16.xpose.msk.msra.mxu1 %vm8836_vm14, %v8283_v56  ;;  %vm8845_vm14 = vnez %v8844_v55  ;;  %v8894_v55 = vld [vmem:[#allocation54_spill] sm:$0xff] }
 0x3cd   :  { %4232 = vmatprep.subr.msk.bf16.mxu1 %vm8839_vm10, %v8283_v56  ;;  %vm8849_vm10 = vnez %v8848_v17 }
 0x3d1   :  { %4350 = vmatpush1.bf16.xpose.msk.msra.mxu0 %vm8843_vm2, %v8283_v56  ;;  %vm8855_vm2 = vnez %v8854_v10 }
 0x3d2   :  { %4352 = vmatprep.subr.msk.bf16.mxu0 %vm8847_vm12, %v8283_v56  ;;  %vm8859_vm12 = vnez %v8858_v62 }
 0x3d4   :  { %4234 = vmatpush1.bf16.xpose.msk.msra.mxu1 %vm8842_vm9, %v8283_v56  ;;  %vm8853_vm9 = vnez %v8852_v63 }
 0x3d5   :  { %4236 = vmatprep.subr.msk.bf16.mxu1 %vm8845_vm14, %v8283_v56  ;;  %vm8857_vm14 = vnez %v8856_v60 }
 0x3dc   :  { %4238 = vmatpush1.bf16.xpose.msk.msra.mxu1 %vm8849_vm10, %v8283_v56  ;;  %vm8861_vm10 = vnez %v8860_v44 }
 0x3dd   :  { %4240 = vmatprep.subr.msk.bf16.mxu1 %vm8851_vm1, %v8283_v56  ;;  %vm8863_vm1 = vnez %v8862_v15 }
 0x3e4   :  { %4242 = vmatpush1.bf16.xpose.msk.msra.mxu1 %vm8853_vm9, %v8283_v56  ;;  %vm8865_vm9 = vnez %v8864_v20 }
 0x3e5   :  { %4244 = vmatprep.subr.msk.bf16.mxu1 %vm8855_vm2, %v8283_v56  ;;  %vm8867_vm2 = vnez %v8866_v38 }
 0x3ec   :  { %4246 = vmatpush1.bf16.xpose.msk.msra.mxu1 %vm8857_vm14, %v8283_v56  ;;  %vm8869_vm14 = vnez %v8868_v45 }
 0x3ed   :  { %4248 = vmatprep.subr.msk.bf16.mxu1 %vm8859_vm12, %v8283_v56  ;;  %vm8871_vm12 = vnez %v8870_v27 }
 0x3f4   :  { %4250 = vmatpush1.bf16.xpose.msk.msra.mxu1 %vm8861_vm10, %v8283_v56  ;;  %vm8873_vm10 = vnez %v8872_v26 }
 0x3f5   :  { %4252 = vmatprep.subr.msk.bf16.mxu1 %vm8863_vm1, %v8283_v56  ;;  %vm8875_vm1 = vnez %v8874_v40  ;;  %v4626_v40 = vld [vmem:[%s7909_s3 + $0x8] sm:$0xff] }
 0x3fc   :  { %4254 = vmatpush1.bf16.xpose.msk.msra.mxu1 %vm8865_vm9, %v8283_v56  ;;  %vm8877_vm9 = vnez %v8876_v31  ;;  %v8902_v31 = vld [vmem:[#allocation23_spill] sm:$0xff] }
 0x3fd   :  { %4256 = vmatprep.subr.msk.bf16.mxu1 %vm8867_vm2, %v8283_v56  ;;  %vm8879_vm2 = vnez %v8878_v19 }
 0x404   :  { %4258 = vmatpush1.bf16.xpose.msk.msra.mxu1 %vm8869_vm14, %v8283_v56  ;;  %vm8881_vm14 = vnez %v8880_v11 }
 0x405   :  { %4260 = vmatprep.subr.msk.bf16.mxu1 %vm8871_vm12, %v8283_v56  ;;  %vm8883_vm12 = vnez %v8882_v25 }
 0x40c   :  { %4262 = vmatpush1.bf16.xpose.msk.msra.mxu1 %vm8873_vm10, %v8283_v56  ;;  %vm8885_vm10 = vnez %v8884_v43  ;;  %v4627_v43 = vld [vmem:[%s7909_s3 + $0x18] sm:$0xff] }
 0x40d   :  { %4264 = vmatprep.subr.msk.bf16.mxu1 %vm8875_vm1, %v8283_v56  ;;  %vm8887_vm1 = vnez %v8886_v53  ;;  %v2920_v53 = vmul.f32 0.5, %v4627_v43 }
 0x40e   :  { %v2787_v61 = vpop.f32.mrb[64].mxu0 }
 0x40f   :  { %v2788_v59 = vadd.f32 %v2787_v61, %v7552_v28  ;;  %v2789_v29 = vpop.f32.mrb[65].mxu0  ;;  %v2918_v61 = vmul.f32 0.5, %v4626_v40 }
 0x410   :  { %v2790_v2 = vadd.f32 %v2789_v29, %v7552_v28  ;;  %v2791_v0 = vpop.f32.mrb[66].mxu0 }
 0x411   :  { %v2921_v23 = vmax.f32 %v2788_v59, 0.0  ;;  %v2792_v12 = vpop.f32.mrb[67].mxu0  ;;  %v2961_v17 = vpack.c.bf16 %v2788_v59, %v2788_v59  ;;  %v8900_v0 = vld [vmem:[#allocation21_spill] sm:$0xff] }
 0x412   :  { %v2922_v50 = vmax.f32 %v2790_v2, 0.0  ;;  %v2962_v21 = vpack.c.bf16 %v2790_v2, %v2790_v2  ;;  %v8898_v2 = vld [vmem:[#allocation19_spill] sm:$0xff]  ;;  %v8904_v12 = vld [vmem:[#allocation25_spill] sm:$0xff] }
 0x413   :  { %v2929_v24 = vmul.f32 0.5, %v2921_v23 }
 0x414   :  { %4266 = vmatpush1.bf16.xpose.msk.msra.mxu1 %vm8877_vm9, %v8283_v56  ;;  %v2930_v52 = vmul.f32 0.5, %v2922_v50  ;;  %3001 = vmatprep.mubr.bf16.mxu1 %v2962_v21  ;;  %vm8889_vm9 = vnez %v8888_v1  ;;  %v8906_v50 = vld [vmem:[#allocation27_spill] sm:$0xff]  ;;  %v8916_v1 = vld [vmem:[#allocation37_spill] sm:$0xff] }
 0x415   :  { %4268 = vmatprep.subr.msk.bf16.mxu1 %vm8879_vm2, %v8283_v56  ;;  %vm8891_vm2 = vnez %v8890_v30  ;;  %v8922_v30 = vld [vmem:[#allocation43_spill] sm:$0xff] }
 0x416   :  { %v2945_v14 = vcombine.low %v2929_v24, %v2930_v52 }
 0x418   :  { %v2953_v6 = vadd.f32 %v2945_v14, %v2917_v22 }
 0x41a   :  { %2957 = vst [vmem:[%s7918_s21] sm:$0xff] %v2953_v6 }
 0x41c   :  { %4270 = vmatpush1.bf16.xpose.msk.msra.mxu1 %vm8881_vm14, %v8283_v56  ;;  %vm8893_vm14 = vnez %v8892_v42  ;;  %v8936_v42 = vld [vmem:[#allocation57_spill] sm:$0xff] }
 0x41d   :  { %4272 = vmatprep.subr.msk.bf16.mxu1 %vm8883_vm12, %v8283_v56  ;;  %vm8895_vm12 = vnez %v8894_v55  ;;  %v8938_v55 = vld [vmem:[#allocation58_spill] sm:$0xff] }
 0x424   :  { %4274 = vmatpush1.bf16.xpose.msk.msra.mxu1 %vm8885_vm10, %v8283_v56  ;;  %vm8897_vm10 = vnez %v8896_v7  ;;  %v8940_v7 = vld [vmem:[#allocation59_spill] sm:$0xff] }
 0x425   :  { %4276 = vmatprep.subr.msk.bf16.mxu1 %vm8887_vm1, %v8283_v56  ;;  %vm8899_vm1 = vnez %v8898_v2 }
 0x426   :  { %v2869_v3 = vpop.f32.mrb[68].mxu0 }
 0x427   :  { %v7581_v18 = vadd.f32 %v2869_v3, %v7552_v28  ;;  %v2871_v48 = vpop.f32.mrb[69].mxu0 }
 0x428   :  { %v2872_v58 = vadd.f32 %v2871_v48, %v7552_v28  ;;  %v2873_v16 = vpop.f32.mrb[70].mxu0 }
 0x429   :  { %v2925_v13 = vmax.f32 %v7581_v18, 0.0  ;;  %v2874_v51 = vpop.f32.mrb[71].mxu0  ;;  %v8912_v16 = vld [vmem:[#allocation33_spill] sm:$0xff] }
 0x42a   :  { %v2926_v54 = vmax.f32 %v2872_v58, 0.0  ;;  %v2966_v26 = vpack.c.bf16 %v2872_v58, %v2872_v58  ;;  %v8910_v58 = vld [vmem:[#allocation31_spill] sm:$0xff] }
 0x42b   :  { %v2933_v39 = vmul.f32 0.5, %v2925_v13  ;;  %v8914_v13 = vld [vmem:[#allocation35_spill] sm:$0xff] }
 0x42c   :  { %4278 = vmatpush1.bf16.xpose.msk.msra.mxu1 %vm8889_vm9, %v8283_v56  ;;  %v2934_v34 = vmul.f32 0.5, %v2926_v54  ;;  %vm8901_vm9 = vnez %v8900_v0  ;;  %v8918_v51 = vld [vmem:[#allocation39_spill] sm:$0xff]  ;;  %v8920_v54 = vld [vmem:[#allocation41_spill] sm:$0xff] }
 0x42d   :  { %4280 = vmatprep.subr.msk.bf16.mxu1 %vm8891_vm2, %v8283_v56  ;;  %vm8903_vm2 = vnez %v8902_v31  ;;  %v8986_v31 = vld [vmem:[#allocation93_spill] sm:$0xff] }
 0x42e   :  { %v2947_v37 = vcombine.low %v2933_v39, %v2934_v34  ;;  %v8924_v39 = vld [vmem:[#allocation45_spill] sm:$0xff]  ;;  %v8930_v34 = vld [vmem:[#allocation51_spill] sm:$0xff] }
 0x430   :  { %v2955_v32 = vadd.f32 %v2947_v37, %v2919_v36  ;;  %v8928_v36 = vld [vmem:[#allocation49_spill] sm:$0xff] }
 0x431   :  { %v8932_v37 = vld [vmem:[#allocation53_spill] sm:$0xff] }
 0x432   :  { %2959 = vst [vmem:[%s7918_s21 + $0x10] sm:$0xff] %v2955_v32  ;;  %v8934_v32 = vld [vmem:[#allocation56_spill] sm:$0xff] }
 0x434   :  { %4282 = vmatpush1.bf16.xpose.msk.msra.mxu1 %vm8893_vm14, %v8283_v56  ;;  %vm8905_vm14 = vnez %v8904_v12 }
 0x435   :  { %4284 = vmatprep.subr.msk.bf16.mxu1 %vm8895_vm12, %v8283_v56  ;;  %vm8907_vm12 = vnez %v8906_v50  ;;  %v8989_v50 = vld [vmem:[#allocation95_spill] sm:$0xff] }
 0x43c   :  { %4286 = vmatpush1.bf16.xpose.msk.msra.mxu1 %vm8897_vm10, %v8283_v56  ;;  %vm8909_vm10 = vnez %v8908_v47 }
 0x443   :  { %3002 = vmatmul.mubr.bf16.vlgmr.msra.gmra.mrb[96].mxu1 %v2961_v17  ;;  %v8942_v17 = vld [vmem:[#allocation60_spill] sm:$0xff] }
 0x444   :  { %3225 = vmatprep.mubr.bf16.mxu1 %v8489_v35 }
 0x479   :  { %v2828_v46 = vpop.f32.mrb[88].mxu1 }
 0x47a   :  { %v2829_v63 = vadd.f32 %v2828_v46, %v7552_v28  ;;  %v2830_v10 = vpop.f32.mrb[89].mxu1  ;;  %v8944_v46 = vld [vmem:[#allocation61_spill] sm:$0xff] }
 0x47b   :  { %v2831_v60 = vadd.f32 %v2830_v10, %v7552_v28  ;;  %v2832_v62 = vpop.f32.mrb[90].mxu1  ;;  %v8948_v10 = vld [vmem:[#allocation64_spill] sm:$0xff] }
 0x47c   :  { %v2923_v44 = vmax.f32 %v2829_v63, 0.0  ;;  %v2833_v15 = vpop.f32.mrb[91].mxu1  ;;  %v2963_v27 = vpack.c.bf16 %v2829_v63, %v2829_v63  ;;  %v8946_v63 = vld [vmem:[#allocation62_spill] sm:$0xff]  ;;  %v8952_v62 = vld [vmem:[#allocation68_spill] sm:$0xff] }
 0x47d   :  { %v2924_v20 = vmax.f32 %v2831_v60, 0.0  ;;  %v2964_v38 = vpack.c.bf16 %v2831_v60, %v2831_v60  ;;  %v8950_v60 = vld [vmem:[#allocation66_spill] sm:$0xff]  ;;  %v8956_v15 = vld [vmem:[#allocation72_spill] sm:$0xff] }
 0x47e   :  { %v2931_v45 = vmul.f32 0.5, %v2923_v44  ;;  %v8954_v44 = vld [vmem:[#allocation70_spill] sm:$0xff] }
 0x47f   :  { %v2932_v59 = vmul.f32 0.5, %v2924_v20  ;;  %3042 = vmatprep.mubr.bf16.mxu0 %v2964_v38  ;;  %v8958_v20 = vld [vmem:[#allocation74_spill] sm:$0xff]  ;;  %v2965_v38 = vpack.c.bf16 %v7581_v18, %v7581_v18 }
 0x480   :  { %3043 = vmatmul.mubr.bf16.vlgmr.msra.gmra.mrb[72].mxu0 %v2963_v27  ;;  %v8966_v27 = vld [vmem:[#allocation81_spill] sm:$0xff] }
 0x481   :  { %v2946_v29 = vcombine.low %v2931_v45, %v2932_v59  ;;  %4354 = vmatpush1.bf16.xpose.msk.msra.mxu0 %vm8899_vm1, %v8283_v56  ;;  %3083 = vmatprep.mubr.bf16.mxu0 %v2966_v26  ;;  %vm8911_vm1 = vnez %v8910_v58  ;;  %v8973_v26 = vld [vmem:[#allocation85_spill] sm:$0xff]  ;;  %v8978_v59 = vld [vmem:[#allocation88_spill] sm:$0xff] }
 0x482   :  { %4356 = vmatprep.subr.msk.bf16.mxu0 %vm8901_vm9, %v8283_v56  ;;  %vm8913_vm9 = vnez %v8912_v16 }
 0x483   :  { %v2954_v23 = vadd.f32 %v2946_v29, %v2918_v61  ;;  %v8976_v61 = vld [vmem:[#allocation87_spill] sm:$0xff]  ;;  %v8980_v29 = vld [vmem:[#allocation89_spill] sm:$0xff] }
 0x485   :  { %2958 = vst [vmem:[%s7918_s21 + $0x8] sm:$0xff] %v2954_v23  ;;  %v8984_v23 = vld [vmem:[#allocation92_spill] sm:$0xff] }
 0x489   :  { %4358 = vmatpush1.bf16.xpose.msk.msra.mxu0 %vm8903_vm2, %v8283_v56  ;;  %vm8915_vm2 = vnez %v8914_v13 }
 0x48a   :  { %4360 = vmatprep.subr.msk.bf16.mxu0 %vm8905_vm14, %v8283_v56  ;;  %vm8917_vm14 = vnez %v8916_v1 }
 0x491   :  { %4362 = vmatpush1.bf16.xpose.msk.msra.mxu0 %vm8907_vm12, %v8283_v56  ;;  %v2910_v21 = vpop.f32.mrb[92].mxu1  ;;  %vm8919_vm12 = vnez %v8918_v51 }
 0x492   :  { %v7631_v19 = vadd.f32 %v2910_v21, %v7552_v28  ;;  %v2912_v24 = vpop.f32.mrb[93].mxu1  ;;  %4364 = vmatprep.subr.msk.bf16.mxu0 %vm8909_vm10, %v8283_v56  ;;  %vm8921_vm10 = vnez %v8920_v54  ;;  %v7826_v54 = vld [vmem:[%s8247_s24 + $0x8] sm:$0x3f] }
 0x493   :  { %v2913_v22 = vadd.f32 %v2912_v24, %v7552_v28  ;;  %v2914_v52 = vpop.f32.mrb[94].mxu1  ;;  %v8992_v24 = vld [vmem:[#allocation97_spill] sm:$0xff] }
 0x494   :  { %v2927_v14 = vmax.f32 %v7631_v19, 0.0  ;;  %v2915_v6 = vpop.f32.mrb[95].mxu1  ;;  %v8997_v52 = vld [vmem:[#allocation100_spill] sm:$0xff]  ;;  %v2967_v43 = vpack.c.bf16 %v7631_v19, %v7631_v19 }
 0x495   :  { %v2928_v11 = vmax.f32 %v2913_v22, 0.0  ;;  %v2968_v45 = vpack.c.bf16 %v2913_v22, %v2913_v22  ;;  %v8995_v22 = vld [vmem:[#allocation99_spill] sm:$0xff]  ;;  %v9001_v6 = vld [vmem:[#allocation102_spill] sm:$0xff] }
 0x496   :  { %v2935_v25 = vmul.f32 0.5, %v2927_v14  ;;  %v8999_v14 = vld [vmem:[#allocation101_spill] sm:$0xff] }
 0x497   :  { %v2936_v3 = vmul.f32 0.5, %v2928_v11  ;;  %v9003_v11 = vld [vmem:[#allocation103_spill] sm:$0xff] }
 0x499   :  { %v2948_v48 = vcombine.low %v2935_v25, %v2936_v3  ;;  %4366 = vmatpush1.bf16.xpose.msk.msra.mxu0 %vm8911_vm1, %v8283_v56  ;;  %vm8923_vm1 = vnez %v8922_v30  ;;  %v9005_v25 = vld [vmem:[#allocation104_spill] sm:$0xff] }
 0x49a   :  { %4368 = vmatprep.subr.msk.bf16.mxu0 %vm8913_vm9, %v8283_v56  ;;  %vm8925_vm9 = vnez %v8924_v39  ;;  %v7831_v30 = vld [vmem:[%s8247_s24] sm:$0x3f] }
 0x49b   :  { %v2956_v28 = vadd.f32 %v2948_v48, %v2920_v53  ;;  %v4630_v53 = vmov 0.0  }
 0x49c   :  { %71 = vst [vmem:[#allocation2] sm:$0xff] %v4630_v53 }
 0x49d   :  { %2960 = vst [vmem:[%s7918_s21 + $0x18] sm:$0xff] %v2956_v28 }
 0x4a1   :  { %4370 = vmatpush1.bf16.xpose.msk.msra.mxu0 %vm8915_vm2, %v8283_v56  ;;  %vm8927_vm2 = vnez %v8926_v57 }
 0x4a2   :  { %4372 = vmatprep.subr.msk.bf16.mxu0 %vm8917_vm14, %v8283_v56  ;;  %vm8929_vm14 = vnez %v8928_v36 }
 0x4a3   :  { %v3135_v13 = vld [vmem:[%s3134_s26] sm:$0xff] }
 0x4a9   :  { %4374 = vmatpush1.bf16.xpose.msk.msra.mxu0 %vm8919_vm12, %v8283_v56  ;;  %vm8931_vm12 = vnez %v8930_v34  ;;  %v3154_v34 = vpack.c.bf16 %v7826_v54, %v7826_v54 }
 0x4aa   :  { %4376 = vmatprep.subr.msk.bf16.mxu0 %vm8921_vm10, %v8283_v56  ;;  %vm8933_vm10 = vnez %v8932_v37  ;;  %v3153_v37 = vpack.c.bf16 %v7831_v30, %v7831_v30 }
 0x4b1   :  { %4378 = vmatpush1.bf16.xpose.msk.msra.mxu0 %vm8923_vm1, %v8283_v56  ;;  %vm8935_vm1 = vnez %v8934_v32 }
 0x4b2   :  { %4380 = vmatprep.subr.msk.bf16.mxu0 %vm8925_vm9, %v8283_v56  ;;  %vm8937_vm9 = vnez %v8936_v42  ;;  %v4615_v42 = vld [vmem:[%s7919_s14] sm:$0xff]  }
 0x4b9   :  { %4382 = vmatpush1.bf16.xpose.msk.msra.mxu0 %vm8927_vm2, %v8283_v56  ;;  %vm8939_vm2 = vnez %v8938_v55 }
 0x4ba   :  { %4384 = vmatprep.subr.msk.bf16.mxu0 %vm8929_vm14, %v8283_v56  ;;  %vm8941_vm14 = vnez %v8940_v7  ;;  %v4616_v7 = vld [vmem:[%s7919_s14 + $0x8] sm:$0xff]  }
 0x4c1   :  { %4386 = vmatpush1.bf16.xpose.msk.msra.mxu0 %vm8931_vm12, %v8283_v56  ;;  %vm8943_vm12 = vnez %v8942_v17  ;;  %v4617_v17 = vld [vmem:[%s7919_s14 + $0x10] ss:$0 sps:$4 sm:$0xff]  }
 0x4c2   :  { %4388 = vmatprep.subr.msk.bf16.mxu0 %vm8933_vm10, %v8283_v56  ;;  %vm8945_vm10 = vnez %v8944_v46  ;;  %v4618_v46 = vld [vmem:[%s7920_s13] sm:$0xff]  }
 0x4c9   :  { %4390 = vmatpush1.bf16.xpose.msk.msra.mxu0 %vm8935_vm1, %v8283_v56  ;;  %vm8947_vm1 = vnez %v8946_v63  ;;  %v4619_v63 = vld [vmem:[%s7920_s13 + $0x8] sm:$0xff]  }
 0x4ca   :  { %4392 = vmatprep.subr.msk.bf16.mxu0 %vm8937_vm9, %v8283_v56  ;;  %vm8949_vm9 = vnez %v8948_v10  ;;  %v4620_v10 = vld [vmem:[%s7920_s13 + $0x10] ss:$0 sps:$4 sm:$0xff]  }
 0x4d1   :  { %4394 = vmatpush1.bf16.xpose.msk.msra.mxu0 %vm8939_vm2, %v8283_v56  ;;  %vm8951_vm2 = vnez %v8950_v60 }
 0x4d2   :  { %4396 = vmatprep.subr.msk.bf16.mxu0 %vm8941_vm14, %v8283_v56  ;;  %vm8953_vm14 = vnez %v8952_v62 }
 0x4d9   :  { %4398 = vmatpush1.bf16.xpose.msk.msra.mxu0 %vm8943_vm12, %v8283_v56  ;;  %vm8955_vm12 = vnez %v8954_v44 }
 0x4da   :  { %4400 = vmatprep.subr.msk.bf16.mxu0 %vm8945_vm10, %v8283_v56  ;;  %vm8957_vm10 = vnez %v8956_v15 }
 0x4e1   :  { %4402 = vmatpush1.bf16.xpose.msk.msra.mxu0 %vm8947_vm1, %v8283_v56  ;;  %vm8959_vm1 = vnez %v8958_v20  ;;  %v3351_v20 = vpop.permute.xlu1 %3350 }
 0x4e2   :  { %4404 = vmatprep.subr.msk.bf16.mxu0 %vm8949_vm9, %v8283_v56  ;;  %vm8960_vm9 = vnez %v8579_v49 }
 0x4e9   :  { %4406 = vmatpush1.bf16.xpose.msk.msra.mxu0 %vm8951_vm2, %v8283_v56  ;;  %vm8961_vm2 = vnez %v8584_v33 }
 0x4ea   :  { %4408 = vmatprep.subr.msk.bf16.mxu0 %vm8953_vm14, %v8283_v56  ;;  %vm8962_vm14 = vnez %v8589_v4 }
 0x4f1   :  { %4410 = vmatpush1.bf16.xpose.msk.msra.mxu0 %vm8955_vm12, %v8283_v56  ;;  %vm8964_vm12 = vnez %v8602_v9 }
 0x4f2   :  { %4412 = vmatprep.subr.msk.bf16.mxu0 %vm8957_vm10, %v8283_v56  ;;  %vm8967_vm10 = vnez %v8966_v27 }
 0x4f9   :  { %4414 = vmatpush1.bf16.xpose.msk.msra.mxu0 %vm8959_vm1, %v8283_v56 }
 0x4fa   :  { %4416 = vmatprep.subr.msk.bf16.mxu0 %vm8727_vm7, %v8283_v56  ;;  %vm8963_vm7 = vnez %v8597_v8  ;;  %v8970_v8 = vld [vmem:[#allocation83_spill] sm:$0xff] }
 0x4fb   :  { %vm8971_vm1 = vnez %v8970_v8 }
 0x500   :  { %3084 = vmatmul.mubr.bf16.vlgmr.msra.gmra.mrb[72].mxu0 %v2965_v38 }
 0x501   :  { %4418 = vmatpush1.bf16.xpose.msk.msra.mxu0 %vm8960_vm9, %v8283_v56  ;;  %3124 = vmatprep.mubr.bf16.mxu0 %v2968_v45  ;;  %vm8977_vm9 = vnez %v8976_v61 }
 0x502   :  { %4420 = vmatprep.subr.msk.bf16.mxu0 %vm8961_vm2, %v8283_v56  ;;  %vm8979_vm2 = vnez %v8978_v59  ;;  %v3361_v59 = vpop.permute.xlu1 %3360 }
 0x509   :  { %4422 = vmatpush1.bf16.xpose.msk.msra.mxu0 %vm8962_vm14, %v8283_v56  ;;  %vm8981_vm14 = vnez %v8980_v29 }
 0x50a   :  { %4424 = vmatprep.subr.msk.bf16.mxu0 %vm8735_vm3, %v8283_v56  ;;  %vm8969_vm3 = vnez %v8968_v5 }
 0x511   :  { %4426 = vmatpush1.bf16.xpose.msk.msra.mxu0 %vm8963_vm7, %v8283_v56  ;;  %vm8990_vm7 = vnez %v8989_v50 }
 0x512   :  { %4428 = vmatprep.subr.msk.bf16.mxu0 %vm8964_vm12, %v8283_v56  ;;  %vm9000_vm12 = vnez %v8999_v14 }
 0x516   :  { %v3003_v41 = vpop.f32.mrb[96].mxu1 }
 0x517   :  { %v3005_v49 = vpop.f32.mrb[97].mxu1 }
 0x518   :  { %v3007_v33 = vpop.f32.mrb[98].mxu1 }
 0x519   :  { %4430 = vmatpush1.bf16.xpose.msk.msra.mxu0 %vm6537_vm15, %v8283_v56  ;;  %v3008_v4 = vpop.f32.mrb[99].mxu1  ;;  %vm8974_vm15 = vnez %v8973_v26 }
 0x51a   :  { %4432 = vmatprep.subr.msk.bf16.mxu0 %vm8967_vm10, %v8283_v56  ;;  %vm9004_vm10 = vnez %v9003_v11 }
 0x521   :  { %4434 = vmatpush1.bf16.xpose.msk.msra.mxu0 %vm8969_vm3, %v8283_v56  ;;  %vm9007_vm3 = vcmask 1041408  }
 0x522   :  { %4436 = vmatprep.subr.msk.bf16.mxu0 %vm8971_vm1, %v8283_v56  ;;  %vm9008_vm1 = vmmov %vm9007_vm3 }
 0x529   :  { %4438 = vmatpush1.bf16.xpose.msk.msra.mxu0 %vm6583_vm8, %v8283_v56  ;;  %vm8985_vm8 = vnez %v8984_v23 }
 0x52a   :  { %4440 = vmatprep.subr.msk.bf16.mxu0 %vm8974_vm15, %v8283_v56  ;;  %vm9009_vm15 = vcmask 1042432  }
 0x531   :  { %4442 = vmatpush1.bf16.xpose.msk.msra.mxu0 %vm8743_vm11, %v8283_v56  ;;  %vm8987_vm11 = vnez %v8986_v31 }
 0x532   :  { %4444 = vmatprep.subr.msk.bf16.mxu0 %vm8977_vm9, %v8283_v56  ;;  %vm9010_vm9 = vmmov %vm9009_vm15 }
 0x533   :  { %v3277_v55 = vsel %vm9010_vm9, %v3153_v37, 0  ;;  %v4623_v37 = vld [vmem:[%s7921_s16 + $0x10] ss:$0 sps:$4 sm:$0xff]  }
 0x539   :  { %4446 = vmatpush1.bf16.xpose.msk.msra.mxu0 %vm8979_vm2, %v8283_v56  ;;  %vm9011_vm2 = vcmask 31744  }
 0x53a   :  { %4448 = vmatprep.subr.msk.bf16.mxu0 %vm8981_vm14, %v8283_v56  ;;  %vm9012_vm14 = vmmov %vm9011_vm2 }
 0x541   :  { %4450 = vmatpush1.bf16.xpose.msk.msra.mxu0 %vm8745_vm0, %v8283_v56  ;;  %vm8996_vm0 = vnez %v8995_v22 }
 0x542   :  { %4452 = vmatprep.subr.msk.bf16.mxu0 %vm8746_vm4, %v8283_v56  ;;  %vm8993_vm4 = vnez %v8992_v24 }
 0x549   :  { %4454 = vmatpush1.bf16.xpose.msk.msra.mxu0 %vm8985_vm8, %v8283_v56  ;;  %vm9013_vm8 = vmmov %vm9011_vm2 }
 0x54a   :  { %4456 = vmatprep.subr.msk.bf16.mxu0 %vm8987_vm11, %v8283_v56  ;;  %vm9014_vm11 = vcmask 48128  }
 0x551   :  { %4458 = vmatpush1.bf16.xpose.msk.msra.mxu0 %vm8748_vm13, %v8283_v56  ;;  %vm8998_vm13 = vnez %v8997_v52 }
 0x552   :  { %4460 = vmatprep.subr.msk.bf16.mxu0 %vm8990_vm7, %v8283_v56  ;;  %vm9015_vm7 = vmmov %vm9014_vm11 }
 0x559   :  { %4462 = vmatpush1.bf16.xpose.msk.msra.mxu0 %vm6721_vm5, %v8283_v56  ;;  %vm9002_vm5 = vnez %v9001_v6 }
 0x55a   :  { %4464 = vmatprep.subr.msk.bf16.mxu0 %vm8993_vm4, %v8283_v56  ;;  %vm9016_vm4 = vmmov %vm9015_vm7 }
 0x561   :  { %4466 = vmatpush1.bf16.xpose.msk.msra.mxu0 %vm8750_vm6, %v8283_v56  ;;  %vm9006_vm6 = vnez %v9005_v25 }
 0x562   :  { %4468 = vmatprep.subr.msk.bf16.mxu0 %vm8996_vm0, %v8283_v56  ;;  %vm9017_vm0 = vcmask 1043456  }
 0x569   :  { %4470 = vmatpush1.bf16.xpose.msk.msra.mxu0 %vm8998_vm13, %v8283_v56  ;;  %vm9018_vm13 = vmmov %vm9017_vm0 }
 0x56a   :  { %4472 = vmatprep.subr.msk.bf16.mxu0 %vm9000_vm12, %v8283_v56  ;;  %vm9019_vm12 = vcmask 326656  }
 0x571   :  { %4474 = vmatpush1.bf16.xpose.msk.msra.mxu0 %vm9002_vm5, %v8283_v56  ;;  %vm9020_vm5 = vmmov %vm9019_vm12 }
 0x572   :  { %4476 = vmatprep.subr.msk.bf16.mxu0 %vm9004_vm10, %v8283_v56  ;;  %vm9021_vm10 = vmmov %vm9020_vm5 }
 0x579   :  { %4478 = vmatpush1.bf16.xpose.msk.msra.mxu0 %vm9006_vm6, %v8283_v56  ;;  %vm9022_vm6 = vmmov %vm9017_vm0 }
 0x580   :  { %3125 = vmatmul.mubr.bf16.vlgmr.msra.gmra.mrb[72].mxu0 %v2967_v43 }
 0x653   :  { %v3126_v3 = vpop.f32.mrb[72].mxu0 }
 0x654   :  { %v4511_v48 = vadd.f32 %v3126_v3, %v3003_v41  ;;  %v3128_v58 = vpop.f32.mrb[73].mxu0 }
 0x655   :  { %v4512_v16 = vadd.f32 %v3128_v58, %v3005_v49  ;;  %v3130_v28 = vpop.f32.mrb[74].mxu0  ;;  %v3356_v49 = vpop.permute.xlu0 %3355 }
 0x656   :  { %v3131_v1 = vpop.f32.mrb[75].mxu0 }
 0x657   :  { %v3138_v56 = vcombine.low %v4511_v48, %v4512_v16  ;;  %v3371_v48 = vpop.permute.xlu1 %3370 }
 0x659   :  { %v3140_v51 = vadd.f32 %v3138_v56, %v3135_v13  ;;  %v3366_v31 = vpop.permute.xlu0 %3365 }
 0x65b   :  { %3141 = vst [vmem:[%s3134_s26] sm:$0xff] %v3140_v51 }
 0x662   :  { %v3147_v19 = vld [vmem:[#allocation2] sm:$0xff] }
 0x663   :  { %v3161_v39 = vcombine.high %v3147_v19, %v3147_v19  ;;  %v3163_v57 = vpack.c.bf16 %v3147_v19, %v3147_v19 }
 0x665   :  { %v3164_v36 = vpack.c.bf16 %v3161_v39, %v3161_v39  ;;  %v3188_v32 = vsel %vm9008_vm1, %v3163_v57, 0  ;;  %vm9024_vm1 = vmmov %vm9020_vm5 }
 0x667   :  { %4483 = vmatprep.subr.msk.bf16.mxu1 %vm9007_vm3, %v3164_v36  ;;  %v4621_v36 = vld [vmem:[%s7921_s16] sm:$0xff]   ;;  %vm9023_vm3 = vmmov %vm9017_vm0 }
 0x668   :  { %3194 = vmatpush1.bf16.msra.mxu1 %v3188_v32  ;;  %v3412_v32 = vpop.permute.xlu0 %3411 }
 0x669   :  { %4490 = vmatprep.subr.msk.bf16.mxu1 %vm9009_vm15, %v3154_v34  ;;  %v4622_v34 = vld [vmem:[%s7921_s16 + $0x8] sm:$0xff]  }
 0x66b   :  { %4484 = vmatmul.mubr.msk.bf16.vlgmr.msra.gmra.mrb[100].mxu1 %vm9011_vm2, %v4615_v42 }
 0x66c   :  { %3235 = vmatprep.mubr.bf16.mxu1 %v8489_v35  ;;  %3283 = vmatpush1.bf16.msra.mxu1 %v3277_v55 }
 0x673   :  { %4485 = vmatmul.mubr.msk.bf16.gmra.mrb[104].mxu1 %vm9012_vm14, %v4616_v7 }
 0x674   :  { %3245 = vmatprep.mubr.bf16.mxu1 %v8489_v35 }
 0x67b   :  { %4486 = vmatmul.mubr.msk.bf16.gmra.mrb[108].mxu1 %vm9013_vm8, %v4617_v17  ;;  %v3417_v17 = vpop.permute.xlu1 %3416 }
 0x67c   :  { %3314 = vmatprep.mubr.bf16.mxu1 %v8489_v35 }
 0x683   :  { %4491 = vmatmul.mubr.msk.bf16.vlgmr.msra.gmra.mrb[100].mxu1 %vm9014_vm11, %v4618_v46 }
 0x684   :  { %3324 = vmatprep.mubr.bf16.mxu1 %v8489_v35 }
 0x68b   :  { %4492 = vmatmul.mubr.msk.bf16.gmra.mrb[104].mxu1 %vm9015_vm7, %v4619_v63 }
 0x68c   :  { %3334 = vmatprep.mubr.bf16.mxu1 %v8489_v35 }
 0x693   :  { %4493 = vmatmul.mubr.msk.bf16.gmra.mrb[112].mxu1 %vm9016_vm4, %v4620_v10 }
 0x694   :  { %3494 = vmatprep.mubr.bf16.mxu1 %v8489_v35 }
 0x74e   :  { %v3247_v60 = vpop.f32.mrb[108].mxu1 }
 0x74f   :  { %v3249_v62 = vpop.f32.mrb[109].mxu1 }
 0x750   :  { %v3251_v44 = vpop.f32.mrb[110].mxu1 }
 0x751   :  { %v3252_v15 = vpop.f32.mrb[111].mxu1 }
 0x756   :  { %v3316_v38 = vpop.f32.mrb[100].mxu1 }
 0x757   :  { %v3373_v45 = vadd.f32 %v3351_v20, %v3316_v38  ;;  %v3318_v41 = vpop.f32.mrb[101].mxu1 }
 0x758   :  { %v3374_v33 = vadd.f32 %v3351_v20, %v3318_v41  ;;  %v3320_v18 = vpop.f32.mrb[102].mxu1  ;;  %v3422_v41 = vpop.permute.xlu0 %3421 }
 0x759   :  { %v3375_v4 = vadd.f32 %v3356_v49, %v3320_v18  ;;  %v3322_v27 = vpop.f32.mrb[103].mxu1  ;;  %v3383_v8 = vmax.f32 %v3373_v45, 0.0 }
 0x75a   :  { %v3376_v5 = vadd.f32 %v3356_v49, %v3322_v27  ;;  %v3384_v26 = vmax.f32 %v3374_v33, 0.0 }
 0x75b   :  { %v3385_v9 = vmax.f32 %v3375_v4, 0.0  ;;  %v3427_v4 = vpop.permute.xlu1 %3426 }
 0x75c   :  { %v3386_v40 = vmax.f32 %v3376_v5, 0.0 }
 0x75d   :  { %v3393_v61 = vpack.c.bf16 %v3385_v9, %v3383_v8 }
 0x75e   :  { %v3394_v29 = vpack.c.bf16 %v3386_v40, %v3384_v26  ;;  %v3326_v2 = vpop.f32.mrb[104].mxu1 }
 0x75f   :  { %v3377_v0 = vadd.f32 %v3361_v59, %v3326_v2  ;;  %v3328_v23 = vpop.f32.mrb[105].mxu1 }
 0x760   :  { %v3378_v12 = vadd.f32 %v3361_v59, %v3328_v23  ;;  %v3330_v50 = vpop.f32.mrb[106].mxu1  ;;  %3462 = vmatprep.subr.bf16.mxu1 %v3394_v29 }
 0x761   :  { %v3379_v21 = vadd.f32 %v3366_v31, %v3330_v50  ;;  %v3332_v24 = vpop.f32.mrb[107].mxu1  ;;  %3463 = vmatpush1.bf16.msra.mxu1 %v3393_v61  ;;  %v3387_v22 = vmax.f32 %v3377_v0, 0.0  ;;  %v3432_v0 = vpop.permute.xlu0 %3431 }
 0x762   :  { %v3380_v47 = vadd.f32 %v3366_v31, %v3332_v24  ;;  %v3388_v14 = vmax.f32 %v3378_v12, 0.0 }
 0x763   :  { %v3389_v52 = vmax.f32 %v3379_v21, 0.0 }
 0x764   :  { %v3390_v6 = vmax.f32 %v3380_v47, 0.0 }
 0x765   :  { %v3395_v11 = vpack.c.bf16 %v3389_v52, %v3387_v22 }
 0x766   :  { %v3396_v25 = vpack.c.bf16 %v3390_v6, %v3388_v14  ;;  %v3336_v43 = vpop.f32.mrb[112].mxu1 }
 0x767   :  { %v3337_v53 = vadd.f32 %v3336_v43, %v3247_v60  ;;  %v3338_v3 = vpop.f32.mrb[113].mxu1  ;;  %v3544_v43 = vpop.permute.xlu1 %3543 }
 0x768   :  { %v3339_v58 = vadd.f32 %v3338_v3, %v3249_v62  ;;  %3464 = vmatprep.subr.bf16.mxu1 %v3396_v25  ;;  %v3340_v16 = vpop.f32.mrb[114].mxu1  ;;  %v3539_v25 = vld [vmem:[%s7922_s18] sm:$0x7] }
 0x769   :  { %v3381_v28 = vadd.f32 %v3371_v48, %v3337_v53  ;;  %3465 = vmatpush1.bf16.msra.mxu1 %v3395_v11  ;;  %v3341_v13 = vpop.f32.mrb[115].mxu1 }
 0x76a   :  { %v3382_v1 = vadd.f32 %v3371_v48, %v3339_v58 }
 0x76b   :  { %v3391_v56 = vmax.f32 %v3381_v28, 0.0  ;;  %v3596_v28 = vmul.f32 0.5, %v7831_v30 }
 0x76c   :  { %v3392_v51 = vmax.f32 %v3382_v1, 0.0 }
 0x76d   :  { %v3397_v19 = vpack.c.bf16 %v3391_v56, %v3391_v56  ;;  %v3597_v56 = vmul.f32 0.5, %v7826_v54 }
 0x76e   :  { %v3398_v39 = vpack.c.bf16 %v3392_v51, %v3392_v51 }
 0x76f   :  { %v3457_v57 = vsel %vm9017_vm0, %v3397_v19, 0 }
 0x770   :  { %4497 = vmatprep.subr.msk.bf16.mxu1 %vm9018_vm13, %v3398_v39 }
 0x771   :  { %3467 = vmatpush1.bf16.msra.mxu1 %v3457_v57 }
 0x774   :  { %4498 = vmatmul.mubr.msk.bf16.vlgmr.msra.gmra.mrb[116].mxu1 %vm9019_vm12, %v4621_v36 }
 0x775   :  { %3504 = vmatprep.mubr.bf16.mxu1 %v8489_v35 }
 0x77c   :  { %4499 = vmatmul.mubr.msk.bf16.gmra.mrb[120].mxu1 %vm9020_vm5, %v4622_v34 }
 0x77d   :  { %3514 = vmatprep.mubr.bf16.mxu1 %v8489_v35 }
 0x784   :  { %4500 = vmatmul.mubr.msk.bf16.gmra.mrb[124].mxu1 %vm9021_vm10, %v4623_v37 }
 0x785   :  { %3587 = vmatprep.mubr.bf16.mxu1 %v8489_v35 }
 0x847   :  { %v3496_v42 = vpop.f32.mrb[116].mxu1 }
 0x848   :  { %v3497_v55 = vadd.f32 %v3496_v42, %v3412_v32  ;;  %v3498_v7 = vpop.f32.mrb[117].mxu1 }
 0x849   :  { %v3499_v46 = vadd.f32 %v3498_v7, %v3412_v32  ;;  %v3500_v63 = vpop.f32.mrb[118].mxu1 }
 0x84a   :  { %v3501_v10 = vadd.f32 %v3500_v63, %v3417_v17  ;;  %v3502_v60 = vpop.f32.mrb[119].mxu1  ;;  %v3523_v44 = vmax.f32 %v3497_v55, 0.0 }
 0x84b   :  { %v3503_v62 = vadd.f32 %v3502_v60, %v3417_v17  ;;  %v3524_v20 = vmax.f32 %v3499_v46, 0.0 }
 0x84c   :  { %v3525_v15 = vmax.f32 %v3501_v10, 0.0 }
 0x84d   :  { %v3526_v38 = vmax.f32 %v3503_v62, 0.0 }
 0x84e   :  { %v3533_v45 = vpack.c.bf16 %v3525_v15, %v3523_v44 }
 0x84f   :  { %v3534_v49 = vpack.c.bf16 %v3526_v38, %v3524_v20  ;;  %v3506_v33 = vpop.f32.mrb[120].mxu1 }
 0x850   :  { %v3507_v18 = vadd.f32 %v3506_v33, %v3422_v41  ;;  %v3508_v35 = vpop.f32.mrb[121].mxu1 }
 0x851   :  { %v3509_v27 = vadd.f32 %v3508_v35, %v3422_v41  ;;  %v3510_v5 = vpop.f32.mrb[122].mxu1  ;;  %3555 = vmatprep.subr.bf16.mxu1 %v3534_v49 }
 0x852   :  { %v3511_v8 = vadd.f32 %v3510_v5, %v3427_v4  ;;  %v3512_v9 = vpop.f32.mrb[123].mxu1  ;;  %3556 = vmatpush1.bf16.msra.mxu1 %v3533_v45  ;;  %v3527_v40 = vmax.f32 %v3507_v18, 0.0 }
 0x853   :  { %v3513_v26 = vadd.f32 %v3512_v9, %v3427_v4  ;;  %v3528_v59 = vmax.f32 %v3509_v27, 0.0 }
 0x854   :  { %v3529_v61 = vmax.f32 %v3511_v8, 0.0 }
 0x855   :  { %v3530_v29 = vmax.f32 %v3513_v26, 0.0 }
 0x856   :  { %v3535_v2 = vpack.c.bf16 %v3529_v61, %v3527_v40 }
 0x857   :  { %v3536_v23 = vpack.c.bf16 %v3530_v29, %v3528_v59  ;;  %v3516_v31 = vpop.f32.mrb[124].mxu1 }
 0x858   :  { %v3517_v12 = vadd.f32 %v3516_v31, %v3432_v0  ;;  %v3518_v50 = vpop.f32.mrb[125].mxu1 }
 0x859   :  { %v3519_v21 = vadd.f32 %v3518_v50, %v3432_v0  ;;  %3557 = vmatprep.subr.bf16.mxu1 %v3536_v23  ;;  %v3520_v24 = vpop.f32.mrb[126].mxu1 }
 0x85a   :  { %v3531_v47 = vmax.f32 %v3517_v12, 0.0  ;;  %3558 = vmatpush1.bf16.msra.mxu1 %v3535_v2  ;;  %v3521_v22 = vpop.f32.mrb[127].mxu1 }
 0x85b   :  { %v3532_v52 = vmax.f32 %v3519_v21, 0.0 }
 0x85c   :  { %v3537_v14 = vpack.c.bf16 %v3531_v47, %v3531_v47 }
 0x85d   :  { %v3538_v6 = vpack.c.bf16 %v3532_v52, %v3532_v52 }
 0x85e   :  { %v3550_v11 = vsel %vm9022_vm6, %v3537_v14, 0 }
 0x85f   :  { %4501 = vmatprep.subr.msk.bf16.mxu1 %vm9023_vm3, %v3538_v6 }
 0x860   :  { %3560 = vmatpush1.bf16.msra.mxu1 %v3550_v11 }
 0x863   :  { %4502 = vmatmul.mubr.msk.bf16.vlgmr.msra.gmra.mrb[128].mxu1 %vm9024_vm1, %v3539_v25 }
 0x936   :  { %v3589_v53 = vpop.f32.mrb[128].mxu1 }
 0x937   :  { %v3590_v3 = vadd.f32 %v3589_v53, %v3544_v43  ;;  %v3591_v48 = vpop.f32.mrb[129].mxu1 }
 0x938   :  { %v3592_v58 = vadd.f32 %v3591_v48, %v3544_v43  ;;  %v3593_v16 = vpop.f32.mrb[130].mxu1 }
 0x939   :  { %v3598_v13 = vmax.f32 %v3590_v3, 0.0  ;;  %v3594_v1 = vpop.f32.mrb[131].mxu1 }
 0x93a   :  { %v3599_v51 = vmax.f32 %v3592_v58, 0.0 }
 0x93b   :  { %v3600_v19 = vmul.f32 0.5, %v3598_v13 }
 0x93c   :  { %v3601_v39 = vmul.f32 0.5, %v3599_v51 }
 0x93d   :  { %v3602_v57 = vadd.f32 %v3600_v19, %v3596_v28 }
 0x93e   :  { %v3603_v36 = vadd.f32 %v3601_v39, %v3597_v56 }
 0x93f   :  { %3604 = vst [vmem:[%s7923_s20] sm:$0x3f] %v3602_v57 }
 0x940   :  { %3605 = vst [vmem:[%s7923_s20 + $0x8] sm:$0x3f] %v3603_v36 }

</bundles_post_ra>
